<compile_context>
chip_gen: v5e
topology: v5e:2x2
jax: 0.10.0
libtpu: 0.0.40
codegen_flags: <defaults>
</compile_context>

<pallas_src>
import jax
import jax.numpy as jnp
from jax.experimental import pallas as pl
from jax.experimental.pallas import tpu as pltpu

IN_DIM = 784
HID_DIM = 400
LATENT = 20


def vae_kernel(x_ref, eps_ref,
               w1_ref, b1_ref,
               w2_ref, b2_ref,      # fused [w21 | w22] -> (400, 40), [b21 | b22] -> (1, 40)
               w3_ref, b3_ref,
               w4_ref, b4_ref,
               recon_ref, mu_ref, logvar_ref):
    bf16 = jnp.bfloat16
    x = x_ref[...]                                                        # (TB, 784) f32

    # encode: h1 = relu(x @ W1 + b1)   (bf16 operands, f32 accumulation)
    h1 = jnp.dot(x.astype(bf16), w1_ref[...],
                 preferred_element_type=jnp.float32) + b1_ref[...]
    h1 = jnp.maximum(h1, 0.0)

    # fused mu/logvar projection: one 40-wide matmul, then slice.
    stats = jnp.dot(h1.astype(bf16), w2_ref[...],
                    preferred_element_type=jnp.float32) + b2_ref[...]     # (TB, 40)
    mu = stats[:, :LATENT]
    logvar = stats[:, LATENT:]

    # reparameterize (training path): z = eps * exp(0.5*logvar) + mu  (f32 elementwise)
    std = jnp.exp(0.5 * logvar)
    z = eps_ref[...] * std + mu

    # decode: h3 = relu(z @ W3 + b3); recon = sigmoid(h3 @ W4 + b4)
    h3 = jnp.dot(z.astype(bf16), w3_ref[...],
                 preferred_element_type=jnp.float32) + b3_ref[...]
    h3 = jnp.maximum(h3, 0.0)
    logits = jnp.dot(h3.astype(bf16), w4_ref[...],
                     preferred_element_type=jnp.float32) + b4_ref[...]
    recon = pl.reciprocal(1.0 + jnp.exp(-logits), approx=True)            # EUP sigmoid

    recon_ref[...] = recon
    mu_ref[...] = mu
    logvar_ref[...] = logvar


def _row_spec(tile_b, feat):
    # Batch-blocked slab: new block per grid step.
    return pl.BlockSpec((tile_b, feat), lambda i: (i, 0))


def _resident_spec(shape):
    # Weights/biases: same (0, 0, ...) block every step -> stay resident in VMEM.
    return pl.BlockSpec(shape, lambda i: tuple(0 for _ in shape))


def vae_forward(x_img, eps, params, tile_b=512):
    """x_img: (N, 1, 28, 28) f32.  Returns (recon (N,784), mu (N,20), logvar (N,20))."""
    x = x_img.reshape(-1, IN_DIM).astype(jnp.float32)
    N = x.shape[0]
    eps = eps.astype(jnp.float32)

    # Tile the batch; clamp the tile for tiny batches (keep sublane-multiple of 8).
    tb = min(tile_b, max(8, ((N + 7) // 8) * 8))
    grid = (pl.cdiv(N, tb),)

    # Weights as bf16 MXU operands (cast once, outside the kernel); biases stay f32.
    w1 = params["w1"].astype(jnp.bfloat16)
    w2 = jnp.concatenate([params["w21"], params["w22"]], axis=1).astype(jnp.bfloat16)
    w3 = params["w3"].astype(jnp.bfloat16)
    w4 = params["w4"].astype(jnp.bfloat16)
    b1 = params["b1"].astype(jnp.float32)
    b2 = jnp.concatenate([params["b21"], params["b22"]], axis=1).astype(jnp.float32)
    b3 = params["b3"].astype(jnp.float32)
    b4 = params["b4"].astype(jnp.float32)

    in_specs = [
        _row_spec(tb, IN_DIM),            # x
        _row_spec(tb, LATENT),            # eps
        _resident_spec(w1.shape), _resident_spec(b1.shape),
        _resident_spec(w2.shape), _resident_spec(b2.shape),
        _resident_spec(w3.shape), _resident_spec(b3.shape),
        _resident_spec(w4.shape), _resident_spec(b4.shape),
    ]
    out_specs = (
        _row_spec(tb, IN_DIM),            # recon
        _row_spec(tb, LATENT),            # mu
        _row_spec(tb, LATENT),            # logvar
    )
    out_shape = (
        jax.ShapeDtypeStruct((N, IN_DIM), jnp.float32),
        jax.ShapeDtypeStruct((N, LATENT), jnp.float32),
        jax.ShapeDtypeStruct((N, LATENT), jnp.float32),
    )

    return pl.pallas_call(
        vae_kernel,
        grid=grid,
        in_specs=in_specs,
        out_specs=out_specs,
        out_shape=out_shape,
        compiler_params=pltpu.CompilerParams(
            dimension_semantics=("parallel",),   # megacore-shard batch tiles on v7x
        ),
    )(x, eps, w1, b1, w2, b2, w3, b3, w4, b4)


def init_params(key):
    """Deterministic init mimicking PyTorch nn.Linear default (U(-1/sqrt(fan_in), ..)).
    Weights are stored pre-transposed as (in, out) so the kernel does x @ W."""
    dims = {
        "1": (IN_DIM, HID_DIM),
        "21": (HID_DIM, LATENT),
        "22": (HID_DIM, LATENT),
        "3": (LATENT, HID_DIM),
        "4": (HID_DIM, IN_DIM),
    }
    params = {}
    keys = jax.random.split(key, 2 * len(dims))
    for i, (name, (fan_in, fan_out)) in enumerate(sorted(dims.items())):
        bound = 1.0 / (fan_in ** 0.5)
        w = jax.random.uniform(keys[2 * i], (fan_in, fan_out),
                               minval=-bound, maxval=bound, dtype=jnp.float32)
        b = jax.random.uniform(keys[2 * i + 1], (1, fan_out),
                               minval=-bound, maxval=bound, dtype=jnp.float32)
        params["w" + name] = w
        params["b" + name] = b
    return params


if __name__ == "__main__":
    key = jax.random.PRNGKey(0)
    k_param, k_x, k_eps = jax.random.split(key, 3)

    params = init_params(k_param)

    N = 2
    x_img = jax.random.uniform(k_x, (N, 1, 28, 28), dtype=jnp.float32)   # MNIST-like input
    eps = jax.random.normal(k_eps, (N, LATENT), dtype=jnp.float32)       # reparameterize noise

    recon, mu, logvar = vae_forward(x_img, eps, params)
    jax.block_until_ready((recon, mu, logvar))

    # Pure-JAX reference with matching numerics (bf16 matmul operands, f32 accumulation).
    def ref(x_img, eps, p):
        bf = jnp.bfloat16

        def mm(a, w):
            return jnp.dot(a.astype(bf), w.astype(bf),
                           preferred_element_type=jnp.float32)

        x = x_img.reshape(-1, IN_DIM).astype(jnp.float32)
        h1 = jnp.maximum(mm(x, p["w1"]) + p["b1"], 0.0)
        mu = mm(h1, p["w21"]) + p["b21"]
        logvar = mm(h1, p["w22"]) + p["b22"]
        z = eps * jnp.exp(0.5 * logvar) + mu
        h3 = jnp.maximum(mm(z, p["w3"]) + p["b3"], 0.0)
        recon = jax.nn.sigmoid(mm(h3, p["w4"]) + p["b4"])
        return recon, mu, logvar

    r_ref, mu_r, lv_r = ref(x_img, eps, params)
    assert jnp.allclose(mu, mu_r, atol=5e-3), "mu mismatch"
    assert jnp.allclose(logvar, lv_r, atol=5e-3), "logvar mismatch"
    assert jnp.allclose(recon, r_ref, atol=1e-2), "recon mismatch"  # approx-recip sigmoid

    print("KERNEL_OK")
</pallas_src>

<mosaic_0001>
module attributes {stable_mosaic.version = 11 : i64} {
  func.func @vae_kernel(%arg0: i32, %arg1: memref<8x784xf32, #tpu.memory_space<vmem>>, %arg2: memref<8x20xf32, #tpu.memory_space<vmem>>, %arg3: memref<784x400xbf16, #tpu.memory_space<vmem>>, %arg4: memref<1x400xf32, #tpu.memory_space<vmem>>, %arg5: memref<400x40xbf16, #tpu.memory_space<vmem>>, %arg6: memref<1x40xf32, #tpu.memory_space<vmem>>, %arg7: memref<20x400xbf16, #tpu.memory_space<vmem>>, %arg8: memref<1x400xf32, #tpu.memory_space<vmem>>, %arg9: memref<400x784xbf16, #tpu.memory_space<vmem>>, %arg10: memref<1x784xf32, #tpu.memory_space<vmem>>, %arg11: memref<8x784xf32, #tpu.memory_space<vmem>>, %arg12: memref<8x20xf32, #tpu.memory_space<vmem>>, %arg13: memref<8x20xf32, #tpu.memory_space<vmem>>) attributes {dimension_semantics = [#tpu.dimension_semantics<parallel>], iteration_bounds = array<i64: 1>, scalar_prefetch = 0 : i64, scratch_operands = 0 : i64, tpu.core_type = #tpu.core_type<tc>, window_params = [{transform_indices = @transform_0, window_bounds = array<i64: 8, 784>}, {transform_indices = @transform_1, window_bounds = array<i64: 8, 20>}, {pipeline_mode = #tpu.pipeline_mode<synchronous>, transform_indices = @transform_2, window_bounds = array<i64: 784, 400>}, {pipeline_mode = #tpu.pipeline_mode<synchronous>, transform_indices = @transform_3, window_bounds = array<i64: 1, 400>}, {pipeline_mode = #tpu.pipeline_mode<synchronous>, transform_indices = @transform_4, window_bounds = array<i64: 400, 40>}, {pipeline_mode = #tpu.pipeline_mode<synchronous>, transform_indices = @transform_5, window_bounds = array<i64: 1, 40>}, {pipeline_mode = #tpu.pipeline_mode<synchronous>, transform_indices = @transform_6, window_bounds = array<i64: 20, 400>}, {pipeline_mode = #tpu.pipeline_mode<synchronous>, transform_indices = @transform_7, window_bounds = array<i64: 1, 400>}, {pipeline_mode = #tpu.pipeline_mode<synchronous>, transform_indices = @transform_8, window_bounds = array<i64: 400, 784>}, {pipeline_mode = #tpu.pipeline_mode<synchronous>, transform_indices = @transform_9, window_bounds = array<i64: 1, 784>}, {transform_indices = @transform_10, window_bounds = array<i64: 8, 784>}, {transform_indices = @transform_11, window_bounds = array<i64: 8, 20>}, {transform_indices = @transform_12, window_bounds = array<i64: 8, 20>}]} {
    %c0 = arith.constant 0 : index
    %c0_0 = arith.constant 0 : index
    %0 = vector.load %arg1[%c0, %c0_0] : memref<8x784xf32, #tpu.memory_space<vmem>>, vector<8x784xf32>
    %1 = arith.truncf %0 : vector<8x784xf32> to vector<8x784xbf16>
    %c0_1 = arith.constant 0 : index
    %c0_2 = arith.constant 0 : index
    %2 = vector.load %arg3[%c0_1, %c0_2] : memref<784x400xbf16, #tpu.memory_space<vmem>>, vector<784x400xbf16>
    %cst = arith.constant dense<0.000000e+00> : vector<8x400xf32>
    %3 = tpu.matmul %1, %2, %cst {dimension_numbers = #tpu.dot_dimension_numbers<[1], [0], [0], [1], [0, 0, 1, 1], [], []>} : vector<8x784xbf16>, vector<784x400xbf16>, vector<8x400xf32> -> vector<8x400xf32>
    %c0_3 = arith.constant 0 : index
    %c0_4 = arith.constant 0 : index
    %4 = vector.load %arg4[%c0_3, %c0_4] : memref<1x400xf32, #tpu.memory_space<vmem>>, vector<1x400xf32>
    %5 = vector.broadcast %4 : vector<1x400xf32> to vector<8x400xf32>
    %6 = arith.addf %3, %5 : vector<8x400xf32>
    %cst_5 = arith.constant 0.000000e+00 : f32
    %7 = vector.broadcast %cst_5 : f32 to vector<8x400xf32>
    %8 = arith.maximumf %6, %7 : vector<8x400xf32>
    %9 = arith.truncf %8 : vector<8x400xf32> to vector<8x400xbf16>
    %c0_6 = arith.constant 0 : index
    %c0_7 = arith.constant 0 : index
    %10 = vector.load %arg5[%c0_6, %c0_7] : memref<400x40xbf16, #tpu.memory_space<vmem>>, vector<400x40xbf16>
    %cst_8 = arith.constant dense<0.000000e+00> : vector<8x40xf32>
    %11 = tpu.matmul %9, %10, %cst_8 {dimension_numbers = #tpu.dot_dimension_numbers<[1], [0], [0], [1], [0, 0, 1, 1], [], []>} : vector<8x400xbf16>, vector<400x40xbf16>, vector<8x40xf32> -> vector<8x40xf32>
    %c0_9 = arith.constant 0 : index
    %c0_10 = arith.constant 0 : index
    %12 = vector.load %arg6[%c0_9, %c0_10] : memref<1x40xf32, #tpu.memory_space<vmem>>, vector<1x40xf32>
    %13 = vector.broadcast %12 : vector<1x40xf32> to vector<8x40xf32>
    %14 = arith.addf %11, %13 : vector<8x40xf32>
    %15 = vector.extract_strided_slice %14 {offsets = [0, 0], sizes = [8, 20], strides = [1, 1]} : vector<8x40xf32> to vector<8x20xf32>
    %16 = vector.extract_strided_slice %14 {offsets = [0, 20], sizes = [8, 20], strides = [1, 1]} : vector<8x40xf32> to vector<8x20xf32>
    %cst_11 = arith.constant 5.000000e-01 : f32
    %17 = vector.broadcast %cst_11 : f32 to vector<8x20xf32>
    %18 = arith.mulf %17, %16 : vector<8x20xf32>
    %19 = math.exp %18 : vector<8x20xf32>
    %c0_12 = arith.constant 0 : index
    %c0_13 = arith.constant 0 : index
    %20 = vector.load %arg2[%c0_12, %c0_13] : memref<8x20xf32, #tpu.memory_space<vmem>>, vector<8x20xf32>
    %21 = arith.mulf %20, %19 : vector<8x20xf32>
    %22 = arith.addf %21, %15 : vector<8x20xf32>
    %23 = arith.truncf %22 : vector<8x20xf32> to vector<8x20xbf16>
    %c0_14 = arith.constant 0 : index
    %c0_15 = arith.constant 0 : index
    %24 = vector.load %arg7[%c0_14, %c0_15] : memref<20x400xbf16, #tpu.memory_space<vmem>>, vector<20x400xbf16>
    %cst_16 = arith.constant dense<0.000000e+00> : vector<8x400xf32>
    %25 = tpu.matmul %23, %24, %cst_16 {dimension_numbers = #tpu.dot_dimension_numbers<[1], [0], [0], [1], [0, 0, 1, 1], [], []>} : vector<8x20xbf16>, vector<20x400xbf16>, vector<8x400xf32> -> vector<8x400xf32>
    %c0_17 = arith.constant 0 : index
    %c0_18 = arith.constant 0 : index
    %26 = vector.load %arg8[%c0_17, %c0_18] : memref<1x400xf32, #tpu.memory_space<vmem>>, vector<1x400xf32>
    %27 = vector.broadcast %26 : vector<1x400xf32> to vector<8x400xf32>
    %28 = arith.addf %25, %27 : vector<8x400xf32>
    %cst_19 = arith.constant 0.000000e+00 : f32
    %29 = vector.broadcast %cst_19 : f32 to vector<8x400xf32>
    %30 = arith.maximumf %28, %29 : vector<8x400xf32>
    %31 = arith.truncf %30 : vector<8x400xf32> to vector<8x400xbf16>
    %c0_20 = arith.constant 0 : index
    %c0_21 = arith.constant 0 : index
    %32 = vector.load %arg9[%c0_20, %c0_21] : memref<400x784xbf16, #tpu.memory_space<vmem>>, vector<400x784xbf16>
    %cst_22 = arith.constant dense<0.000000e+00> : vector<8x784xf32>
    %33 = tpu.matmul %31, %32, %cst_22 {dimension_numbers = #tpu.dot_dimension_numbers<[1], [0], [0], [1], [0, 0, 1, 1], [], []>} : vector<8x400xbf16>, vector<400x784xbf16>, vector<8x784xf32> -> vector<8x784xf32>
    %c0_23 = arith.constant 0 : index
    %c0_24 = arith.constant 0 : index
    %34 = vector.load %arg10[%c0_23, %c0_24] : memref<1x784xf32, #tpu.memory_space<vmem>>, vector<1x784xf32>
    %35 = vector.broadcast %34 : vector<1x784xf32> to vector<8x784xf32>
    %36 = arith.addf %33, %35 : vector<8x784xf32>
    %cst_25 = arith.constant 0.000000e+00 : f32
    %37 = vector.broadcast %cst_25 : f32 to vector<8x784xf32>
    %38 = arith.subf %37, %36 : vector<8x784xf32>
    %39 = math.exp %38 : vector<8x784xf32>
    %cst_26 = arith.constant 1.000000e+00 : f32
    %40 = vector.broadcast %cst_26 : f32 to vector<8x784xf32>
    %41 = arith.addf %40, %39 : vector<8x784xf32>
    %42 = tpu.reciprocal %41 {approx = true} : vector<8x784xf32> -> vector<8x784xf32>
    %c0_27 = arith.constant 0 : index
    %c0_28 = arith.constant 0 : index
    %43 = vector.load %arg11[%c0_27, %c0_28] : memref<8x784xf32, #tpu.memory_space<vmem>>, vector<8x784xf32>
    tpu.vector_store %arg11[%c0_27, %c0_28], %42 {strides = array<i32>} : memref<8x784xf32, #tpu.memory_space<vmem>>, vector<8x784xf32>,
    %c0_29 = arith.constant 0 : index
    %c0_30 = arith.constant 0 : index
    %44 = vector.load %arg12[%c0_29, %c0_30] : memref<8x20xf32, #tpu.memory_space<vmem>>, vector<8x20xf32>
    tpu.vector_store %arg12[%c0_29, %c0_30], %15 {strides = array<i32>} : memref<8x20xf32, #tpu.memory_space<vmem>>, vector<8x20xf32>,
    %c0_31 = arith.constant 0 : index
    %c0_32 = arith.constant 0 : index
    %45 = vector.load %arg13[%c0_31, %c0_32] : memref<8x20xf32, #tpu.memory_space<vmem>>, vector<8x20xf32>
    tpu.vector_store %arg13[%c0_31, %c0_32], %16 {strides = array<i32>} : memref<8x20xf32, #tpu.memory_space<vmem>>, vector<8x20xf32>,
    return
  }
  func.func @transform_0(%arg0: i32) -> (i32, i32) {
    %c0_i32 = arith.constant 0 : i32
    %c0_i32_0 = arith.constant 0 : i32
    return %arg0, %c0_i32 : i32, i32
  }
  func.func @transform_1(%arg0: i32) -> (i32, i32) {
    %c0_i32 = arith.constant 0 : i32
    %c0_i32_0 = arith.constant 0 : i32
    return %arg0, %c0_i32 : i32, i32
  }
  func.func @transform_2(%arg0: i32) -> (i32, i32) {
    %c0_i32 = arith.constant 0 : i32
    %c0_i32_0 = arith.constant 0 : i32
    %c0_i32_1 = arith.constant 0 : i32
    return %c0_i32, %c0_i32_0 : i32, i32
  }
  func.func @transform_3(%arg0: i32) -> (i32, i32) {
    %c0_i32 = arith.constant 0 : i32
    %c0_i32_0 = arith.constant 0 : i32
    %c0_i32_1 = arith.constant 0 : i32
    return %c0_i32, %c0_i32_0 : i32, i32
  }
  func.func @transform_4(%arg0: i32) -> (i32, i32) {
    %c0_i32 = arith.constant 0 : i32
    %c0_i32_0 = arith.constant 0 : i32
    %c0_i32_1 = arith.constant 0 : i32
    return %c0_i32, %c0_i32_0 : i32, i32
  }
  func.func @transform_5(%arg0: i32) -> (i32, i32) {
    %c0_i32 = arith.constant 0 : i32
    %c0_i32_0 = arith.constant 0 : i32
    %c0_i32_1 = arith.constant 0 : i32
    return %c0_i32, %c0_i32_0 : i32, i32
  }
  func.func @transform_6(%arg0: i32) -> (i32, i32) {
    %c0_i32 = arith.constant 0 : i32
    %c0_i32_0 = arith.constant 0 : i32
    %c0_i32_1 = arith.constant 0 : i32
    return %c0_i32, %c0_i32_0 : i32, i32
  }
  func.func @transform_7(%arg0: i32) -> (i32, i32) {
    %c0_i32 = arith.constant 0 : i32
    %c0_i32_0 = arith.constant 0 : i32
    %c0_i32_1 = arith.constant 0 : i32
    return %c0_i32, %c0_i32_0 : i32, i32
  }
  func.func @transform_8(%arg0: i32) -> (i32, i32) {
    %c0_i32 = arith.constant 0 : i32
    %c0_i32_0 = arith.constant 0 : i32
    %c0_i32_1 = arith.constant 0 : i32
    return %c0_i32, %c0_i32_0 : i32, i32
  }
  func.func @transform_9(%arg0: i32) -> (i32, i32) {
    %c0_i32 = arith.constant 0 : i32
    %c0_i32_0 = arith.constant 0 : i32
    %c0_i32_1 = arith.constant 0 : i32
    return %c0_i32, %c0_i32_0 : i32, i32
  }
  func.func @transform_10(%arg0: i32) -> (i32, i32) {
    %c0_i32 = arith.constant 0 : i32
    %c0_i32_0 = arith.constant 0 : i32
    return %arg0, %c0_i32 : i32, i32
  }
  func.func @transform_11(%arg0: i32) -> (i32, i32) {
    %c0_i32 = arith.constant 0 : i32
    %c0_i32_0 = arith.constant 0 : i32
    return %arg0, %c0_i32 : i32, i32
  }
  func.func @transform_12(%arg0: i32) -> (i32, i32) {
    %c0_i32 = arith.constant 0 : i32
    %c0_i32_0 = arith.constant 0 : i32
    return %arg0, %c0_i32 : i32, i32
  }
}

</mosaic_0001>

<bundles_post_ra>
// kernel: tpu_custom_call.1
= control target key start
LH: loop header
LB: loop body
LE: loop exit
PB: predicated region body
PF: predicated region fallthrough
CT: control target
= control target key end

     0   :  { %18 = vsyncpa [#allocation3], 0  ;;  %s8422_s0 = inlined_call_operand.vmem [shape: f32[2,784], index: 0, kind: input, shape index: {}]   ;;  %s8423_s1 = inlined_call_operand.vmem [shape: f32[2,20], index: 1, kind: input, shape index: {}]   ;;  %s8424_s2 = inlined_call_operand.vmem [shape: bf16[784,400], index: 2, kind: input, shape index: {}]   ;;  %s8425_s3 = inlined_call_operand.vmem [shape: f32[1,400], index: 3, kind: input, shape index: {}]   ;;  %s8426_s4 = inlined_call_operand.vmem [shape: bf16[400,40], index: 4, kind: input, shape index: {}]   ;;  %s8427_s5 = inlined_call_operand.vmem [shape: f32[1,40], index: 5, kind: input, shape index: {}]   ;;  %s8428_s6 = inlined_call_operand.vmem [shape: bf16[20,400], index: 6, kind: input, shape index: {}]   ;;  %s8429_s7 = inlined_call_operand.vmem [shape: f32[1,400], index: 7, kind: input, shape index: {}]   ;;  %s8430_s8 = inlined_call_operand.vmem [shape: bf16[400,784], index: 8, kind: input, shape index: {}]   ;;  %s8431_s9 = inlined_call_operand.vmem [shape: f32[1,784], index: 9, kind: input, shape index: {}]   ;;  %s8432_s10 = inlined_call_operand.hbm [shape: f32[2,784], index: 10, kind: output, shape index: {0}]   ;;  %s8433_s11 = inlined_call_operand.hbm [shape: f32[2,20], index: 11, kind: output, shape index: {1}]   ;;  %s8434_s12 = inlined_call_operand.hbm [shape: f32[2,20], index: 12, kind: output, shape index: {2}]  }
   0x1   :  { %19 = vsyncpa [#allocation5], 0  ;;  %v3801_v0 = vld [vmem:[%s8424_s2 + $0xe0] sm:$0xf]  ;;  %v5333_v1 = vld [vmem:[%s8424_s2 + $0xec] sm:$0xf0] }
   0x2   :  { %v3802_v2 = vor.u32 %v5333_v1, %v3801_v0  ;;  %v3929_v3 = vld [vmem:[%s8424_s2 + $0x1e0] sm:$0xf]  ;;  %v5365_v4 = vld [vmem:[%s8424_s2 + $0x1ec] sm:$0xf0]  ;;  %vm1279_vm0 = vcmask 130048   ;;  %vm1975_vm1 = vcmask 1041408  }
   0x3   :  { %v4057_v5 = vld [vmem:[%s8424_s2 + $0x2e0] sm:$0xf]  ;;  %v3930_v6 = vor.u32 %v5365_v4, %v3929_v3  ;;  %v5397_v7 = vld [vmem:[%s8424_s2 + $0x2ec] sm:$0xf0]  ;;  %vm1971_vm2 = vcmask 162816   ;;  %vm3585_vm3 = vcmask 1043458  }
   0x4   :  { %v4185_v8 = vld [vmem:[%s8424_s2 + $0x3e0] sm:$0xf]  ;;  %v5429_v9 = vld [vmem:[%s8424_s2 + $0x3ec] sm:$0xf0]  ;;  %1283 = vmatpush.bf16.msra.mxu0 %v3802_v2  ;;  %v4058_v10 = vor.u32 %v5397_v7, %v4057_v5  ;;  %vm3579_vm4 = vcmask 1045508   ;;  %vm3587_vm5 = vcmask 1045504   ;;  %vm3618_vm8 = vmor %vm3585_vm3, %vm1975_vm1 }
   0x5   :  { %v4186_v11 = vor.u32 %v5429_v9, %v4185_v8  ;;  %v3785_v12 = vld [vmem:[%s8424_s2 + $0xc0] sm:$0xf]  ;;  %v5329_v13 = vld [vmem:[%s8424_s2 + $0xcc] sm:$0xf0]  ;;  %1296 = vmatpush.bf16.msra.mxu1 %v3930_v6  ;;  %vm3581_vm6 = vcmask 1043456   ;;  %vm3589_vm7 = vcmask 1045506  }
   0x6   :  { %v3913_v14 = vld [vmem:[%s8424_s2 + $0x1c0] sm:$0xf]  ;;  %v3786_v15 = vor.u32 %v5329_v13, %v3785_v12  ;;  %v5361_v16 = vld [vmem:[%s8424_s2 + $0x1cc] sm:$0xf0]  ;;  %1309 = vmatpush.bf16.msra.mxu2 %v4058_v10  ;;  %vm3619_vm9 = vcmask 128004  }
   0x7   :  { %v4041_v17 = vld [vmem:[%s8424_s2 + $0x2c0] sm:$0xf]  ;;  %v5393_v18 = vld [vmem:[%s8424_s2 + $0x2cc] sm:$0xf0]  ;;  %1322 = vmatpush.bf16.msra.mxu3 %v4186_v11  ;;  %v3914_v19 = vor.u32 %v5361_v16, %v3913_v14  ;;  %vm3620_vm10 = vmor %vm3619_vm9, %vm3618_vm8 }
   0x8   :  { %v4042_v20 = vor.u32 %v5393_v18, %v4041_v17  ;;  %v4169_v21 = vld [vmem:[%s8424_s2 + $0x3c0] sm:$0xf]  ;;  %v5425_v22 = vld [vmem:[%s8424_s2 + $0x3cc] sm:$0xf0]  ;;  %1284 = vmatpush.bf16.msra.mxu0 %v3786_v15 }
   0x9   :  { %v3769_v23 = vld [vmem:[%s8424_s2 + $0xa0] sm:$0xf]  ;;  %v4170_v24 = vor.u32 %v5425_v22, %v4169_v21  ;;  %v5325_v25 = vld [vmem:[%s8424_s2 + $0xac] sm:$0xf0]  ;;  %1297 = vmatpush.bf16.msra.mxu1 %v3914_v19 }
   0xa   :  { %v3897_v26 = vld [vmem:[%s8424_s2 + $0x1a0] sm:$0xf]  ;;  %v5357_v27 = vld [vmem:[%s8424_s2 + $0x1ac] sm:$0xf0]  ;;  %v3770_v28 = vor.u32 %v5325_v25, %v3769_v23  ;;  %1310 = vmatpush.bf16.msra.mxu2 %v4042_v20 }
   0xb   :  { %v4025_v29 = vld [vmem:[%s8424_s2 + $0x2a0] sm:$0xf]  ;;  %v5389_v30 = vld [vmem:[%s8424_s2 + $0x2ac] sm:$0xf0]  ;;  %v3898_v32 = vor.u32 %v5357_v27, %v3897_v26  ;;  %1323 = vmatpush.bf16.msra.mxu3 %v4170_v24 }
   0xc   :  { %v4153_v31 = vld [vmem:[%s8424_s2 + $0x3a0] sm:$0xf]  ;;  %v5421_v33 = vld [vmem:[%s8424_s2 + $0x3ac] sm:$0xf0]  ;;  %v4026_v36 = vor.u32 %v5389_v30, %v4025_v29  ;;  %1285 = vmatpush.bf16.msra.mxu0 %v3770_v28 }
   0xd   :  { %v3753_v34 = vld [vmem:[%s8424_s2 + $0x80] sm:$0xf]  ;;  %v5321_v35 = vld [vmem:[%s8424_s2 + $0x8c] sm:$0xf0]  ;;  %v4154_v37 = vor.u32 %v5421_v33, %v4153_v31  ;;  %1298 = vmatpush.bf16.msra.mxu1 %v3898_v32 }
   0xe   :  { %v3881_v38 = vld [vmem:[%s8424_s2 + $0x180] sm:$0xf]  ;;  %v5353_v39 = vld [vmem:[%s8424_s2 + $0x18c] sm:$0xf0]  ;;  %v3754_v44 = vor.u32 %v5321_v35, %v3753_v34  ;;  %1311 = vmatpush.bf16.msra.mxu2 %v4026_v36 }
   0xf   :  { %v4009_v40 = vld [vmem:[%s8424_s2 + $0x280] sm:$0xf]  ;;  %v5385_v41 = vld [vmem:[%s8424_s2 + $0x28c] sm:$0xf0]  ;;  %v3882_v45 = vor.u32 %v5353_v39, %v3881_v38  ;;  %1324 = vmatpush.bf16.msra.mxu3 %v4154_v37  ;;  %v5331_v37 = vld [vmem:[%s8424_s2 + $0xe4] sm:$0xf] }
  0x10   :  { %v4137_v42 = vld [vmem:[%s8424_s2 + $0x380] sm:$0xf]  ;;  %v5417_v43 = vld [vmem:[%s8424_s2 + $0x38c] sm:$0xf0]  ;;  %v4010_v48 = vor.u32 %v5385_v41, %v4009_v40  ;;  %1286 = vmatpush.bf16.msra.mxu0 %v3754_v44  ;;  %v3803_v38 = vld [vmem:[%s8424_s2 + $0xf0] sm:$0xf0] }
  0x11   :  { %v3737_v46 = vld [vmem:[%s8424_s2 + $0x60] sm:$0xf]  ;;  %v5317_v47 = vld [vmem:[%s8424_s2 + $0x6c] sm:$0xf0]  ;;  %v4138_v49 = vor.u32 %v5417_v43, %v4137_v42  ;;  %1299 = vmatpush.bf16.msra.mxu1 %v3882_v45 }
  0x12   :  { %v3865_v50 = vld [vmem:[%s8424_s2 + $0x160] sm:$0xf]  ;;  %v5349_v51 = vld [vmem:[%s8424_s2 + $0x16c] sm:$0xf0]  ;;  %v3738_v56 = vor.u32 %v5317_v47, %v3737_v46  ;;  %1312 = vmatpush.bf16.msra.mxu2 %v4010_v48  ;;  %v3806_v48 = vor.u32 %v5331_v37, %v3803_v38  ;;  %v42_v38 = vld [vmem:[%s8422_s0 + $0x8] sm:$0x3f] }
  0x13   :  { %v3993_v52 = vld [vmem:[%s8424_s2 + $0x260] sm:$0xf]  ;;  %v5381_v53 = vld [vmem:[%s8424_s2 + $0x26c] sm:$0xf0]  ;;  %v3866_v57 = vor.u32 %v5349_v51, %v3865_v50  ;;  %1325 = vmatpush.bf16.msra.mxu3 %v4138_v49  ;;  %v5363_v49 = vld [vmem:[%s8424_s2 + $0x1e4] sm:$0xf] }
  0x14   :  { %v4121_v54 = vld [vmem:[%s8424_s2 + $0x360] sm:$0xf]  ;;  %v5413_v55 = vld [vmem:[%s8424_s2 + $0x36c] sm:$0xf0]  ;;  %v3994_v60 = vor.u32 %v5381_v53, %v3993_v52  ;;  %1287 = vmatpush.bf16.msra.mxu0 %v3738_v56  ;;  %v3931_v51 = vld [vmem:[%s8424_s2 + $0x1f0] sm:$0xf0] }
  0x15   :  { %v3721_v58 = vld [vmem:[%s8424_s2 + $0x40] sm:$0xf]  ;;  %v5313_v59 = vld [vmem:[%s8424_s2 + $0x4c] sm:$0xf0]  ;;  %v4122_v61 = vor.u32 %v5413_v55, %v4121_v54  ;;  %1300 = vmatpush.bf16.msra.mxu1 %v3866_v57  ;;  %v5327_v55 = vld [vmem:[%s8424_s2 + $0xc4] sm:$0xf] }
  0x16   :  { %v3849_v62 = vld [vmem:[%s8424_s2 + $0x140] sm:$0xf]  ;;  %v5345_v63 = vld [vmem:[%s8424_s2 + $0x14c] sm:$0xf0]  ;;  %v3722_v4 = vor.u32 %v5313_v59, %v3721_v58  ;;  %1313 = vmatpush.bf16.msra.mxu2 %v3994_v60  ;;  %v3787_v56 = vld [vmem:[%s8424_s2 + $0xd0] sm:$0xf0] }
  0x17   :  { %v3977_v0 = vld [vmem:[%s8424_s2 + $0x240] sm:$0xf]  ;;  %v5377_v1 = vld [vmem:[%s8424_s2 + $0x24c] sm:$0xf0]  ;;  %v3850_v6 = vor.u32 %v5345_v63, %v3849_v62  ;;  %1326 = vmatpush.bf16.msra.mxu3 %v4122_v61  ;;  %v5359_v58 = vld [vmem:[%s8424_s2 + $0x1c4] sm:$0xf] }
  0x18   :  { %v4105_v2 = vld [vmem:[%s8424_s2 + $0x340] sm:$0xf]  ;;  %v5409_v3 = vld [vmem:[%s8424_s2 + $0x34c] sm:$0xf0]  ;;  %v3978_v10 = vor.u32 %v5377_v1, %v3977_v0  ;;  %1288 = vmatpush.bf16.msra.mxu0 %v3722_v4  ;;  %v3915_v59 = vld [vmem:[%s8424_s2 + $0x1d0] sm:$0xf0]  ;;  %v3934_v0 = vor.u32 %v5363_v49, %v3931_v51  ;;  %v3790_v4 = vor.u32 %v5327_v55, %v3787_v56 }
  0x19   :  { %v3705_v5 = vld [vmem:[%s8424_s2 + $0x20] sm:$0xf]  ;;  %v5309_v7 = vld [vmem:[%s8424_s2 + $0x2c] sm:$0xf0]  ;;  %v4106_v11 = vor.u32 %v5409_v3, %v4105_v2  ;;  %1301 = vmatpush.bf16.msra.mxu1 %v3850_v6  ;;  %65 = vst [vmem:[#allocation1 + $0x20] ss:$4 sm:$0xff] %v42_v38 }
  0x1a   :  { %v3833_v8 = vld [vmem:[%s8424_s2 + $0x120] sm:$0xf]  ;;  %v5341_v9 = vld [vmem:[%s8424_s2 + $0x12c] sm:$0xf0]  ;;  %v3706_v18 = vor.u32 %v5309_v7, %v3705_v5  ;;  %1314 = vmatpush.bf16.msra.mxu2 %v3978_v10  ;;  %v5323_v10 = vld [vmem:[%s8424_s2 + $0xa4] sm:$0xf] }
  0x1b   :  { %v3961_v12 = vld [vmem:[%s8424_s2 + $0x220] sm:$0xf]  ;;  %v5373_v13 = vld [vmem:[%s8424_s2 + $0x22c] sm:$0xf0]  ;;  %v3834_v22 = vor.u32 %v5341_v9, %v3833_v8  ;;  %1327 = vmatpush.bf16.msra.mxu3 %v4106_v11  ;;  %v3771_v11 = vld [vmem:[%s8424_s2 + $0xb0] sm:$0xf0] }
  0x1c   :  { %v4089_v14 = vld [vmem:[%s8424_s2 + $0x320] sm:$0xf]  ;;  %v5405_v15 = vld [vmem:[%s8424_s2 + $0x32c] sm:$0xf0]  ;;  %v3962_v30 = vor.u32 %v5373_v13, %v3961_v12  ;;  %1289 = vmatpush.bf16.msra.mxu0 %v3706_v18  ;;  %v3774_v18 = vor.u32 %v5323_v10, %v3771_v11  ;;  %v5311_v51 = vld [vmem:[%s8424_s2 + $0x44] sm:$0xf] }
  0x1d   :  { %v3689_v16 = vld [vmem:[%s8424_s2] sm:$0xf]  ;;  %v5305_v17 = vld [vmem:[%s8424_s2 + $0xc] sm:$0xf0]  ;;  %v4090_v31 = vor.u32 %v5405_v15, %v4089_v14  ;;  %1302 = vmatpush.bf16.msra.mxu1 %v3834_v22  ;;  %v3918_v15 = vor.u32 %v5359_v58, %v3915_v59  ;;  %v3851_v59 = vld [vmem:[%s8424_s2 + $0x150] sm:$0xf0] }
  0x1e   :  { %v3817_v19 = vld [vmem:[%s8424_s2 + $0x100] sm:$0xf]  ;;  %v5337_v20 = vld [vmem:[%s8424_s2 + $0x10c] sm:$0xf0]  ;;  %v3690_v36 = vor.u32 %v5305_v17, %v3689_v16  ;;  %1315 = vmatpush.bf16.msra.mxu2 %v3962_v30  ;;  %v5355_v17 = vld [vmem:[%s8424_s2 + $0x1a4] sm:$0xf] }
  0x1f   :  { %v41_v21 = vld [vmem:[%s8422_s0] sm:$0xff]  ;;  %v5369_v24 = vld [vmem:[%s8424_s2 + $0x20c] sm:$0xf0]  ;;  %v3818_v39 = vor.u32 %v5337_v20, %v3817_v19  ;;  %1328 = vmatpush.bf16.msra.mxu3 %v4090_v31  ;;  %v3899_v19 = vld [vmem:[%s8424_s2 + $0x1b0] sm:$0xf0] }
  0x20   :  { %v3945_v23 = vld [vmem:[%s8424_s2 + $0x200] sm:$0xf]  ;;  %v5401_v26 = vld [vmem:[%s8424_s2 + $0x30c] sm:$0xf0]  ;;  %57 = vst [vmem:[#allocation1] ss:$4 sm:$0xff] %v41_v21  ;;  %1290 = vmatpush.bf16.msra.mxu0 %v3690_v36 }
  0x21   :  { %v4073_v25 = vld [vmem:[%s8424_s2 + $0x300] sm:$0xf]  ;;  %v43_v27 = vld [vmem:[%s8422_s0 + $0xe] sm:$0xff]  ;;  %v3946_v43 = vor.u32 %v5369_v24, %v3945_v23  ;;  %1303 = vmatpush.bf16.msra.mxu1 %v3818_v39  ;;  %v5319_v23 = vld [vmem:[%s8424_s2 + $0x84] sm:$0xf] }
  0x22   :  { %v45_v28 = vld [vmem:[%s8422_s0 + $0x1c] sm:$0xff]  ;;  %v47_v29 = vld [vmem:[%s8422_s0 + $0x2a] sm:$0xff]  ;;  %59 = vst [vmem:[#allocation1 + $0x1] ss:$4 sm:$0xff] %v43_v27  ;;  %v4074_v44 = vor.u32 %v5401_v26, %v4073_v25  ;;  %v3755_v24 = vld [vmem:[%s8424_s2 + $0x90] sm:$0xf0]  ;;  %v3902_v27 = vor.u32 %v5355_v17, %v3899_v19 }
  0x23   :  { %v4313_v32 = vld [vmem:[%s8424_s2 + $0x4e0] sm:$0xf]  ;;  %v5461_v33 = vld [vmem:[%s8424_s2 + $0x4ec] sm:$0xf0]  ;;  %61 = vst [vmem:[#allocation1 + $0x2] ss:$4 sm:$0xff] %v45_v28  ;;  %1316 = vmatpush.bf16.msra.mxu2 %v3946_v43  ;;  %v3758_v31 = vor.u32 %v5319_v23, %v3755_v24 }
  0x24   :  { %v4441_v34 = vld [vmem:[%s8424_s2 + $0x5e0] sm:$0xf]  ;;  %v5493_v35 = vld [vmem:[%s8424_s2 + $0x5ec] sm:$0xf0]  ;;  %63 = vst [vmem:[#allocation1 + $0x3] ss:$4 sm:$0xff] %v47_v29  ;;  %v4314_v40 = vor.u32 %v5461_v33, %v4313_v32  ;;  %1329 = vmatpush.bf16.msra.mxu3 %v4074_v44 }
  0x25   :  { %v4457_v41 = vld [vmem:[%s8424_s2 + $0x600] sm:$0xf]  ;;  %v5497_v42 = vld [vmem:[%s8424_s2 + $0x60c] sm:$0xf0]  ;;  %v4442_v47 = vor.u32 %v5493_v35, %v4441_v34  ;;  %v5351_v29 = vld [vmem:[%s8424_s2 + $0x184] sm:$0xf] }
  0x26   :  { %v4297_v45 = vld [vmem:[%s8424_s2 + $0x4c0] sm:$0xf]  ;;  %v5457_v46 = vld [vmem:[%s8424_s2 + $0x4cc] sm:$0xf0]  ;;  %v4458_v50 = vor.u32 %v5497_v42, %v4457_v41  ;;  %1335 = vmatpush.bf16.msrb.mxu0 %v4314_v40  ;;  %v3883_v30 = vld [vmem:[%s8424_s2 + $0x190] sm:$0xf0] }
  0x27   :  { %v4425_v52 = vld [vmem:[%s8424_s2 + $0x5c0] sm:$0xf]  ;;  %v5489_v53 = vld [vmem:[%s8424_s2 + $0x5cc] sm:$0xf0]  ;;  %v4298_v54 = vor.u32 %v5457_v46, %v4297_v45  ;;  %1348 = vmatpush.bf16.msrb.mxu1 %v4442_v47  ;;  %v5315_v34 = vld [vmem:[%s8424_s2 + $0x64] sm:$0xf]  ;;  %v3886_v43 = vor.u32 %v5351_v29, %v3883_v30 }
  0x28   :  { %v4281_v57 = vld [vmem:[%s8424_s2 + $0x4a0] sm:$0xf]  ;;  %v5453_v60 = vld [vmem:[%s8424_s2 + $0x4ac] sm:$0xf0]  ;;  %1374 = vmatpush.bf16.msrb.mxu3 %v3806_v48  ;;  %v4426_v1 = vor.u32 %v5489_v53, %v4425_v52  ;;  %1368 = vmatpush.bf16.msrb.mxu2 %v4458_v50  ;;  %v3739_v36 = vld [vmem:[%s8424_s2 + $0x70] sm:$0xf0] }
  0x29   :  { %v4409_v61 = vld [vmem:[%s8424_s2 + $0x5a0] sm:$0xf]  ;;  %v5485_v62 = vld [vmem:[%s8424_s2 + $0x5ac] sm:$0xf0]  ;;  %v4282_v9 = vor.u32 %v5453_v60, %v4281_v57  ;;  %v5347_v39 = vld [vmem:[%s8424_s2 + $0x164] sm:$0xf]  ;;  %v3742_v47 = vor.u32 %v5315_v34, %v3739_v36 }
  0x2a   :  { %1336 = vmatpush.bf16.msrb.mxu0 %v4298_v54  ;;  %v4265_v13 = vld [vmem:[%s8424_s2 + $0x480] sm:$0xf]  ;;  %v5449_v14 = vld [vmem:[%s8424_s2 + $0x48c] sm:$0xf0]  ;;  %v4410_v16 = vor.u32 %v5485_v62, %v4409_v61  ;;  %v44_v41 = vld [vmem:[%s8422_s0 + $0x16] sm:$0x3f] }
  0x2b   :  { %v74_v63 = vld.sshfl [vmem:[#allocation1 + $0x10] sm:$0xff pattern:$0x73625140]  ;;  %v72_v2 = vld.sshfl [vmem:[#allocation1] sm:$0xff pattern:$0x73625140]  ;;  %1349 = vmatpush.bf16.msrb.mxu1 %v4426_v1  ;;  %v4266_v22 = vor.u32 %v5449_v14, %v4265_v13 }
  0x2c   :  { %v6161_v3 = vpack.c.bf16 %v74_v63, %v74_v63  ;;  %v6163_v5 = vpack.c.bf16 %v72_v2, %v72_v2  ;;  %v75_v6 = vld.sshfl [vmem:[#allocation1 + $0x18] sm:$0xff pattern:$0x73625140]  ;;  %v73_v7 = vld.sshfl [vmem:[#allocation1 + $0x8] sm:$0xff pattern:$0x73625140]  ;;  %1375 = vmatpush.bf16.msrb.mxu3 %v3790_v4 }
  0x2d   :  { %v6165_v8 = vpack.c.bf16 %v75_v6, %v75_v6  ;;  %v6173_v12 = vpack.c.bf16 %v73_v7, %v73_v7  ;;  %v4393_v20 = vld [vmem:[%s8424_s2 + $0x580] sm:$0xf]  ;;  %v5481_v21 = vld [vmem:[%s8424_s2 + $0x58c] sm:$0xf0]  ;;  %v46_v42 = vld [vmem:[%s8422_s0 + $0x24] sm:$0x3f] }
  0x2e   :  { %1317 = vmatmul.bf16.vlgmr.msra.gmra.mxu2 %v6161_v3  ;;  %1291 = vmatmul.bf16.vlgmr.msra.gmra.mxu0 %v6163_v5  ;;  %v4249_v25 = vld [vmem:[%s8424_s2 + $0x460] sm:$0xf]  ;;  %v5445_v26 = vld [vmem:[%s8424_s2 + $0x46c] sm:$0xf0]  ;;  %v4394_v28 = vor.u32 %v5481_v21, %v4393_v20  ;;  %v3867_v45 = vld [vmem:[%s8424_s2 + $0x170] sm:$0xf0] }
  0x2f   :  { %1387 = vmatpush.bf16.msra.mxu2 %v3934_v0  ;;  %1304 = vmatmul.bf16.vlgmr.msra.gmra.mxu1 %v6173_v12  ;;  %v4377_v32 = vld [vmem:[%s8424_s2 + $0x560] sm:$0xf]  ;;  %v5477_v33 = vld [vmem:[%s8424_s2 + $0x56c] sm:$0xf0]  ;;  %v4250_v35 = vor.u32 %v5445_v26, %v4249_v25  ;;  %67 = vst [vmem:[#allocation1 + $0x21] ss:$4 sm:$0xff] %v44_v41  ;;  %v3870_v55 = vor.u32 %v5347_v39, %v3867_v45 }
  0x30   :  { %1330 = vmatmul.bf16.vlgmr.msra.gmra.mxu3 %v6165_v8  ;;  %1337 = vmatpush.bf16.msrb.mxu0 %v4282_v9  ;;  %v4233_v37 = vld [vmem:[%s8424_s2 + $0x440] sm:$0xf]  ;;  %v5441_v40 = vld [vmem:[%s8424_s2 + $0x44c] sm:$0xf0]  ;;  %v4378_v44 = vor.u32 %v5477_v33, %v4377_v32  ;;  %v3723_v52 = vld [vmem:[%s8424_s2 + $0x50] sm:$0xf0] }
  0x31   :  { %1350 = vmatpush.bf16.msrb.mxu1 %v4410_v16  ;;  %1376 = vmatpush.bf16.msrb.mxu3 %v3774_v18  ;;  %v48_v46 = vld [vmem:[%s8422_s0 + $0x32] sm:$0x3f]  ;;  %v4361_v48 = vld [vmem:[%s8424_s2 + $0x540] sm:$0xf]  ;;  %v4234_v50 = vor.u32 %v5441_v40, %v4233_v37  ;;  %69 = vst [vmem:[#allocation1 + $0x22] ss:$4 sm:$0xff] %v46_v42  ;;  %v3726_v58 = vor.u32 %v5311_v51, %v3723_v52 }
  0x32   :  { %v5473_v49 = vld [vmem:[%s8424_s2 + $0x54c] sm:$0xf0]  ;;  %v4217_v53 = vld [vmem:[%s8424_s2 + $0x420] sm:$0xf]  ;;  %71 = vst [vmem:[#allocation1 + $0x23] ss:$4 sm:$0xff] %v48_v46 }
  0x33   :  { %1388 = vmatpush.bf16.msra.mxu2 %v3918_v15  ;;  %v5437_v54 = vld [vmem:[%s8424_s2 + $0x42c] sm:$0xf0]  ;;  %v4362_v56 = vor.u32 %v5473_v49, %v4361_v48  ;;  %v5343_v57 = vld [vmem:[%s8424_s2 + $0x144] sm:$0xf]  ;;  %v4345_v60 = vld [vmem:[%s8424_s2 + $0x520] sm:$0xf] }
  0x34   :  { %1338 = vmatpush.bf16.msrb.mxu0 %v4266_v22  ;;  %v5469_v61 = vld [vmem:[%s8424_s2 + $0x52c] sm:$0xf0]  ;;  %v4218_v62 = vor.u32 %v5437_v54, %v4217_v53  ;;  %v5307_v63 = vld [vmem:[%s8424_s2 + $0x24] sm:$0xf]  ;;  %v3707_v0 = vld [vmem:[%s8424_s2 + $0x30] sm:$0xf0]  ;;  %v3854_v10 = vor.u32 %v5343_v57, %v3851_v59 }
  0x35   :  { %1351 = vmatpush.bf16.msrb.mxu1 %v4394_v28  ;;  %1377 = vmatpush.bf16.msrb.mxu3 %v3758_v31  ;;  %v4201_v1 = vld [vmem:[%s8424_s2 + $0x400] sm:$0xf]  ;;  %v5339_v2 = vld [vmem:[%s8424_s2 + $0x124] sm:$0xf]  ;;  %v3835_v4 = vld [vmem:[%s8424_s2 + $0x130] sm:$0xf0]  ;;  %v4346_v11 = vor.u32 %v5469_v61, %v4345_v60  ;;  %v3710_v17 = vor.u32 %v5307_v63, %v3707_v0 }
  0x36   :  { %v5433_v6 = vld [vmem:[%s8424_s2 + $0x40c] sm:$0xf0]  ;;  %v4329_v7 = vld [vmem:[%s8424_s2 + $0x500] sm:$0xf]  ;;  %v5303_v13 = vld [vmem:[%s8424_s2 + $0x4] sm:$0xf]  ;;  %v3838_v28 = vor.u32 %v5339_v2, %v3835_v4 }
  0x37   :  { %1389 = vmatpush.bf16.msra.mxu2 %v3902_v27  ;;  %v5465_v9 = vld [vmem:[%s8424_s2 + $0x50c] sm:$0xf0]  ;;  %v3691_v14 = vld [vmem:[%s8424_s2 + $0x10] sm:$0xf0]  ;;  %v5395_v15 = vld [vmem:[%s8424_s2 + $0x2e4] sm:$0xf]  ;;  %v4202_v22 = vor.u32 %v5433_v6, %v4201_v1 }
  0x38   :  { %1339 = vmatpush.bf16.msrb.mxu0 %v4250_v35  ;;  %v4059_v16 = vld [vmem:[%s8424_s2 + $0x2f0] sm:$0xf0]  ;;  %v5427_v18 = vld [vmem:[%s8424_s2 + $0x3e4] sm:$0xf]  ;;  %v4330_v29 = vor.u32 %v5465_v9, %v4329_v7  ;;  %v3694_v32 = vor.u32 %v5303_v13, %v3691_v14 }
  0x39   :  { %1352 = vmatpush.bf16.msrb.mxu1 %v4378_v44  ;;  %1378 = vmatpush.bf16.msrb.mxu3 %v3742_v47  ;;  %v4187_v19 = vld [vmem:[%s8424_s2 + $0x3f0] sm:$0xf0]  ;;  %v5459_v20 = vld [vmem:[%s8424_s2 + $0x4e4] sm:$0xf]  ;;  %v4062_v25 = vor.u32 %v5395_v15, %v4059_v16 }
  0x3a   :  { %v78_v21 = vld.sshfl [vmem:[#allocation1 + $0x30] sm:$0xff pattern:$0x73625140]  ;;  %v76_v26 = vld.sshfl [vmem:[#allocation1 + $0x20] sm:$0xff pattern:$0x73625140]  ;;  %v4190_v33 = vor.u32 %v5427_v18, %v4187_v19 }
  0x3b   :  { %1390 = vmatpush.bf16.msra.mxu2 %v3886_v43  ;;  %v4315_v23 = vld [vmem:[%s8424_s2 + $0x4f0] sm:$0xf0]  ;;  %v6329_v24 = vpack.c.bf16 %v78_v21, %v78_v21  ;;  %v5391_v27 = vld [vmem:[%s8424_s2 + $0x2c4] sm:$0xf]  ;;  %v6348_v38 = vpack.c.bf16 %v76_v26, %v76_v26 }
  0x3c   :  { %1340 = vmatpush.bf16.msrb.mxu0 %v4234_v50  ;;  %v77_v30 = vld.sshfl [vmem:[#allocation1 + $0x28] sm:$0xff pattern:$0x73625140]  ;;  %v4043_v31 = vld [vmem:[%s8424_s2 + $0x2d0] sm:$0xf0]  ;;  %v4318_v37 = vor.u32 %v5459_v20, %v4315_v23 }
  0x3d   :  { %1353 = vmatpush.bf16.msrb.mxu1 %v4362_v56  ;;  %1379 = vmatpush.bf16.msrb.mxu3 %v3726_v58  ;;  %v5335_v34 = vld [vmem:[%s8424_s2 + $0x104] sm:$0xf]  ;;  %v3819_v35 = vld [vmem:[%s8424_s2 + $0x110] sm:$0xf0]  ;;  %v6359_v42 = vpack.c.bf16 %v77_v30, %v77_v30  ;;  %v4046_v43 = vor.u32 %v5391_v27, %v4043_v31 }
  0x3e   :  { %4471 = vmatmul.msk.bf16.vlgmr.msrb.gmra.mxu2 %vm1279_vm0, %v6329_v24  ;;  %v5491_v36 = vld [vmem:[%s8424_s2 + $0x5e4] sm:$0xf]  ;;  %v4443_v39 = vld [vmem:[%s8424_s2 + $0x5f0] sm:$0xf0]  ;;  %v3822_v46 = vor.u32 %v5335_v34, %v3819_v35 }
  0x3f   :  { %1391 = vmatpush.bf16.msra.mxu2 %v3870_v55  ;;  %v5423_v40 = vld [vmem:[%s8424_s2 + $0x3c4] sm:$0xf]  ;;  %v4171_v41 = vld [vmem:[%s8424_s2 + $0x3d0] sm:$0xf0]  ;;  %v4446_v49 = vor.u32 %v5491_v36, %v4443_v39 }
  0x40   :  { %1341 = vmatpush.bf16.msrb.mxu0 %v4218_v62  ;;  %v5455_v44 = vld [vmem:[%s8424_s2 + $0x4c4] sm:$0xf]  ;;  %v4299_v45 = vld [vmem:[%s8424_s2 + $0x4d0] sm:$0xf0]  ;;  %v4174_v50 = vor.u32 %v5423_v40, %v4171_v41 }
  0x41   :  { %1354 = vmatpush.bf16.msrb.mxu1 %v4346_v11  ;;  %1380 = vmatpush.bf16.msrb.mxu3 %v3710_v17  ;;  %v5387_v47 = vld [vmem:[%s8424_s2 + $0x2a4] sm:$0xf]  ;;  %v4027_v48 = vld [vmem:[%s8424_s2 + $0x2b0] sm:$0xf0]  ;;  %v4302_v52 = vor.u32 %v5455_v44, %v4299_v45 }
  0x42   :  { %v5487_v51 = vld [vmem:[%s8424_s2 + $0x5c4] sm:$0xf]  ;;  %v4427_v53 = vld [vmem:[%s8424_s2 + $0x5d0] sm:$0xf0]  ;;  %v4030_v56 = vor.u32 %v5387_v47, %v4027_v48 }
  0x43   :  { %1392 = vmatpush.bf16.msra.mxu2 %v3854_v10  ;;  %v5419_v54 = vld [vmem:[%s8424_s2 + $0x3a4] sm:$0xf]  ;;  %v4155_v55 = vld [vmem:[%s8424_s2 + $0x3b0] sm:$0xf0]  ;;  %v4430_v61 = vor.u32 %v5487_v51, %v4427_v53 }
  0x44   :  { %1342 = vmatpush.bf16.msrb.mxu0 %v4202_v22  ;;  %v5451_v57 = vld [vmem:[%s8424_s2 + $0x4a4] sm:$0xf]  ;;  %v4283_v58 = vld [vmem:[%s8424_s2 + $0x4b0] sm:$0xf0]  ;;  %v4158_v62 = vor.u32 %v5419_v54, %v4155_v55 }
  0x45   :  { %1355 = vmatpush.bf16.msrb.mxu1 %v4330_v29  ;;  %1381 = vmatpush.bf16.msrb.mxu3 %v3694_v32  ;;  %v5383_v59 = vld [vmem:[%s8424_s2 + $0x284] sm:$0xf]  ;;  %v4011_v60 = vld [vmem:[%s8424_s2 + $0x290] sm:$0xf0]  ;;  %v4286_v0 = vor.u32 %v5451_v57, %v4283_v58 }
  0x46   :  { %v5483_v63 = vld [vmem:[%s8424_s2 + $0x5a4] sm:$0xf]  ;;  %v4411_v1 = vld [vmem:[%s8424_s2 + $0x5b0] sm:$0xf0]  ;;  %v4014_v6 = vor.u32 %v5383_v59, %v4011_v60 }
  0x47   :  { %1393 = vmatpush.bf16.msra.mxu2 %v3838_v28  ;;  %1343 = vmatmul.bf16.vlgmr.msrb.gmra.mxu0 %v6348_v38  ;;  %v5415_v2 = vld [vmem:[%s8424_s2 + $0x384] sm:$0xf]  ;;  %v4139_v4 = vld [vmem:[%s8424_s2 + $0x390] sm:$0xf0]  ;;  %v4414_v13 = vor.u32 %v5483_v63, %v4411_v1  ;;  %v5334_v1 = vld [vmem:[%s8424_s2 + $0xf4] sm:$0xf0] }
  0x48   :  { %1400 = vmatpush.bf16.msra.mxu0 %v4062_v25  ;;  %1356 = vmatmul.bf16.vlgmr.msrb.gmra.mxu1 %v6359_v42  ;;  %v5447_v7 = vld [vmem:[%s8424_s2 + $0x484] sm:$0xf]  ;;  %v4267_v9 = vld [vmem:[%s8424_s2 + $0x490] sm:$0xf0]  ;;  %v4142_v14 = vor.u32 %v5415_v2, %v4139_v4  ;;  %v3937_v2 = vld [vmem:[%s8424_s2 + $0x1e8] sm:$0xf] }
  0x49   :  { %1413 = vmatpush.bf16.msra.mxu1 %v4190_v33  ;;  %1426 = vmatpush.bf16.msra.mxu3 %v4318_v37  ;;  %v5379_v10 = vld [vmem:[%s8424_s2 + $0x264] sm:$0xf]  ;;  %v3995_v11 = vld [vmem:[%s8424_s2 + $0x270] sm:$0xf0]  ;;  %v4270_v16 = vor.u32 %v5447_v7, %v4267_v9  ;;  %v5366_v4 = vld [vmem:[%s8424_s2 + $0x1f4] sm:$0xf0] }
  0x4a   :  { %1382 = vmatmul.bf16.vlgmr.msrb.gmra.mxu3 %v6163_v5  ;;  %v5479_v15 = vld [vmem:[%s8424_s2 + $0x584] sm:$0xf]  ;;  %v4395_v17 = vld [vmem:[%s8424_s2 + $0x590] sm:$0xf0]  ;;  %v3998_v20 = vor.u32 %v5379_v10, %v3995_v11  ;;  %v4065_v10 = vld [vmem:[%s8424_s2 + $0x2e8] sm:$0xf] }
  0x4b   :  { %1394 = vmatpush.bf16.msra.mxu2 %v3822_v46  ;;  %v5411_v18 = vld [vmem:[%s8424_s2 + $0x364] sm:$0xf]  ;;  %v4123_v19 = vld [vmem:[%s8424_s2 + $0x370] sm:$0xf0]  ;;  %v4398_v26 = vor.u32 %v5479_v15, %v4395_v17  ;;  %v5398_v11 = vld [vmem:[%s8424_s2 + $0x2f4] sm:$0xf0] }
  0x4c   :  { %1401 = vmatpush.bf16.msra.mxu0 %v4046_v43  ;;  %v5443_v21 = vld [vmem:[%s8424_s2 + $0x464] sm:$0xf]  ;;  %v4251_v22 = vld [vmem:[%s8424_s2 + $0x470] sm:$0xf0]  ;;  %v4126_v27 = vor.u32 %v5411_v18, %v4123_v19  ;;  %v4193_v17 = vld [vmem:[%s8424_s2 + $0x3e8] sm:$0xf]  ;;  %v3938_v18 = vor.u32 %v5366_v4, %v3937_v2 }
  0x4d   :  { %1414 = vmatpush.bf16.msra.mxu1 %v4174_v50  ;;  %1427 = vmatpush.bf16.msra.mxu3 %v4302_v52  ;;  %v5375_v23 = vld [vmem:[%s8424_s2 + $0x244] sm:$0xf]  ;;  %v3979_v25 = vld [vmem:[%s8424_s2 + $0x250] sm:$0xf0]  ;;  %v4254_v29 = vor.u32 %v5443_v21, %v4251_v22  ;;  %v5430_v19 = vld [vmem:[%s8424_s2 + $0x3f4] sm:$0xf0]  ;;  %v4066_v22 = vor.u32 %v5398_v11, %v4065_v10 }
  0x4e   :  { %v5475_v28 = vld [vmem:[%s8424_s2 + $0x564] sm:$0xf]  ;;  %v4379_v30 = vld [vmem:[%s8424_s2 + $0x570] sm:$0xf0]  ;;  %1395 = vmatmul.bf16.vlgmr.msra.gmra.mxu2 %v6173_v12  ;;  %v3982_v33 = vor.u32 %v5375_v23, %v3979_v25  ;;  %v5330_v21 = vld [vmem:[%s8424_s2 + $0xd4] sm:$0xf0] }
  0x4f   :  { %1439 = vmatpush.bf16.msrb.mxu2 %v4446_v49  ;;  %v5407_v31 = vld [vmem:[%s8424_s2 + $0x344] sm:$0xf]  ;;  %v4107_v32 = vld [vmem:[%s8424_s2 + $0x350] sm:$0xf0]  ;;  %v4382_v39 = vor.u32 %v5475_v28, %v4379_v30  ;;  %v3921_v23 = vld [vmem:[%s8424_s2 + $0x1c8] sm:$0xf] }
  0x50   :  { %1402 = vmatpush.bf16.msra.mxu0 %v4030_v56  ;;  %v5439_v34 = vld [vmem:[%s8424_s2 + $0x444] sm:$0xf]  ;;  %v4235_v35 = vld [vmem:[%s8424_s2 + $0x450] sm:$0xf0]  ;;  %v4110_v40 = vor.u32 %v5407_v31, %v4107_v32  ;;  %v5362_v25 = vld [vmem:[%s8424_s2 + $0x1d4] sm:$0xf0] }
  0x51   :  { %1415 = vmatpush.bf16.msra.mxu1 %v4158_v62  ;;  %1428 = vmatpush.bf16.msra.mxu3 %v4286_v0  ;;  %v5371_v36 = vld [vmem:[%s8424_s2 + $0x224] sm:$0xf]  ;;  %v3963_v37 = vld [vmem:[%s8424_s2 + $0x230] sm:$0xf0]  ;;  %v4238_v43 = vor.u32 %v5439_v34, %v4235_v35  ;;  %v3809_v0 = vld [vmem:[%s8424_s2 + $0xe8] sm:$0xf]  ;;  %v3922_v32 = vor.u32 %v5362_v25, %v3921_v23 }
  0x52   :  { %v5471_v41 = vld [vmem:[%s8424_s2 + $0x544] sm:$0xf]  ;;  %v4363_v44 = vld [vmem:[%s8424_s2 + $0x550] sm:$0xf0]  ;;  %v3966_v47 = vor.u32 %v5371_v36, %v3963_v37  ;;  %v5394_v28 = vld [vmem:[%s8424_s2 + $0x2d4] sm:$0xf0] }
  0x53   :  { %1440 = vmatpush.bf16.msrb.mxu2 %v4430_v61  ;;  %v5403_v45 = vld [vmem:[%s8424_s2 + $0x324] sm:$0xf]  ;;  %v4091_v46 = vld [vmem:[%s8424_s2 + $0x330] sm:$0xf0]  ;;  %v4366_v53 = vor.u32 %v5471_v41, %v4363_v44  ;;  %v4177_v31 = vld [vmem:[%s8424_s2 + $0x3c8] sm:$0xf] }
  0x54   :  { %1403 = vmatpush.bf16.msra.mxu0 %v4014_v6  ;;  %v5435_v48 = vld [vmem:[%s8424_s2 + $0x424] sm:$0xf]  ;;  %v4219_v49 = vld [vmem:[%s8424_s2 + $0x430] sm:$0xf0]  ;;  %v4094_v54 = vor.u32 %v5403_v45, %v4091_v46  ;;  %v3777_v34 = vld [vmem:[%s8424_s2 + $0xa8] sm:$0xf] }
  0x55   :  { %1416 = vmatpush.bf16.msra.mxu1 %v4142_v14  ;;  %1429 = vmatpush.bf16.msra.mxu3 %v4270_v16  ;;  %v5467_v50 = vld [vmem:[%s8424_s2 + $0x524] sm:$0xf]  ;;  %v3947_v52 = vld [vmem:[%s8424_s2 + $0x210] sm:$0xf0]  ;;  %v4222_v58 = vor.u32 %v5435_v48, %v4219_v49  ;;  %v3810_v14 = vor.u32 %v5334_v1, %v3809_v0  ;;  %v5326_v35 = vld [vmem:[%s8424_s2 + $0xb4] sm:$0xf0] }
  0x56   :  { %v5367_v51 = vld [vmem:[%s8424_s2 + $0x204] sm:$0xf]  ;;  %v4347_v55 = vld [vmem:[%s8424_s2 + $0x530] sm:$0xf0]  ;;  %v3905_v37 = vld [vmem:[%s8424_s2 + $0x1a8] sm:$0xf]  ;;  %v3778_v44 = vor.u32 %v5326_v35, %v3777_v34 }
  0x57   :  { %1441 = vmatpush.bf16.msrb.mxu2 %v4414_v13  ;;  %v5495_v56 = vld [vmem:[%s8424_s2 + $0x604] sm:$0xf]  ;;  %v4459_v57 = vld [vmem:[%s8424_s2 + $0x610] sm:$0xf0]  ;;  %v3950_v62 = vor.u32 %v5367_v51, %v3947_v52  ;;  %v4350_v7 = vor.u32 %v5467_v50, %v4347_v55  ;;  %v5390_v41 = vld [vmem:[%s8424_s2 + $0x2b4] sm:$0xf0] }
  0x58   :  { %1404 = vmatpush.bf16.msra.mxu0 %v3998_v20  ;;  %v5399_v59 = vld [vmem:[%s8424_s2 + $0x304] sm:$0xf]  ;;  %v4075_v60 = vld [vmem:[%s8424_s2 + $0x310] sm:$0xf0]  ;;  %v4462_v6 = vor.u32 %v5495_v56, %v4459_v57  ;;  %v3793_v20 = vld [vmem:[%s8424_s2 + $0xc8] sm:$0xf] }
  0x59   :  { %1417 = vmatpush.bf16.msra.mxu1 %v4126_v27  ;;  %1430 = vmatpush.bf16.msra.mxu3 %v4254_v29  ;;  %v5431_v61 = vld [vmem:[%s8424_s2 + $0x404] sm:$0xf]  ;;  %v4203_v63 = vld [vmem:[%s8424_s2 + $0x410] sm:$0xf0]  ;;  %v4078_v9 = vor.u32 %v5399_v59, %v4075_v60  ;;  %v4049_v27 = vld [vmem:[%s8424_s2 + $0x2c8] sm:$0xf]  ;;  %v4194_v29 = vor.u32 %v5430_v19, %v4193_v17  ;;  %v3794_v30 = vor.u32 %v5330_v21, %v3793_v20 }
  0x5a   :  { %v4206_v13 = vor.u32 %v5431_v61, %v4203_v63  ;;  %v5463_v15 = vld [vmem:[%s8424_s2 + $0x504] sm:$0xf]  ;;  %v4331_v16 = vld [vmem:[%s8424_s2 + $0x510] sm:$0xf0]  ;;  %v4050_v36 = vor.u32 %v5394_v28, %v4049_v27  ;;  %v4161_v45 = vld [vmem:[%s8424_s2 + $0x3a8] sm:$0xf] }
  0x5b   :  { %1442 = vmatpush.bf16.msrb.mxu2 %v4398_v26  ;;  %v4334_v26 = vor.u32 %v5463_v15, %v4331_v16  ;;  %v3761_v48 = vld [vmem:[%s8424_s2 + $0x88] sm:$0xf]  ;;  %v5322_v49 = vld [vmem:[%s8424_s2 + $0x94] sm:$0xf0] }
  0x5c   :  { %1405 = vmatpush.bf16.msra.mxu0 %v3982_v33  ;;  %v5426_v33 = vld [vmem:[%s8424_s2 + $0x3d4] sm:$0xf0]  ;;  %v3889_v51 = vld [vmem:[%s8424_s2 + $0x188] sm:$0xf]  ;;  %v3762_v56 = vor.u32 %v5322_v49, %v3761_v48 }
  0x5d   :  { %1418 = vmatpush.bf16.msra.mxu1 %v4110_v40  ;;  %1431 = vmatpush.bf16.msra.mxu3 %v4238_v43  ;;  %v4033_v40 = vld [vmem:[%s8424_s2 + $0x2a8] sm:$0xf]  ;;  %v4178_v43 = vor.u32 %v5426_v33, %v4177_v31  ;;  %v5354_v52 = vld [vmem:[%s8424_s2 + $0x194] sm:$0xf0] }
  0x5e   :  { %v4034_v50 = vor.u32 %v5390_v41, %v4033_v40  ;;  %v4145_v57 = vld [vmem:[%s8424_s2 + $0x388] sm:$0xf]  ;;  %v5418_v59 = vld [vmem:[%s8424_s2 + $0x394] sm:$0xf0] }
  0x5f   :  { %1443 = vmatpush.bf16.msrb.mxu2 %v4382_v39  ;;  %v5358_v39 = vld [vmem:[%s8424_s2 + $0x1b4] sm:$0xf0]  ;;  %v3745_v60 = vld [vmem:[%s8424_s2 + $0x68] sm:$0xf]  ;;  %v4146_v4 = vor.u32 %v5418_v59, %v4145_v57 }
  0x60   :  { %1406 = vmatpush.bf16.msra.mxu0 %v3966_v47  ;;  %v3906_v46 = vor.u32 %v5358_v39, %v3905_v37  ;;  %v5422_v47 = vld [vmem:[%s8424_s2 + $0x3b4] sm:$0xf0]  ;;  %v3873_v63 = vld [vmem:[%s8424_s2 + $0x168] sm:$0xf] }
  0x61   :  { %1419 = vmatpush.bf16.msra.mxu1 %v4094_v54  ;;  %1432 = vmatpush.bf16.msra.mxu3 %v4222_v58  ;;  %v5386_v54 = vld [vmem:[%s8424_s2 + $0x294] sm:$0xf0]  ;;  %v4162_v55 = vor.u32 %v5422_v47, %v4161_v45  ;;  %v3890_v58 = vor.u32 %v5354_v52, %v3889_v51  ;;  %v4001_v1 = vld [vmem:[%s8424_s2 + $0x268] sm:$0xf] }
  0x62   :  { %v5318_v61 = vld [vmem:[%s8424_s2 + $0x74] sm:$0xf0]  ;;  %v3729_v11 = vld [vmem:[%s8424_s2 + $0x48] sm:$0xf] }
  0x63   :  { %1444 = vmatpush.bf16.msrb.mxu2 %v4366_v53  ;;  %v4017_v53 = vld [vmem:[%s8424_s2 + $0x288] sm:$0xf]  ;;  %v5350_v0 = vld [vmem:[%s8424_s2 + $0x174] sm:$0xf0] }
  0x64   :  { %1407 = vmatpush.bf16.msra.mxu0 %v3950_v62  ;;  %v4018_v62 = vor.u32 %v5386_v54, %v4017_v53  ;;  %v5382_v2 = vld [vmem:[%s8424_s2 + $0x274] sm:$0xf0]  ;;  %v3857_v15 = vld [vmem:[%s8424_s2 + $0x148] sm:$0xf] }
  0x65   :  { %1420 = vmatpush.bf16.msra.mxu1 %v4078_v9  ;;  %1433 = vmatpush.bf16.msra.mxu3 %v4206_v13  ;;  %v3874_v9 = vor.u32 %v5350_v0, %v3873_v63  ;;  %v5414_v10 = vld [vmem:[%s8424_s2 + $0x374] sm:$0xf0]  ;;  %v3985_v17 = vld [vmem:[%s8424_s2 + $0x248] sm:$0xf] }
  0x66   :  { %v5314_v13 = vld [vmem:[%s8424_s2 + $0x54] sm:$0xf0]  ;;  %v4113_v21 = vld [vmem:[%s8424_s2 + $0x348] sm:$0xf] }
  0x67   :  { %1445 = vmatpush.bf16.msrb.mxu2 %v4350_v7  ;;  %1408 = vmatmul.bf16.vlgmr.msra.gmra.mxu0 %v6161_v3  ;;  %v4129_v7 = vld [vmem:[%s8424_s2 + $0x368] sm:$0xf]  ;;  %v5346_v16 = vld [vmem:[%s8424_s2 + $0x154] sm:$0xf0]  ;;  %v3730_v20 = vor.u32 %v5314_v13, %v3729_v11  ;;  %v5328_v11 = vld [vmem:[%s8424_s2 + $0xcc] sm:$0xf] }
  0x68   :  { %1459 = vmatpush.bf16.msrb.mxu0 %v4462_v6  ;;  %1421 = vmatmul.bf16.vlgmr.msra.gmra.mxu1 %v6165_v8  ;;  %v3746_v6 = vor.u32 %v5318_v61, %v3745_v60  ;;  %v4130_v19 = vor.u32 %v5414_v10, %v4129_v7  ;;  %v5410_v23 = vld [vmem:[%s8424_s2 + $0x354] sm:$0xf0]  ;;  %v3713_v25 = vld [vmem:[%s8424_s2 + $0x28] sm:$0xf]  ;;  %v3811_v61 = vld [vmem:[%s8424_s2 + $0xf8] sm:$0xf0] }
  0x69   :  { %1465 = vmatpush.bf16.msrb.mxu1 %v3810_v14  ;;  %1478 = vmatpush.bf16.msrb.mxu3 %v3938_v18  ;;  %v4002_v14 = vor.u32 %v5382_v2, %v4001_v1  ;;  %v5378_v18 = vld [vmem:[%s8424_s2 + $0x254] sm:$0xf0]  ;;  %v3841_v28 = vld [vmem:[%s8424_s2 + $0x128] sm:$0xf]  ;;  %v4114_v33 = vor.u32 %v5410_v23, %v4113_v21  ;;  %v3939_v7 = vld [vmem:[%s8424_s2 + $0x1f8] sm:$0xf0] }
  0x6a   :  { %1434 = vmatmul.bf16.vlgmr.msra.gmra.mxu3 %v6348_v38  ;;  %v3986_v27 = vor.u32 %v5378_v18, %v3985_v17  ;;  %v5374_v31 = vld [vmem:[%s8424_s2 + $0x234] sm:$0xf0]  ;;  %v3825_v40 = vld [vmem:[%s8424_s2 + $0x108] sm:$0xf]  ;;  %v3923_v21 = vld [vmem:[%s8424_s2 + $0x1d8] sm:$0xf0] }
  0x6b   :  { %1446 = vmatpush.bf16.msrb.mxu2 %v4334_v26  ;;  %v5310_v26 = vld [vmem:[%s8424_s2 + $0x34] sm:$0xf0]  ;;  %v3953_v48 = vld [vmem:[%s8424_s2 + $0x208] sm:$0xf] }
  0x6c   :  { %1491 = vmatpush.bf16.msra.mxu0 %v4066_v22  ;;  %v3858_v22 = vor.u32 %v5346_v16, %v3857_v15  ;;  %v3714_v34 = vor.u32 %v5310_v26, %v3713_v25  ;;  %v5406_v35 = vld [vmem:[%s8424_s2 + $0x334] sm:$0xf0]  ;;  %v4465_v52 = vld [vmem:[%s8424_s2 + $0x608] sm:$0xf]  ;;  %v5324_v25 = vld [vmem:[%s8424_s2 + $0xac] sm:$0xf] }
  0x6d   :  { %1466 = vmatpush.bf16.msrb.mxu1 %v3794_v30  ;;  %1479 = vmatpush.bf16.msrb.mxu3 %v3922_v32  ;;  %v3969_v30 = vld [vmem:[%s8424_s2 + $0x228] sm:$0xf]  ;;  %v5306_v37 = vld [vmem:[%s8424_s2 + $0x14] sm:$0xf0] }
  0x6e   :  { %1447 = vmatmul.bf16.vlgmr.msrb.gmra.mxu2 %v6359_v42  ;;  %v4097_v32 = vld [vmem:[%s8424_s2 + $0x328] sm:$0xf]  ;;  %v5338_v41 = vld [vmem:[%s8424_s2 + $0x114] sm:$0xf0] }
  0x6f   :  { %1504 = vmatpush.bf16.msra.mxu2 %v4194_v29  ;;  %v5342_v29 = vld [vmem:[%s8424_s2 + $0x134] sm:$0xf0]  ;;  %v3826_v54 = vor.u32 %v5338_v41, %v3825_v40  ;;  %v4433_v0 = vld [vmem:[%s8424_s2 + $0x5c8] sm:$0xf]  ;;  %v3763_v40 = vld [vmem:[%s8424_s2 + $0x98] sm:$0xf0] }
  0x70   :  { %1492 = vmatpush.bf16.msra.mxu0 %v4050_v36  ;;  %v3697_v36 = vld [vmem:[%s8424_s2 + $0x8] sm:$0xf]  ;;  %v3842_v39 = vor.u32 %v5342_v29, %v3841_v28  ;;  %v5462_v45 = vld [vmem:[%s8424_s2 + $0x4f4] sm:$0xf0] }
  0x71   :  { %1467 = vmatpush.bf16.msrb.mxu1 %v3778_v44  ;;  %1480 = vmatpush.bf16.msrb.mxu3 %v3906_v46  ;;  %v3970_v44 = vor.u32 %v5374_v31, %v3969_v30  ;;  %v4449_v46 = vld [vmem:[%s8424_s2 + $0x5e8] sm:$0xf]  ;;  %v5494_v47 = vld [vmem:[%s8424_s2 + $0x5f4] sm:$0xf0]  ;;  %v3698_v51 = vor.u32 %v5306_v37, %v3697_v36  ;;  %v5320_v37 = vld [vmem:[%s8424_s2 + $0x8c] sm:$0xf] }
  0x72   :  { %v5370_v49 = vld [vmem:[%s8424_s2 + $0x214] sm:$0xf0]  ;;  %v4450_v59 = vor.u32 %v5494_v47, %v4449_v46  ;;  %v4289_v15 = vld [vmem:[%s8424_s2 + $0x4a8] sm:$0xf]  ;;  %v5352_v47 = vld [vmem:[%s8424_s2 + $0x18c] sm:$0xf] }
  0x73   :  { %1505 = vmatpush.bf16.msra.mxu2 %v4178_v43  ;;  %v4321_v43 = vld [vmem:[%s8424_s2 + $0x4e8] sm:$0xf]  ;;  %v5498_v53 = vld [vmem:[%s8424_s2 + $0x614] sm:$0xf0]  ;;  %v3954_v60 = vor.u32 %v5370_v49, %v3953_v48  ;;  %v3891_v48 = vld [vmem:[%s8424_s2 + $0x198] sm:$0xf0]  ;;  %v3766_v49 = vor.u32 %v5320_v37, %v3763_v40 }
  0x74   :  { %1493 = vmatpush.bf16.msra.mxu0 %v4034_v50  ;;  %v4098_v50 = vor.u32 %v5406_v35, %v4097_v32  ;;  %v5402_v57 = vld [vmem:[%s8424_s2 + $0x314] sm:$0xf0]  ;;  %v4466_v2 = vor.u32 %v5498_v53, %v4465_v52  ;;  %v4417_v18 = vld [vmem:[%s8424_s2 + $0x5a8] sm:$0xf]  ;;  %v3747_v53 = vld [vmem:[%s8424_s2 + $0x78] sm:$0xf0] }
  0x75   :  { %1468 = vmatpush.bf16.msrb.mxu1 %v3762_v56  ;;  %1481 = vmatpush.bf16.msrb.mxu3 %v3890_v58  ;;  %v4081_v56 = vld [vmem:[%s8424_s2 + $0x308] sm:$0xf]  ;;  %v5332_v58 = vld [vmem:[%s8424_s2 + $0xec] sm:$0xf]  ;;  %v5458_v63 = vld [vmem:[%s8424_s2 + $0x4d4] sm:$0xf0] }
  0x76   :  { %v5490_v1 = vld [vmem:[%s8424_s2 + $0x5d4] sm:$0xf0]  ;;  %v4273_v28 = vld [vmem:[%s8424_s2 + $0x488] sm:$0xf]  ;;  %v4323_v37 = vld [vmem:[%s8424_s2 + $0x4f8] sm:$0xf0] }
  0x77   :  { %1506 = vmatpush.bf16.msra.mxu2 %v4162_v55  ;;  %4472 = vmatmul.msk.bf16.vlgmr.msrb.gmra.mxu0 %vm1279_vm0, %v6329_v24  ;;  %v4322_v55 = vor.u32 %v5462_v45, %v4321_v43  ;;  %v4434_v13 = vor.u32 %v5490_v1, %v4433_v0  ;;  %v5454_v16 = vld [vmem:[%s8424_s2 + $0x4b4] sm:$0xf0]  ;;  %v4401_v31 = vld [vmem:[%s8424_s2 + $0x588] sm:$0xf]  ;;  %v3731_v1 = vld [vmem:[%s8424_s2 + $0x58] sm:$0xf0] }
  0x78   :  { %1494 = vmatpush.bf16.msra.mxu0 %v4018_v62  ;;  %v4305_v62 = vld [vmem:[%s8424_s2 + $0x4c8] sm:$0xf]  ;;  %v4290_v23 = vor.u32 %v5454_v16, %v4289_v15  ;;  %v5450_v29 = vld [vmem:[%s8424_s2 + $0x494] sm:$0xf0]  ;;  %v5308_v15 = vld [vmem:[%s8424_s2 + $0x2c] sm:$0xf] }
  0x79   :  { %1469 = vmatpush.bf16.msrb.mxu1 %v3746_v6  ;;  %1482 = vmatpush.bf16.msrb.mxu3 %v3874_v9  ;;  %v5364_v6 = vld [vmem:[%s8424_s2 + $0x1ec] sm:$0xf]  ;;  %v3814_v9 = vor.u32 %v5332_v58, %v3811_v61  ;;  %v4306_v10 = vor.u32 %v5458_v63, %v4305_v62  ;;  %v5482_v32 = vld [vmem:[%s8424_s2 + $0x594] sm:$0xf0]  ;;  %v4274_v36 = vor.u32 %v5450_v29, %v4273_v28  ;;  %v4257_v41 = vld [vmem:[%s8424_s2 + $0x468] sm:$0xf] }
  0x7a   :  { %v3942_v17 = vor.u32 %v5364_v6, %v3939_v7  ;;  %v5446_v43 = vld [vmem:[%s8424_s2 + $0x474] sm:$0xf0]  ;;  %v4385_v45 = vld [vmem:[%s8424_s2 + $0x568] sm:$0xf]  ;;  %v5312_v63 = vld [vmem:[%s8424_s2 + $0x4c] sm:$0xf] }
  0x7b   :  { %1507 = vmatpush.bf16.msra.mxu2 %v4146_v4  ;;  %v4082_v4 = vor.u32 %v5402_v57, %v4081_v56  ;;  %v5478_v46 = vld [vmem:[%s8424_s2 + $0x574] sm:$0xf0]  ;;  %v3894_v56 = vor.u32 %v5352_v47, %v3891_v48  ;;  %v4369_v57 = vld [vmem:[%s8424_s2 + $0x548] sm:$0xf]  ;;  %v3715_v16 = vld [vmem:[%s8424_s2 + $0x38] sm:$0xf0] }
  0x7c   :  { %1495 = vmatpush.bf16.msra.mxu0 %v4002_v14  ;;  %v3795_v14 = vld [vmem:[%s8424_s2 + $0xd8] sm:$0xf0]  ;;  %v4386_v52 = vor.u32 %v5478_v46, %v4385_v45  ;;  %v5474_v58 = vld [vmem:[%s8424_s2 + $0x554] sm:$0xf0]  ;;  %v4353_v7 = vld [vmem:[%s8424_s2 + $0x528] sm:$0xf] }
  0x7d   :  { %1470 = vmatpush.bf16.msrb.mxu1 %v3730_v20  ;;  %1483 = vmatpush.bf16.msrb.mxu3 %v3858_v22  ;;  %v5360_v20 = vld [vmem:[%s8424_s2 + $0x1cc] sm:$0xf]  ;;  %v3798_v22 = vor.u32 %v5328_v11, %v3795_v14  ;;  %v4370_v0 = vor.u32 %v5474_v58, %v4369_v57  ;;  %v3859_v11 = vld [vmem:[%s8424_s2 + $0x158] sm:$0xf0] }
  0x7e   :  { %v3926_v30 = vor.u32 %v5360_v20, %v3923_v21  ;;  %v4337_v20 = vld [vmem:[%s8424_s2 + $0x508] sm:$0xf]  ;;  %v5466_v21 = vld [vmem:[%s8424_s2 + $0x514] sm:$0xf0]  ;;  %v5340_v28 = vld [vmem:[%s8424_s2 + $0x12c] sm:$0xf] }
  0x7f   :  { %1508 = vmatpush.bf16.msra.mxu2 %v4130_v19  ;;  %v5486_v19 = vld [vmem:[%s8424_s2 + $0x5b4] sm:$0xf0]  ;;  %v3843_v29 = vld [vmem:[%s8424_s2 + $0x138] sm:$0xf0]  ;;  %v5336_v46 = vld [vmem:[%s8424_s2 + $0x10c] sm:$0xf] }
  0x80   :  { %1496 = vmatpush.bf16.msra.mxu0 %v3986_v27  ;;  %v4418_v26 = vor.u32 %v5486_v19, %v4417_v18  ;;  %v3779_v27 = vld [vmem:[%s8424_s2 + $0xb8] sm:$0xf0]  ;;  %v5434_v19 = vld [vmem:[%s8424_s2 + $0x414] sm:$0xf0]  ;;  %v3846_v40 = vor.u32 %v5340_v28, %v3843_v29  ;;  %v5388_v57 = vld [vmem:[%s8424_s2 + $0x2ac] sm:$0xf] }
  0x81   :  { %1471 = vmatpush.bf16.msrb.mxu1 %v3714_v34  ;;  %1484 = vmatpush.bf16.msrb.mxu3 %v3842_v39  ;;  %v3907_v34 = vld [vmem:[%s8424_s2 + $0x1b8] sm:$0xf0]  ;;  %v3782_v35 = vor.u32 %v5324_v25, %v3779_v27  ;;  %v4402_v39 = vor.u32 %v5482_v32, %v4401_v31  ;;  %v5304_v32 = vld [vmem:[%s8424_s2 + $0xc] sm:$0xf] }
  0x82   :  { %v4067_v25 = vld [vmem:[%s8424_s2 + $0x2f8] sm:$0xf0] }
  0x83   :  { %1509 = vmatpush.bf16.msra.mxu2 %v4114_v33  ;;  %v5356_v33 = vld [vmem:[%s8424_s2 + $0x1ac] sm:$0xf]  ;;  %v4195_v27 = vld [vmem:[%s8424_s2 + $0x3f8] sm:$0xf0] }
  0x84   :  { %1497 = vmatpush.bf16.msra.mxu0 %v3970_v44  ;;  %v3910_v44 = vor.u32 %v5356_v33, %v3907_v34  ;;  %v4338_v33 = vor.u32 %v5466_v21, %v4337_v20  ;;  %v4179_v45 = vld [vmem:[%s8424_s2 + $0x3d8] sm:$0xf0]  ;;  %v5380_v20 = vld [vmem:[%s8424_s2 + $0x26c] sm:$0xf] }
  0x85   :  { %1472 = vmatpush.bf16.msrb.mxu1 %v3698_v51  ;;  %1485 = vmatpush.bf16.msrb.mxu3 %v3826_v54  ;;  %v5316_v51 = vld [vmem:[%s8424_s2 + $0x6c] sm:$0xf]  ;;  %v4241_v54 = vld [vmem:[%s8424_s2 + $0x448] sm:$0xf]  ;;  %v3827_v47 = vld [vmem:[%s8424_s2 + $0x118] sm:$0xf0] }
  0x86   :  { %v3750_v61 = vor.u32 %v5316_v51, %v3747_v53  ;;  %v5456_v53 = vld [vmem:[%s8424_s2 + $0x4cc] sm:$0xf]  ;;  %v4035_v58 = vld [vmem:[%s8424_s2 + $0x2b8] sm:$0xf0] }
  0x87   :  { %1510 = vmatpush.bf16.msra.mxu2 %v4098_v50  ;;  %v4258_v50 = vor.u32 %v5446_v43, %v4257_v41  ;;  %v5392_v41 = vld [vmem:[%s8424_s2 + $0x2cc] sm:$0xf]  ;;  %v4051_v43 = vld [vmem:[%s8424_s2 + $0x2d8] sm:$0xf0] }
  0x88   :  { %1498 = vmatpush.bf16.msra.mxu0 %v3954_v60  ;;  %1473 = vmatmul.bf16.vlgmr.msrb.gmra.mxu1 %v6163_v5  ;;  %v3875_v60 = vld [vmem:[%s8424_s2 + $0x178] sm:$0xf0] }
  0x89   :  { %1517 = vmatpush.bf16.msra.mxu1 %v4322_v55  ;;  %1530 = vmatpush.bf16.msra.mxu3 %v4450_v59  ;;  %v5442_v55 = vld [vmem:[%s8424_s2 + $0x454] sm:$0xf0]  ;;  %v5348_v59 = vld [vmem:[%s8424_s2 + $0x16c] sm:$0xf]  ;;  %v4003_v21 = vld [vmem:[%s8424_s2 + $0x278] sm:$0xf0] }
  0x8a   :  { %1486 = vmatmul.bf16.vlgmr.msrb.gmra.mxu3 %v6173_v12  ;;  %v4242_v62 = vor.u32 %v5442_v55, %v4241_v54  ;;  %v3878_v6 = vor.u32 %v5348_v59, %v3875_v60  ;;  %v3830_v55 = vor.u32 %v5336_v46, %v3827_v47  ;;  %v5420_v60 = vld [vmem:[%s8424_s2 + $0x3ac] sm:$0xf]  ;;  %v4006_v28 = vor.u32 %v5380_v20, %v4003_v21  ;;  %v4243_v47 = vld [vmem:[%s8424_s2 + $0x458] sm:$0xf0] }
  0x8b   :  { %1511 = vmatpush.bf16.msra.mxu2 %v4082_v4  ;;  %1499 = vmatmul.bf16.vlgmr.msra.gmra.mxu0 %v6161_v3  ;;  %v5438_v4 = vld [vmem:[%s8424_s2 + $0x434] sm:$0xf0] }
  0x8c   :  { %1550 = vmatpush.bf16.msrb.mxu0 %v4466_v2  ;;  %v4225_v2 = vld [vmem:[%s8424_s2 + $0x428] sm:$0xf]  ;;  %v5506_v21 = vld [vmem:[%s8426_s4 + $0x38] sm:$0xff] }
  0x8d   :  { %1518 = vmatpush.bf16.msra.mxu1 %v4306_v10  ;;  %1531 = vmatpush.bf16.msra.mxu3 %v4434_v13  ;;  %v5344_v10 = vld [vmem:[%s8424_s2 + $0x14c] sm:$0xf]  ;;  %v3734_v13 = vor.u32 %v5312_v63, %v3731_v1  ;;  %v4226_v14 = vor.u32 %v5438_v4, %v4225_v2  ;;  %v4435_v63 = vld [vmem:[%s8424_s2 + $0x5d8] sm:$0xf0]  ;;  %v4038_v1 = vor.u32 %v5388_v57, %v4035_v58 }
  0x8e   :  { %1512 = vmatmul.bf16.vlgmr.msra.gmra.mxu2 %v6165_v8  ;;  %v5452_v2 = vld [vmem:[%s8424_s2 + $0x4ac] sm:$0xf] }
  0x8f   :  { %1556 = vmatpush.bf16.msrb.mxu2 %v3814_v9  ;;  %v5470_v9 = vld [vmem:[%s8424_s2 + $0x534] sm:$0xf0] }
  0x90   :  { %1569 = vmatpush.bf16.msra.mxu0 %v3942_v17  ;;  %v4209_v17 = vld [vmem:[%s8424_s2 + $0x408] sm:$0xf]  ;;  %v4354_v18 = vor.u32 %v5470_v9, %v4353_v7  ;;  %v5384_v7 = vld [vmem:[%s8424_s2 + $0x28c] sm:$0xf]  ;;  %v4019_v9 = vld [vmem:[%s8424_s2 + $0x298] sm:$0xf0] }
  0x91   :  { %1519 = vmatpush.bf16.msra.mxu1 %v4290_v23  ;;  %1532 = vmatpush.bf16.msra.mxu3 %v4418_v26  ;;  %v5396_v23 = vld [vmem:[%s8424_s2 + $0x2ec] sm:$0xf]  ;;  %v4210_v31 = vor.u32 %v5434_v19, %v4209_v17  ;;  %v4022_v17 = vor.u32 %v5384_v7, %v4019_v9 }
  0x92   :  { %v5428_v26 = vld [vmem:[%s8424_s2 + $0x3ec] sm:$0xf]  ;;  %v4070_v34 = vor.u32 %v5396_v23, %v4067_v25  ;;  %v4131_v25 = vld [vmem:[%s8424_s2 + $0x378] sm:$0xf0] }
  0x93   :  { %1557 = vmatpush.bf16.msrb.mxu2 %v3798_v22  ;;  %v3862_v22 = vor.u32 %v5344_v10, %v3859_v11  ;;  %v5416_v11 = vld [vmem:[%s8424_s2 + $0x38c] sm:$0xf] }
  0x94   :  { %1570 = vmatpush.bf16.msra.mxu0 %v3926_v30  ;;  %v3718_v30 = vor.u32 %v5308_v15, %v3715_v16  ;;  %v4419_v15 = vld [vmem:[%s8424_s2 + $0x5b8] sm:$0xf0]  ;;  %v5412_v23 = vld [vmem:[%s8424_s2 + $0x36c] sm:$0xf] }
  0x95   :  { %1520 = vmatpush.bf16.msra.mxu1 %v4274_v36  ;;  %1533 = vmatpush.bf16.msra.mxu3 %v4402_v39  ;;  %v5460_v36 = vld [vmem:[%s8424_s2 + $0x4ec] sm:$0xf]  ;;  %v4198_v39 = vor.u32 %v5428_v26, %v4195_v27  ;;  %v4403_v27 = vld [vmem:[%s8424_s2 + $0x598] sm:$0xf0] }
  0x96   :  { %v4326_v51 = vor.u32 %v5460_v36, %v4323_v37  ;;  %v5480_v26 = vld [vmem:[%s8424_s2 + $0x58c] sm:$0xf] }
  0x97   :  { %1558 = vmatpush.bf16.msrb.mxu2 %v3782_v35  ;;  %v3699_v35 = vld [vmem:[%s8424_s2 + $0x18] sm:$0xf0]  ;;  %v5408_v37 = vld [vmem:[%s8424_s2 + $0x34c] sm:$0xf] }
  0x98   :  { %1571 = vmatpush.bf16.msra.mxu0 %v3910_v44  ;;  %v5424_v44 = vld [vmem:[%s8424_s2 + $0x3cc] sm:$0xf]  ;;  %v3702_v48 = vor.u32 %v5304_v32, %v3699_v35  ;;  %v4259_v32 = vld [vmem:[%s8424_s2 + $0x478] sm:$0xf0]  ;;  %v4406_v35 = vor.u32 %v5480_v26, %v4403_v27 }
  0x99   :  { %1521 = vmatpush.bf16.msra.mxu1 %v4258_v50  ;;  %1534 = vmatpush.bf16.msra.mxu3 %v4386_v52  ;;  %v4451_v50 = vld [vmem:[%s8424_s2 + $0x5f8] sm:$0xf0]  ;;  %v4054_v52 = vor.u32 %v5392_v41, %v4051_v43  ;;  %v4182_v54 = vor.u32 %v5424_v44, %v4179_v45  ;;  %v5440_v45 = vld [vmem:[%s8424_s2 + $0x44c] sm:$0xf] }
  0x9a   :  { %v4387_v41 = vld [vmem:[%s8424_s2 + $0x578] sm:$0xf0]  ;;  %v4246_v57 = vor.u32 %v5440_v45, %v4243_v47  ;;  %v5496_v9 = vld [vmem:[%s8424_s2 + $0x60c] sm:$0xf] }
  0x9b   :  { %1559 = vmatpush.bf16.msrb.mxu2 %v3766_v49  ;;  %4473 = vmatmul.msk.bf16.vlgmr.msrb.gmra.mxu0 %vm1279_vm0, %v6329_v24  ;;  %v5492_v49 = vld [vmem:[%s8424_s2 + $0x5ec] sm:$0xf] }
  0x9c   :  { %1572 = vmatpush.bf16.msra.mxu0 %v3894_v56  ;;  %v4307_v56 = vld [vmem:[%s8424_s2 + $0x4d8] sm:$0xf0]  ;;  %v4454_v59 = vor.u32 %v5492_v49, %v4451_v50 }
  0x9d   :  { %1522 = vmatpush.bf16.msra.mxu1 %v4242_v62  ;;  %1535 = vmatpush.bf16.msra.mxu3 %v4370_v0  ;;  %v5488_v62 = vld [vmem:[%s8424_s2 + $0x5cc] sm:$0xf]  ;;  %v4310_v0 = vor.u32 %v5456_v53, %v4307_v56  ;;  %v3971_v49 = vld [vmem:[%s8424_s2 + $0x238] sm:$0xf0]  ;;  %v7098_v56 = vld [vmem:[%s8425_s3] sm:$0xf] }
  0x9e   :  { %v4438_v10 = vor.u32 %v5488_v62, %v4435_v63  ;;  %v4099_v53 = vld [vmem:[%s8424_s2 + $0x338] sm:$0xf0] }
  0x9f   :  { %1560 = vmatpush.bf16.msrb.mxu2 %v3750_v61  ;;  %v4163_v61 = vld [vmem:[%s8424_s2 + $0x3b8] sm:$0xf0] }
  0xa0   :  { %1573 = vmatpush.bf16.msra.mxu0 %v3878_v6  ;;  %v4166_v4 = vor.u32 %v5420_v60, %v4163_v61  ;;  %v4291_v6 = vld [vmem:[%s8424_s2 + $0x4b8] sm:$0xf0] }
  0xa1   :  { %1523 = vmatpush.bf16.msra.mxu1 %v4226_v14  ;;  %1536 = vmatpush.bf16.msra.mxu3 %v4354_v18  ;;  %v5484_v14 = vld [vmem:[%s8424_s2 + $0x5ac] sm:$0xf]  ;;  %v4294_v16 = vor.u32 %v5452_v2, %v4291_v6  ;;  %v4227_v60 = vld [vmem:[%s8424_s2 + $0x438] sm:$0xf0] }
  0xa2   :  { %v5448_v18 = vld [vmem:[%s8424_s2 + $0x48c] sm:$0xf]  ;;  %v4083_v6 = vld [vmem:[%s8424_s2 + $0x318] sm:$0xf0] }
  0xa3   :  { %1561 = vmatpush.bf16.msrb.mxu2 %v3734_v13  ;;  %v4147_v13 = vld [vmem:[%s8424_s2 + $0x398] sm:$0xf0]  ;;  %v5400_v2 = vld [vmem:[%s8424_s2 + $0x30c] sm:$0xf] }
  0xa4   :  { %1574 = vmatpush.bf16.msra.mxu0 %v3862_v22  ;;  %v4150_v19 = vor.u32 %v5416_v11, %v4147_v13  ;;  %v4422_v22 = vor.u32 %v5484_v14, %v4419_v15  ;;  %v5468_v11 = vld [vmem:[%s8424_s2 + $0x52c] sm:$0xf]  ;;  %v4355_v13 = vld [vmem:[%s8424_s2 + $0x538] sm:$0xf0] }
  0xa5   :  { %1524 = vmatpush.bf16.msra.mxu1 %v4210_v31  ;;  %1537 = vmatpush.bf16.msra.mxu3 %v4338_v33  ;;  %v4134_v31 = vor.u32 %v5412_v23, %v4131_v25  ;;  %v5376_v33 = vld [vmem:[%s8424_s2 + $0x24c] sm:$0xf]  ;;  %v4339_v25 = vld [vmem:[%s8424_s2 + $0x518] sm:$0xf0] }
  0xa6   :  { %v5464_v23 = vld [vmem:[%s8424_s2 + $0x50c] sm:$0xf] }
  0xa7   :  { %1562 = vmatpush.bf16.msrb.mxu2 %v3718_v30  ;;  %v5444_v30 = vld [vmem:[%s8424_s2 + $0x46c] sm:$0xf] }
  0xa8   :  { %1575 = vmatpush.bf16.msra.mxu0 %v3846_v40  ;;  %1525 = vmatmul.bf16.vlgmr.msra.gmra.mxu1 %v6348_v38  ;;  %v5476_v40 = vld [vmem:[%s8424_s2 + $0x56c] sm:$0xf]  ;;  %v4262_v43 = vor.u32 %v5444_v30, %v4259_v32  ;;  %v5505_v30 = vld [vmem:[%s8426_s4 + $0x30] sm:$0xff] }
  0xa9   :  { %1582 = vmatpush.bf16.msrb.mxu1 %v4070_v34  ;;  %1595 = vmatpush.bf16.msrb.mxu3 %v4198_v39  ;;  %v3987_v34 = vld [vmem:[%s8424_s2 + $0x258] sm:$0xf0]  ;;  %v5513_v32 = vld [vmem:[%s8426_s4 + $0x70] sm:$0xff] }
  0xaa   :  { %1538 = vmatmul.bf16.vlgmr.msra.gmra.mxu3 %v6359_v42  ;;  %v4115_v39 = vld [vmem:[%s8424_s2 + $0x358] sm:$0xf0]  ;;  %v3990_v44 = vor.u32 %v5376_v33, %v3987_v34  ;;  %v5504_v33 = vld [vmem:[%s8426_s4 + $0x28] sm:$0xff]  ;;  %v5503_v34 = vld [vmem:[%s8426_s4 + $0x20] sm:$0xff] }
  0xab   :  { %1563 = vmatpush.bf16.msrb.mxu2 %v3702_v48  ;;  %v7041_v29 = vpop.f32.mrf.mxu0  ;;  %v4118_v46 = vor.u32 %v5408_v37, %v4115_v39  ;;  %v5372_v48 = vld [vmem:[%s8424_s2 + $0x22c] sm:$0xf] }
  0xac   :  { %1576 = vmatpush.bf16.msra.mxu0 %v3830_v55  ;;  %v7055_v36 = vpop.f32.mrf.mxu1  ;;  %v4371_v55 = vld [vmem:[%s8424_s2 + $0x558] sm:$0xf0]  ;;  %v3974_v58 = vor.u32 %v5372_v48, %v3971_v49  ;;  %v5509_v49 = vld [vmem:[%s8426_s4 + $0x50] sm:$0xff] }
  0xad   :  { %1583 = vmatpush.bf16.msrb.mxu1 %v4054_v52  ;;  %1596 = vmatpush.bf16.msrb.mxu3 %v4182_v54  ;;  %v5404_v52 = vld [vmem:[%s8424_s2 + $0x32c] sm:$0xf] }
  0xae   :  { %1564 = vmatmul.bf16.vlgmr.msrb.gmra.mxu2 %v6163_v5  ;;  %v4275_v5 = vld [vmem:[%s8424_s2 + $0x498] sm:$0xf0]  ;;  %v5472_v54 = vld [vmem:[%s8424_s2 + $0x54c] sm:$0xf]  ;;  %v4102_v63 = vor.u32 %v5404_v52, %v4099_v53  ;;  %v5499_v52 = vld [vmem:[%s8426_s4] sm:$0xff] }
  0xaf   :  { %1608 = vmatpush.bf16.msra.mxu2 %v4326_v51  ;;  %1577 = vmatmul.bf16.vlgmr.msra.gmra.mxu0 %v6173_v12  ;;  %v4278_v12 = vor.u32 %v5448_v18, %v4275_v5  ;;  %v4390_v51 = vor.u32 %v5476_v40, %v4387_v41  ;;  %v5432_v18 = vld [vmem:[%s8424_s2 + $0x40c] sm:$0xf]  ;;  %v5510_v41 = vld [vmem:[%s8426_s4 + $0x58] sm:$0xff] }
  0xb0   :  { %1621 = vmatpush.bf16.msrb.mxu0 %v4454_v59  ;;  %v5436_v59 = vld [vmem:[%s8424_s2 + $0x42c] sm:$0xf] }
  0xb1   :  { %1584 = vmatpush.bf16.msrb.mxu1 %v4038_v1  ;;  %1597 = vmatpush.bf16.msrb.mxu3 %v4166_v4  ;;  %v7081_v50 = vpop.f32.mrf.mxu2  ;;  %v3955_v1 = vld [vmem:[%s8424_s2 + $0x218] sm:$0xf0]  ;;  %v4374_v4 = vor.u32 %v5472_v54, %v4371_v55  ;;  %v4230_v14 = vor.u32 %v5436_v59, %v4227_v60  ;;  %v292_v55 = vperm.slane %v7098_v56, 1 }
  0xb3   :  { %1609 = vmatpush.bf16.msra.mxu2 %v4310_v0  ;;  %v1294_v61 = vpop.f32.mrf.mxu0  ;;  %v1331_v62 = vpop.f32.mrf.mxu3  ;;  %v5368_v0 = vld [vmem:[%s8424_s2 + $0x20c] sm:$0xf] }
  0xb4   :  { %1622 = vmatpush.bf16.msrb.mxu0 %v4438_v10  ;;  %v1307_v7 = vpop.f32.mrf.mxu1  ;;  %v4467_v10 = vld [vmem:[%s8424_s2 + $0x618] sm:$0xf0]  ;;  %v3958_v15 = vor.u32 %v5368_v0, %v3955_v1 }
  0xb5   :  { %1585 = vmatpush.bf16.msrb.mxu1 %v4022_v17  ;;  %1598 = vmatpush.bf16.msrb.mxu3 %v4150_v19  ;;  %v4086_v17 = vor.u32 %v5400_v2, %v4083_v6  ;;  %v4211_v19 = vld [vmem:[%s8424_s2 + $0x418] sm:$0xf0]  ;;  %v4470_v5 = vor.u32 %v5496_v9, %v4467_v10 }
  0xb6   :  { %v4214_v26 = vor.u32 %v5432_v18, %v4211_v19  ;;  %v5522_v10 = vld [vmem:[%s8426_s4 + $0xb8] sm:$0xff] }
  0xb7   :  { %1610 = vmatpush.bf16.msra.mxu2 %v4294_v16  ;;  %v291_v16 = vperm.slane %v7098_v56, 0 }
  0xb8   :  { %1623 = vmatpush.bf16.msrb.mxu0 %v4422_v22  ;;  %v4358_v22 = vor.u32 %v5468_v11, %v4355_v13  ;;  %v5521_v13 = vld [vmem:[%s8426_s4 + $0xb0] sm:$0xff] }
  0xb9   :  { %1586 = vmatpush.bf16.msrb.mxu1 %v4006_v28  ;;  %1599 = vmatpush.bf16.msrb.mxu3 %v4134_v31  ;;  %v1320_v20 = vpop.f32.mrf.mxu2  ;;  %v1293_v27 = vadd.f32 %v7041_v29, %v291_v16  ;;  %v5514_v28 = vld [vmem:[%s8426_s4 + $0x78] sm:$0xff]  ;;  %v4342_v31 = vor.u32 %v5464_v23, %v4339_v25  ;;  %v5517_v25 = vld [vmem:[%s8426_s4 + $0x90] sm:$0xff] }
  0xba   :  { %v5519_v20 = vld [vmem:[%s8426_s4 + $0xa0] sm:$0xff]  ;;  %v5518_v23 = vld [vmem:[%s8426_s4 + $0x98] sm:$0xff] }
  0xbb   :  { %1611 = vmatpush.bf16.msra.mxu2 %v4278_v12  ;;  %v1333_v12 = vpop.f32.mrf.mxu3  ;;  %v1306_v29 = vadd.f32 %v7055_v36, %v1293_v27 }
  0xbc   :  { %1624 = vmatpush.bf16.msrb.mxu0 %v4406_v35  ;;  %v5516_v12 = vld [vmem:[%s8426_s4 + $0x88] sm:$0xff] }
  0xbd   :  { %1587 = vmatpush.bf16.msrb.mxu1 %v3990_v44  ;;  %1600 = vmatpush.bf16.msrb.mxu3 %v4118_v46 }
  0xbf   :  { %1612 = vmatpush.bf16.msra.mxu2 %v4262_v43  ;;  %v5501_v43 = vld [vmem:[%s8426_s4 + $0x10] sm:$0xff] }
  0xc0   :  { %1625 = vmatpush.bf16.msrb.mxu0 %v4390_v51 }
  0xc1   :  { %1588 = vmatpush.bf16.msrb.mxu1 %v3974_v58  ;;  %1601 = vmatpush.bf16.msrb.mxu3 %v4102_v63  ;;  %v1370_v37 = vpop.f32.mrf.mxu2  ;;  %v5507_v58 = vld [vmem:[%s8426_s4 + $0x40] sm:$0xff] }
  0xc3   :  { %1613 = vmatpush.bf16.msra.mxu2 %v4246_v57 }
  0xc4   :  { %1626 = vmatpush.bf16.msrb.mxu0 %v4374_v4  ;;  %v1344_v35 = vpop.f32.mrf.mxu0 }
  0xc5   :  { %1589 = vmatpush.bf16.msrb.mxu1 %v3958_v15  ;;  %1602 = vmatpush.bf16.msrb.mxu3 %v4086_v17  ;;  %v1357_v36 = vpop.f32.mrf.mxu1  ;;  %v5520_v15 = vld [vmem:[%s8426_s4 + $0xa8] sm:$0xff] }
  0xc7   :  { %1614 = vmatpush.bf16.msra.mxu2 %v4230_v14 }
  0xc8   :  { %1627 = vmatpush.bf16.msrb.mxu0 %v4358_v22  ;;  %1590 = vmatmul.bf16.vlgmr.msrb.gmra.mxu1 %v6161_v3  ;;  %v1319_v3 = vadd.f32 %v7081_v50, %v1306_v29  ;;  %v5500_v50 = vld [vmem:[%s8426_s4 + $0x8] sm:$0xff] }
  0xc9   :  { %1641 = vmatpush.bf16.msra.mxu1 %v4470_v5  ;;  %1862 = vmatpush.bf16.msra.mxu3 %v5506_v21  ;;  %v1372_v47 = vpop.f32.mrf.mxu2 }
  0xca   :  { %1603 = vmatmul.bf16.vlgmr.msrb.gmra.mxu3 %v6165_v8  ;;  %v5512_v8 = vld [vmem:[%s8426_s4 + $0x68] sm:$0xff]  ;;  %v1332_v39 = vadd.f32 %v1331_v62, %v1319_v3  ;;  %v293_v3 = vperm.slane %v7098_v56, 2 }
  0xcb   :  { %1615 = vmatpush.bf16.msra.mxu2 %v4214_v26 }
  0xcc   :  { %1628 = vmatpush.bf16.msrb.mxu0 %v4342_v31  ;;  %v1345_v40 = vadd.f32 %v1344_v35, %v1332_v39  ;;  %v1346_v45 = vpop.f32.mrf.mxu0  ;;  %v5515_v31 = vld [vmem:[%s8426_s4 + $0x80] sm:$0xff] }
  0xcd   :  { %1875 = vmatpush.bf16.msrb.mxu1 %v5514_v28  ;;  %1863 = vmatpush.bf16.msra.mxu3 %v5505_v30  ;;  %v1383_v46 = vpop.f32.mrf.mxu3  ;;  %v1359_v48 = vpop.f32.mrf.mxu1 }
  0xce   :  { %1616 = vmatmul.bf16.vlgmr.msra.gmra.mxu2 %v6348_v38  ;;  %v5511_v38 = vld [vmem:[%s8426_s4 + $0x60] sm:$0xff]  ;;  %v1358_v44 = vadd.f32 %v1357_v36, %v1345_v40  ;;  %v1384_v60 = vadd.f32 %v1383_v46, %v292_v55 }
  0xcf   :  { %1629 = vmatmul.bf16.vlgmr.msrb.gmra.mxu0 %v6359_v42  ;;  %v5502_v42 = vld [vmem:[%s8426_s4 + $0x18] sm:$0xff]  ;;  %1888 = vmatpush.bf16.msrb.mxu2 %v5522_v10 }
  0xd0   :  { %v1371_v51 = vadd.f32 %v1370_v37, %v1358_v44 }
  0xd1   :  { %1876 = vmatpush.bf16.msrb.mxu1 %v5513_v32  ;;  %1864 = vmatpush.bf16.msra.mxu3 %v5504_v33  ;;  %v1396_v57 = vpop.f32.mrf.mxu2 }
  0xd2   :  { %v1647_v53 = vmax.f32 %v1371_v51, 0.0  ;;  %v1397_v61 = vadd.f32 %v1396_v57, %v1384_v60 }
  0xd3   :  { %1889 = vmatpush.bf16.msrb.mxu2 %v5521_v13 }
  0xd4   :  { %v1651_v59 = vpack.c.bf16 %v1647_v53, %v1647_v53  ;;  %v294_v53 = vperm.slane %v7098_v56, 3 }
  0xd5   :  { %1877 = vmatpush.bf16.msrb.mxu1 %v5512_v8  ;;  %1865 = vmatpush.bf16.msra.mxu3 %v5503_v34  ;;  %v1385_v54 = vpop.f32.mrf.mxu3 }
  0xd7   :  { %1890 = vmatpush.bf16.msrb.mxu2 %v5520_v15  ;;  %v5711_v15 = vld [vmem:[%s8427_s5] ss:$0 sm:$0xff]  ;;  %s5818_s5 = smov 108  }
  0xd8   :  { %4474 = vmatmul.msk.bf16.vlgmr.msra.gmra.mxu1 %vm1279_vm0, %v6329_v24  ;;  %v5508_v24 = vld [vmem:[%s8426_s4 + $0x48] sm:$0xff] }
  0xd9   :  { %1878 = vmatpush.bf16.msrb.mxu1 %v5511_v38  ;;  %1866 = vmatpush.bf16.msra.mxu3 %v5502_v42  ;;  %v1398_v62 = vpop.f32.mrf.mxu2 }
  0xdb   :  { %1891 = vmatpush.bf16.msrb.mxu2 %v5519_v20 }
  0xdd   :  { %1879 = vmatpush.bf16.msrb.mxu1 %v5510_v41  ;;  %1867 = vmatpush.bf16.msra.mxu3 %v5501_v43 }
  0xdf   :  { %1892 = vmatpush.bf16.msrb.mxu2 %v5518_v23 }
  0xe1   :  { %1880 = vmatpush.bf16.msrb.mxu1 %v5509_v49  ;;  %1868 = vmatpush.bf16.msra.mxu3 %v5500_v50 }
  0xe3   :  { %1893 = vmatpush.bf16.msrb.mxu2 %v5517_v25 }
  0xe4   :  { %v1409_v63 = vpop.f32.mrf.mxu0 }
  0xe5   :  { %1881 = vmatpush.bf16.msrb.mxu1 %v5508_v24  ;;  %1869 = vmatpush.bf16.msra.mxu3 %v5499_v52  ;;  %v1410_v0 = vadd.f32 %v1409_v63, %v1397_v61  ;;  %v1422_v1 = vpop.f32.mrf.mxu1  ;;  %v5523_v24 = vld [vmem:[%s8426_s4 + $0xc0] sm:$0xff] }
  0xe6   :  { %1908 = vmatpush.bf16.msra.mxu0 %v5523_v24  ;;  %v4794_v24 = vld [vmem:[%s8430_s8 + $0x188] sm:$0xf] }
  0xe7   :  { %v1423_v2 = vadd.f32 %v1422_v1, %v1410_v0  ;;  %1894 = vmatpush.bf16.msrb.mxu2 %v5516_v12 }
  0xe8   :  { %1870 = vmatmul.bf16.vlgmr.msra.gmra.mxu3 %v1651_v59 }
  0xe9   :  { %1882 = vmatpush.bf16.msrb.mxu1 %v5507_v58 }
  0xeb   :  { %1895 = vmatpush.bf16.msrb.mxu2 %v5515_v31 }
  0xec   :  { %v1411_v4 = vpop.f32.mrf.mxu0 }
  0xed   :  { %v1435_v6 = vpop.f32.mrf.mxu3  ;;  %v1424_v9 = vpop.f32.mrf.mxu1 }
  0xee   :  { %v1436_v7 = vadd.f32 %v1435_v6, %v1423_v2 }
  0xf1   :  { %v1448_v11 = vpop.f32.mrf.mxu2 }
  0xf2   :  { %v1449_v14 = vadd.f32 %v1448_v11, %v1436_v7 }
  0xf4   :  { %v1461_v16 = vpop.f32.mrf.mxu0 }
  0xf5   :  { %v1437_v17 = vpop.f32.mrf.mxu3  ;;  %v1462_v18 = vadd.f32 %v1461_v16, %v1449_v14 }
  0xf7   :  { %v1648_v19 = vmax.f32 %v1462_v18, 0.0 }
  0xf9   :  { %v1450_v5 = vpop.f32.mrf.mxu2  ;;  %v1652_v21 = vpack.c.bf16 %v1648_v19, %v1648_v19 }
  0xfb   :  { %1883 = vmatmul.bf16.vlgmr.msrb.gmra.mxu1 %v1652_v21  ;;  %v1929_v21 = vld [vmem:[%s8428_s6 + $0x20] sm:$0x33] }
  0xfc   :  { %v1463_v22 = vpop.f32.mrf.mxu0  ;;  %v1955_v23 = vunpack.c.l.b16 %v1929_v21  ;;  %v1956_v25 = vunpack.c.h.b16 %v1929_v21  ;;  %v5270_v21 = vld [vmem:[%s8430_s8 + $0x540] sm:$0xf] }
  0xfd   :  { %v1930_v22 = vld [vmem:[%s8428_s6 + $0x28] sm:$0x33] }
  0xfe   :  { %v1963_v12 = vpack.c.b16 %v1955_v23, %v1955_v23  ;;  %v4682_v23 = vld [vmem:[%s8430_s8 + $0xa8] sm:$0xf] }
 0x105   :  { %v1474_v26 = vpop.f32.mrf.mxu1 }
 0x106   :  { %v1475_v35 = vadd.f32 %v1474_v26, %v293_v3  ;;  %v1957_v26 = vunpack.c.l.b16 %v1930_v22 }
 0x108   :  { %v1500_v27 = vpop.f32.mrf.mxu0 }
 0x10d   :  { %v1487_v28 = vpop.f32.mrf.mxu3  ;;  %v1476_v30 = vpop.f32.mrf.mxu1 }
 0x10e   :  { %v1488_v36 = vadd.f32 %v1487_v28, %v1475_v35  ;;  %v1964_v28 = vpack.c.b16 %v1956_v25, %v1956_v25  ;;  %v1965_v30 = vpack.c.b16 %v1957_v26, %v1957_v26  ;;  %v5552_v25 = vld [vmem:[%s8430_s8 + $0xc0] sm:$0xf0] }
 0x110   :  { %v1502_v32 = vpop.f32.mrf.mxu0  ;;  %v1501_v39 = vadd.f32 %v1500_v27, %v1488_v36  ;;  %v1958_v27 = vunpack.c.h.b16 %v1930_v22  ;;  %v5699_v22 = vld [vmem:[%s8430_s8 + $0x558] sm:$0xf0] }
 0x111   :  { %v1513_v29 = vpop.f32.mrf.mxu2  ;;  %v1980_v32 = vsel %vm1975_vm1, %v1964_v28, 0  ;;  %v5608_v28 = vld [vmem:[%s8430_s8 + $0x280] sm:$0xf0] }
 0x112   :  { %v1514_v42 = vadd.f32 %v1513_v29, %v1501_v39  ;;  %v1966_v31 = vpack.c.b16 %v1958_v27, %v1958_v27  ;;  %v1977_v29 = vsel %vm1975_vm1, %v1963_v12, 0  ;;  %2007 = vmatpush.bf16.msrb.mxu0 %v1980_v32  ;;  %v5271_v27 = vor.u32 %v5699_v22, %v5270_v21  ;;  %v4906_v12 = vld [vmem:[%s8430_s8 + $0x268] sm:$0xf]  ;;  %v5671_v32 = vld [vmem:[%s8430_s8 + $0x478] sm:$0xf0] }
 0x113   :  { %1994 = vmatpush.bf16.msrb.mxu3 %v1977_v29  ;;  %v5158_v29 = vld [vmem:[%s8430_s8 + $0x460] sm:$0xf]  ;;  %v4740_v21 = vld [vmem:[%s8430_s8 + $0x134] sm:$0xf0]  ;;  %v5619_v22 = vld [vmem:[%s8430_s8 + $0x2dc] sm:$0xf] }
 0x114   :  { %v1986_v3 = vsel %vm1975_vm1, %v1966_v31, 0  ;;  %v4683_v31 = vor.u32 %v5552_v25, %v4682_v23  ;;  %v4964_v23 = vld [vmem:[%s8430_s8 + $0x2f4] sm:$0xf0] }
 0x115   :  { %v1489_v33 = vpop.f32.mrf.mxu3  ;;  %2033 = vmatpush.bf16.msra.mxu2 %v1986_v3  ;;  %v5545_v3 = vld [vmem:[%s8430_s8 + $0x88] sm:$0xf0] }
 0x116   :  { %v1983_v33 = vsel %vm1975_vm1, %v1965_v30, 0 }
 0x117   :  { %2020 = vmatpush.bf16.msra.mxu1 %v1983_v33  ;;  %v4654_v33 = vld [vmem:[%s8430_s8 + $0x70] sm:$0xf] }
 0x118   :  { %v1552_v34 = vpop.f32.mrf.mxu0 }
 0x119   :  { %v1515_v8 = vpop.f32.mrf.mxu2 }
 0x120   :  { %v1554_v37 = vpop.f32.mrf.mxu0 }
 0x125   :  { %v1526_v38 = vpop.f32.mrf.mxu1 }
 0x126   :  { %v1527_v40 = vadd.f32 %v1526_v38, %v1514_v42  ;;  %v4578_v42 = vld [vmem:[%s8428_s6] sm:$0xf] }
 0x12c   :  { %v1578_v43 = vpop.f32.mrf.mxu0 }
 0x12d   :  { %v1539_v41 = vpop.f32.mrf.mxu3  ;;  %v1528_v45 = vpop.f32.mrf.mxu1 }
 0x12e   :  { %v1540_v44 = vadd.f32 %v1539_v41, %v1527_v40  ;;  %v5526_v40 = vld [vmem:[%s8428_s6 + $0xc] sm:$0xf0]  ;;  %v5524_v41 = vld [vmem:[%s8428_s6 + $0x4] sm:$0xf]  ;;  %v4586_v45 = vld [vmem:[%s8428_s6 + $0x8] sm:$0xf] }
 0x130   :  { %v1553_v46 = vadd.f32 %v1552_v34, %v1540_v44  ;;  %v4580_v44 = vld [vmem:[%s8428_s6 + $0x10] sm:$0xf0] }
 0x131   :  { %v1565_v47 = vpop.f32.mrf.mxu2 }
 0x132   :  { %v1649_v48 = vmax.f32 %v1553_v46, 0.0  ;;  %v1566_v54 = vadd.f32 %v1565_v47, %v294_v53  ;;  %v5527_v46 = vld [vmem:[%s8428_s6 + $0x14] sm:$0xf0]  ;;  %v4583_v47 = vor.u32 %v5524_v41, %v4580_v44  ;;  %v4766_v53 = vld [vmem:[%s8430_s8 + $0x150] sm:$0xf]  ;;  %v1917_v44 = vld [vmem:[%s8423_s1] sm:$0xff] }
 0x133   :  { %v5538_v41 = vld [vmem:[%s8430_s8 + $0x50] sm:$0xf0] }
 0x134   :  { %v1653_v49 = vpack.c.bf16 %v1649_v48, %v1649_v48  ;;  %v1580_v51 = vpop.f32.mrf.mxu0  ;;  %v1579_v57 = vadd.f32 %v1578_v43, %v1566_v54  ;;  %v4579_v43 = vor.u32 %v5526_v40, %v4578_v42  ;;  %v4587_v48 = vor.u32 %v5527_v46, %v4586_v45  ;;  %2008 = vmatpush.bf16.msrb.mxu0 %v4583_v47  ;;  %v5664_v42 = vld [vmem:[%s8430_s8 + $0x440] sm:$0xf0]  ;;  %v4626_v40 = vld [vmem:[%s8430_s8 + $0x38] sm:$0xf]  ;;  %v5594_v46 = vld [vmem:[%s8430_s8 + $0x210] sm:$0xf0] }
 0x135   :  { %v1541_v50 = vpop.f32.mrf.mxu3  ;;  %v4850_v45 = vld [vmem:[%s8430_s8 + $0x1f8] sm:$0xf] }
 0x136   :  { %1896 = vmatmul.bf16.vlgmr.msrb.gmra.mxu2 %v1653_v49  ;;  %v5525_v49 = vld [vmem:[%s8428_s6 + $0xc] sm:$0xf]  ;;  %v4588_v50 = vld [vmem:[%s8428_s6 + $0x18] sm:$0xf0]  ;;  %1995 = vmatpush.bf16.msrb.mxu3 %v4579_v43 }
 0x137   :  { %v4591_v51 = vor.u32 %v5525_v49, %v4588_v50  ;;  %2021 = vmatpush.bf16.msra.mxu1 %v4587_v48  ;;  %v4627_v49 = vor.u32 %v5538_v41, %v4626_v40  ;;  %v5046_v41 = vld [vmem:[%s8430_s8 + $0x380] sm:$0xf] }
 0x139   :  { %v1567_v52 = vpop.f32.mrf.mxu2  ;;  %2034 = vmatpush.bf16.msra.mxu2 %v4591_v51  ;;  %v4598_v51 = vld [vmem:[%s8430_s8] sm:$0xf] }
 0x13a   :  { %v5580_v52 = vld [vmem:[%s8430_s8 + $0x1a0] sm:$0xf0] }
 0x13b   :  { %v4795_v54 = vor.u32 %v5580_v52, %v4794_v24  ;;  %v5531_v24 = vld [vmem:[%s8430_s8 + $0x18] sm:$0xf0]  ;;  %v5577_v52 = vld [vmem:[%s8430_s8 + $0x18c] sm:$0xf] }
 0x13d   :  { %3167 = vmatpush.bf16.msra.mxu3 %v4795_v54  ;;  %3213 = vmatpush.bf16.msrb.mxu2 %v5271_v27  ;;  %v4796_v54 = vld [vmem:[%s8430_s8 + $0x1a4] sm:$0xf0]  ;;  %v5675_v27 = vld [vmem:[%s8430_s8 + $0x49c] sm:$0xf] }
 0x145   :  { %v1591_v55 = vpop.f32.mrf.mxu1 }
 0x146   :  { %v1592_v58 = vadd.f32 %v1591_v55, %v1579_v57  ;;  %v5573_v55 = vld [vmem:[%s8430_s8 + $0x168] sm:$0xf0]  ;;  %v5018_v57 = vld [vmem:[%s8430_s8 + $0x348] sm:$0xf] }
 0x14c   :  { %v1630_v59 = vpop.f32.mrf.mxu0 }
 0x14d   :  { %v1604_v60 = vpop.f32.mrf.mxu3  ;;  %v1593_v62 = vpop.f32.mrf.mxu1 }
 0x14e   :  { %v1605_v61 = vadd.f32 %v1604_v60, %v1592_v58  ;;  %v5636_v58 = vld [vmem:[%s8430_s8 + $0x360] sm:$0xf0]  ;;  %v4990_v60 = vld [vmem:[%s8430_s8 + $0x310] sm:$0xf]  ;;  %v5629_v62 = vld [vmem:[%s8430_s8 + $0x328] sm:$0xf0] }
 0x151   :  { %v1617_v63 = vpop.f32.mrf.mxu2 }
 0x152   :  { %v1618_v0 = vadd.f32 %v1617_v63, %v1605_v61  ;;  %v4767_v61 = vor.u32 %v5573_v55, %v4766_v53  ;;  %v4738_v63 = vld [vmem:[%s8430_s8 + $0x118] sm:$0xf]  ;;  %v4851_v53 = vor.u32 %v5594_v46, %v4850_v45  ;;  %v5633_v55 = vld [vmem:[%s8430_s8 + $0x34c] sm:$0xf]  ;;  %v5160_v46 = vld [vmem:[%s8430_s8 + $0x47c] sm:$0xf0] }
 0x154   :  { %v1632_v1 = vpop.f32.mrf.mxu0  ;;  %v1631_v4 = vadd.f32 %v1630_v59, %v1618_v0  ;;  %v5019_v59 = vor.u32 %v5636_v58, %v5018_v57  ;;  %v5566_v0 = vld [vmem:[%s8430_s8 + $0x130] sm:$0xf0]  ;;  %3168 = vmatpush.bf16.msra.mxu3 %v4767_v61  ;;  %v5020_v57 = vld [vmem:[%s8430_s8 + $0x364] sm:$0xf0]  ;;  %v5689_v61 = vld [vmem:[%s8430_s8 + $0x50c] sm:$0xf] }
 0x155   :  { %v1606_v2 = vpop.f32.mrf.mxu3  ;;  %v1643_v6 = vpop.f32.mrf.mxu1  ;;  %v4991_v1 = vor.u32 %v5629_v62, %v4990_v60  ;;  %v5587_v60 = vld [vmem:[%s8430_s8 + $0x1d8] sm:$0xf0]  ;;  %v5244_v62 = vld [vmem:[%s8430_s8 + $0x524] sm:$0xf0] }
 0x156   :  { %v1644_v7 = vadd.f32 %v1643_v6, %v1631_v4  ;;  %v4962_v2 = vld [vmem:[%s8430_s8 + $0x2d8] sm:$0xf]  ;;  %v5622_v4 = vld [vmem:[%s8430_s8 + $0x2f0] sm:$0xf0]  ;;  %v5242_v6 = vld [vmem:[%s8430_s8 + $0x508] sm:$0xf] }
 0x158   :  { %v1650_v10 = vmax.f32 %v1644_v7, 0.0  ;;  %v4739_v7 = vor.u32 %v5566_v0, %v4738_v63  ;;  %v5657_v63 = vld [vmem:[%s8430_s8 + $0x408] sm:$0xf0] }
 0x159   :  { %v1619_v9 = vpop.f32.mrf.mxu2 }
 0x15a   :  { %v1654_v11 = vpack.c.bf16 %v1650_v10, %v1650_v10  ;;  %v5692_v9 = vld [vmem:[%s8430_s8 + $0x520] sm:$0xf0]  ;;  %v4710_v10 = vld [vmem:[%s8430_s8 + $0xe0] sm:$0xf]  ;;  %3169 = vmatpush.bf16.msra.mxu3 %v4739_v7  ;;  %v4768_v7 = vld [vmem:[%s8430_s8 + $0x16c] sm:$0xf0] }
 0x15c   :  { %4575 = vmatmul.msk.bf16.vlgmr.msra.gmra.mxu0 %vm1279_vm0, %v1654_v11  ;;  %v5559_v11 = vld [vmem:[%s8430_s8 + $0xf8] sm:$0xf0] }
 0x15d   :  { %v1645_v56 = vpop.f32.mrf.mxu1  ;;  %3180 = vmatpush.bf16.msra.mxu0 %v5019_v59  ;;  %v4822_v59 = vld [vmem:[%s8430_s8 + $0x1c0] sm:$0xf] }
 0x15e   :  { %v4963_v56 = vor.u32 %v5622_v4, %v4962_v2  ;;  %v4799_v2 = vor.u32 %v5577_v52, %v4796_v54  ;;  %v5023_v4 = vor.u32 %v5633_v55, %v5020_v57  ;;  %v5272_v54 = vld [vmem:[%s8430_s8 + $0x55c] sm:$0xf0]  ;;  %v5661_v57 = vld [vmem:[%s8430_s8 + $0x42c] sm:$0xf] }
 0x161   :  { %3181 = vmatpush.bf16.msra.mxu0 %v4991_v1  ;;  %v4599_v1 = vor.u32 %v5531_v24, %v4598_v51  ;;  %v5598_v51 = vld [vmem:[%s8430_s8 + $0x234] sm:$0xf]  ;;  %v4880_v24 = vld [vmem:[%s8430_s8 + $0x24c] sm:$0xf0] }
 0x162   :  { %v4883_v52 = vor.u32 %v5598_v51, %v4880_v24  ;;  %v4746_v24 = vld [vmem:[%s8430_s8 + $0x120] sm:$0xf] }
 0x165   :  { %3182 = vmatpush.bf16.msra.mxu0 %v4963_v56  ;;  %v5247_v56 = vor.u32 %v5689_v61, %v5244_v62  ;;  %v4628_v61 = vld [vmem:[%s8430_s8 + $0x54] sm:$0xf0]  ;;  %v5591_v62 = vld [vmem:[%s8430_s8 + $0x1fc] sm:$0xf] }
 0x16b   :  { %v1871_v13 = vpop.f32.mrf.mxu3 }
 0x16c   :  { %v1872_v16 = vadd.f32 %v5711_v15, %v1871_v13  ;;  %v5243_v13 = vor.u32 %v5692_v9, %v5242_v6  ;;  %v4934_v15 = vld [vmem:[%s8430_s8 + $0x2a0] sm:$0xf]  ;;  %v5570_v6 = vld [vmem:[%s8430_s8 + $0x154] sm:$0xf]  ;;  %v4823_v9 = vor.u32 %v5587_v60, %v4822_v59  ;;  %v5535_v60 = vld [vmem:[%s8430_s8 + $0x3c] sm:$0xf] }
 0x16e   :  { %3193 = vmatpush.bf16.msrb.mxu1 %v5243_v13 }
 0x173   :  { %v1873_v14 = vpop.f32.mrf.mxu3 }
 0x174   :  { %v5214_v14 = vld [vmem:[%s8430_s8 + $0x4d0] sm:$0xf] }
 0x178   :  { %v1884_v17 = vpop.f32.mrf.mxu1 }
 0x179   :  { %v1885_v18 = vadd.f32 %v1884_v17, %v1872_v16  ;;  %v5615_v16 = vld [vmem:[%s8430_s8 + $0x2b8] sm:$0xf0]  ;;  %v5685_v17 = vld [vmem:[%s8430_s8 + $0x4e8] sm:$0xf0] }
 0x17a   :  { %v4935_v26 = vor.u32 %v5615_v16, %v4934_v15  ;;  %v5216_v16 = vld [vmem:[%s8430_s8 + $0x4ec] sm:$0xf0] }
 0x17c   :  { %3183 = vmatpush.bf16.msra.mxu0 %v4935_v26 }
 0x180   :  { %v1886_v19 = vpop.f32.mrf.mxu1 }
 0x181   :  { %v5186_v19 = vld [vmem:[%s8430_s8 + $0x498] sm:$0xf] }
 0x1b9   :  { %v1897_v5 = vpop.f32.mrf.mxu2 }
 0x1ba   :  { %v1898_v8 = vadd.f32 %v1897_v5, %v1885_v18  ;;  %v5215_v18 = vor.u32 %v5685_v17, %v5214_v14  ;;  %v4711_v5 = vor.u32 %v5559_v11, %v4710_v10  ;;  %v5626_v10 = vld [vmem:[%s8430_s8 + $0x314] sm:$0xf]  ;;  %v4992_v11 = vld [vmem:[%s8430_s8 + $0x32c] sm:$0xf0]  ;;  %v5074_v17 = vld [vmem:[%s8430_s8 + $0x3b8] sm:$0xf] }
 0x1bb   :  { %v5682_v14 = vld [vmem:[%s8430_s8 + $0x4d4] sm:$0xf] }
 0x1bc   :  { %3194 = vmatpush.bf16.msrb.mxu1 %v5215_v18  ;;  %3170 = vmatpush.bf16.msra.mxu3 %v4711_v5  ;;  %v5650_v18 = vld [vmem:[%s8430_s8 + $0x3d0] sm:$0xf0]  ;;  %v4995_v5 = vor.u32 %v5626_v10, %v4992_v11  ;;  %v5219_v25 = vor.u32 %v5682_v14, %v5216_v16  ;;  %v5584_v10 = vld [vmem:[%s8430_s8 + $0x1c4] sm:$0xf]  ;;  %v4824_v11 = vld [vmem:[%s8430_s8 + $0x1dc] sm:$0xf0] }
 0x1bd   :  { %v5075_v26 = vor.u32 %v5650_v18, %v5074_v17  ;;  %v5076_v14 = vld [vmem:[%s8430_s8 + $0x3d4] sm:$0xf0]  ;;  %v5640_v16 = vld [vmem:[%s8430_s8 + $0x384] sm:$0xf]  ;;  %v5048_v17 = vld [vmem:[%s8430_s8 + $0x39c] sm:$0xf0] }
 0x1be   :  { %v5051_v18 = vor.u32 %v5640_v16, %v5048_v17  ;;  %v5166_v17 = vld [vmem:[%s8430_s8 + $0x468] sm:$0xf] }
 0x1c0   :  { %3171 = vmatpush.bf16.msra.mxu3 %v4683_v31  ;;  %v5556_v31 = vld [vmem:[%s8430_s8 + $0xe4] sm:$0xf] }
 0x1c1   :  { %v1899_v20 = vpop.f32.mrf.mxu2 }
 0x1c2   :  { %v5678_v20 = vld [vmem:[%s8430_s8 + $0x4b0] sm:$0xf0] }
 0x1c3   :  { %v5187_v30 = vor.u32 %v5678_v20, %v5186_v19  ;;  %v4771_v19 = vor.u32 %v5570_v6, %v4768_v7  ;;  %v5563_v20 = vld [vmem:[%s8430_s8 + $0x11c] sm:$0xf]  ;;  %v5528_v6 = vld [vmem:[%s8430_s8 + $0x4] sm:$0xf]  ;;  %v4600_v7 = vld [vmem:[%s8430_s8 + $0x1c] sm:$0xf0] }
 0x1c5   :  { %3195 = vmatpush.bf16.msrb.mxu1 %v5187_v30  ;;  %v4967_v30 = vor.u32 %v5619_v22, %v4964_v23 }
 0x1d9   :  { %v1910_v34 = vpop.f32.mrf.mxu0 }
 0x1da   :  { %v7244_v35 = vadd.f32 %v1910_v34, %v1898_v8  ;;  %v4907_v8 = vor.u32 %v5608_v28, %v4906_v12  ;;  %v4878_v34 = vld [vmem:[%s8430_s8 + $0x230] sm:$0xf]  ;;  %v5188_v12 = vld [vmem:[%s8430_s8 + $0x4b4] sm:$0xf0]  ;;  %v4743_v28 = vor.u32 %v5563_v20, %v4740_v21 }
 0x1dc   :  { %3628 = vst.msk [vmem:[#allocation4] sm:$0xff] %vm1971_vm2, %v7244_v35  ;;  %v1914_v36 = vmul.f32 0.5, %v7244_v35  ;;  %3184 = vmatpush.bf16.msra.mxu0 %v4907_v8 }
 0x1de   :  { %v1915_v37 = vmul.f32 1.442695, %v1914_v36  ;;  %v5601_v36 = vld [vmem:[%s8430_s8 + $0x248] sm:$0xf0] }
 0x1df   :  { %v4879_v43 = vor.u32 %v5601_v36, %v4878_v34  ;;  %v5549_v36 = vld [vmem:[%s8430_s8 + $0xac] sm:$0xf] }
 0x1e0   :  { %5712 = vpow2.f32 %v1915_v37  ;;  %v5159_v37 = vor.u32 %v5671_v32, %v5158_v29  ;;  %v4712_v29 = vld [vmem:[%s8430_s8 + $0xfc] sm:$0xf0]  ;;  %v5612_v32 = vld [vmem:[%s8430_s8 + $0x2a4] sm:$0xf] }
 0x1e1   :  { %v1912_v39 = vpop.f32.mrf.mxu0  ;;  %3185 = vmatpush.bf16.msra.mxu0 %v4879_v43  ;;  %v4715_v8 = vor.u32 %v5556_v31, %v4712_v29  ;;  %v5643_v43 = vld [vmem:[%s8430_s8 + $0x398] sm:$0xf0] }
 0x1e2   :  { %v4655_v39 = vor.u32 %v5545_v3, %v4654_v33  ;;  %3196 = vmatpush.bf16.msrb.mxu1 %v5159_v37  ;;  %v4936_v33 = vld [vmem:[%s8430_s8 + $0x2bc] sm:$0xf0]  ;;  %v5191_v3 = vor.u32 %v5675_v27, %v5188_v12  ;;  %v4684_v37 = vld [vmem:[%s8430_s8 + $0xc4] sm:$0xf0]  ;;  %v5047_v45 = vor.u32 %v5643_v43, %v5046_v41  ;;  %v4802_v12 = vld [vmem:[%s8430_s8 + $0x190] sm:$0xf] }
 0x1e3   :  { %v4939_v34 = vor.u32 %v5612_v32, %v4936_v33  ;;  %v5693_v41 = vld [vmem:[%s8430_s8 + $0x528] sm:$0xf0] }
 0x1e4   :  { %3172 = vmatpush.bf16.msra.mxu3 %v4655_v39  ;;  %v5605_v39 = vld [vmem:[%s8430_s8 + $0x26c] sm:$0xf] }
 0x1e5   :  { %3186 = vmatpush.bf16.msra.mxu0 %v4851_v53  ;;  %v5696_v53 = vld [vmem:[%s8430_s8 + $0x544] sm:$0xf] }
 0x1e6   :  { %v5713_v38 = vpop.eup %5712  ;;  %v5275_v55 = vor.u32 %v5696_v53, %v5272_v54 }
 0x1e7   :  { %1919 = vrot.lane.b32.xlu0 %v5713_v38, %s5818_s5  ;;  %v5130_v38 = vld [vmem:[%s8430_s8 + $0x428] sm:$0xf] }
 0x1e8   :  { %v5131_v47 = vor.u32 %v5664_v42, %v5130_v38  ;;  %3173 = vmatpush.bf16.msra.mxu3 %v4627_v49  ;;  %v4687_v38 = vor.u32 %v5549_v36, %v4684_v37  ;;  %v4908_v42 = vld [vmem:[%s8430_s8 + $0x284] sm:$0xf0]  ;;  %v4774_v37 = vld [vmem:[%s8430_s8 + $0x158] sm:$0xf] }
 0x1e9   :  { %3187 = vmatpush.bf16.msra.mxu0 %v4823_v9  ;;  %v4911_v40 = vor.u32 %v5605_v39, %v4908_v42  ;;  %v4603_v9 = vor.u32 %v5528_v6, %v4600_v7  ;;  %v5574_v39 = vld [vmem:[%s8430_s8 + $0x170] sm:$0xf0]  ;;  %v5679_v6 = vld [vmem:[%s8430_s8 + $0x4b8] sm:$0xf0]  ;;  %v4970_v7 = vld [vmem:[%s8430_s8 + $0x2e0] sm:$0xf] }
 0x1ea   :  { %3197 = vmatpush.bf16.msrb.mxu1 %v5131_v47  ;;  %v5542_v47 = vld [vmem:[%s8430_s8 + $0x74] sm:$0xf] }
 0x1ec   :  { %3174 = vmatpush.bf16.msra.mxu3 %v4599_v1  ;;  %v5654_v1 = vld [vmem:[%s8430_s8 + $0x3f4] sm:$0xf] }
 0x1ef   :  { %3630 = vrot.lane.b32.xlu0 %v7244_v35, %s5818_s5 }
 0x259   :  { %v1920_v48 = vpop.permute.xlu0 %1919 }
 0x25a   :  { %v1922_v50 = vmul.f32 %v1920_v48, %v1917_v44  ;;  %v5668_v44 = vld [vmem:[%s8430_s8 + $0x464] sm:$0xf]  ;;  %v4656_v48 = vld [vmem:[%s8430_s8 + $0x8c] sm:$0xf0] }
 0x25b   :  { %v5163_v49 = vor.u32 %v5668_v44, %v5160_v46  ;;  %v5637_v46 = vld [vmem:[%s8430_s8 + $0x368] sm:$0xf0] }
 0x25c   :  { %v1923_v58 = vadd.f32 %v1922_v50, %v7244_v35  ;;  %v5102_v35 = vld [vmem:[%s8430_s8 + $0x3f0] sm:$0xf]  ;;  %v4659_v50 = vor.u32 %v5542_v47, %v4656_v48 }
 0x25d   :  { %v5103_v13 = vor.u32 %v5657_v63, %v5102_v35  ;;  %v4631_v35 = vor.u32 %v5535_v60, %v4628_v61  ;;  %v4852_v63 = vld [vmem:[%s8430_s8 + $0x214] sm:$0xf0]  ;;  %v5630_v60 = vld [vmem:[%s8430_s8 + $0x330] sm:$0xf0] }
 0x25e   :  { %v1924_v0 = vpack.c.bf16 %v1923_v58, %v1923_v58  ;;  %v5132_v58 = vld [vmem:[%s8430_s8 + $0x444] sm:$0xf0] }
 0x25f   :  { %3198 = vmatpush.bf16.msrb.mxu1 %v5103_v13  ;;  %v5135_v59 = vor.u32 %v5661_v57, %v5132_v58  ;;  %v5647_v13 = vld [vmem:[%s8430_s8 + $0x3bc] sm:$0xf]  ;;  %v5686_v57 = vld [vmem:[%s8430_s8 + $0x4f0] sm:$0xf0] }
 0x260   :  { %4592 = vmatmul.msk.bf16.vlgmr.msrb.gmra.mxu3 %vm1971_vm2, %v1924_v0  ;;  %4593 = vmatmul.msk.bf16.vlgmr.msrb.gmra.mxu0 %vm1971_vm2, %v1924_v0 }
 0x261   :  { %4594 = vmatmul.msk.bf16.vlgmr.msra.gmra.mxu1 %vm1971_vm2, %v1924_v0  ;;  %4595 = vmatmul.msk.bf16.vlgmr.msra.gmra.mxu2 %vm1971_vm2, %v1924_v0  ;;  %v3631_v15 = vpop.permute.xlu0 %3630  ;;  %v4855_v0 = vor.u32 %v5591_v62, %v4852_v63  ;;  %v4718_v63 = vld [vmem:[%s8430_s8 + $0xe8] sm:$0xf] }
 0x262   :  { %3633 = vst.msk [vmem:[#allocation6] sm:$0xff] %vm1971_vm2, %v3631_v15  ;;  %3219 = vmatpush.bf16.msra.mxu2 %v4799_v2  ;;  %3232 = vmatpush.bf16.msrb.mxu3 %v5023_v4  ;;  %v5104_v2 = vld [vmem:[%s8430_s8 + $0x40c] sm:$0xf0]  ;;  %v5079_v15 = vor.u32 %v5647_v13, %v5076_v14 }
 0x263   :  { %3245 = vmatpush.bf16.msrb.mxu0 %v5247_v56  ;;  %3199 = vmatpush.bf16.msrb.mxu1 %v5075_v26  ;;  %v5107_v4 = vor.u32 %v5654_v1, %v5104_v2  ;;  %v4827_v56 = vor.u32 %v5584_v10, %v4824_v11  ;;  %v5700_v26 = vld [vmem:[%s8430_s8 + $0x560] sm:$0xf0]  ;;  %v5578_v11 = vld [vmem:[%s8430_s8 + $0x194] sm:$0xf]  ;;  %v4690_v14 = vld [vmem:[%s8430_s8 + $0xb0] sm:$0xf] }
 0x266   :  { %3220 = vmatpush.bf16.msra.mxu2 %v4771_v19  ;;  %3233 = vmatpush.bf16.msrb.mxu3 %v4995_v5  ;;  %v1931_v19 = vld [vmem:[%s8429_s7] sm:$0xf] }
 0x267   :  { %3246 = vmatpush.bf16.msrb.mxu0 %v5219_v25  ;;  %3200 = vmatpush.bf16.msrb.mxu1 %v5047_v45  ;;  %v1934_v5 = vperm.slane %v1931_v19, 1  ;;  %v1935_v20 = vperm.slane %v1931_v19, 2  ;;  %v5278_v25 = vld [vmem:[%s8430_s8 + $0x548] sm:$0xf]  ;;  %v1933_v31 = vperm.slane %v1931_v19, 0  ;;  %v1936_v32 = vperm.slane %v1931_v19, 3 }
 0x268   :  { %v5279_v33 = vor.u32 %v5700_v26, %v5278_v25  ;;  %v5026_v45 = vld [vmem:[%s8430_s8 + $0x350] sm:$0xf]  ;;  %v4662_v26 = vld [vmem:[%s8430_s8 + $0x78] sm:$0xf] }
 0x269   :  { %v5027_v54 = vor.u32 %v5637_v46, %v5026_v45  ;;  %v5602_v45 = vld [vmem:[%s8430_s8 + $0x250] sm:$0xf0] }
 0x26a   :  { %3221 = vmatpush.bf16.msra.mxu2 %v4743_v28  ;;  %3234 = vmatpush.bf16.msrb.mxu3 %v4967_v30  ;;  %v5581_v28 = vld [vmem:[%s8430_s8 + $0x1a8] sm:$0xf0] }
 0x26b   :  { %3247 = vmatpush.bf16.msrb.mxu0 %v5191_v3  ;;  %3265 = vmatpush.bf16.msra.mxu1 %v5275_v55  ;;  %v5222_v55 = vld [vmem:[%s8430_s8 + $0x4d8] sm:$0xf] }
 0x26e   :  { %3222 = vmatpush.bf16.msra.mxu2 %v4715_v8  ;;  %3235 = vmatpush.bf16.msrb.mxu3 %v4939_v34  ;;  %v4803_v8 = vor.u32 %v5581_v28, %v4802_v12  ;;  %v5138_v28 = vld [vmem:[%s8430_s8 + $0x430] sm:$0xf] }
 0x26f   :  { %3248 = vmatpush.bf16.msrb.mxu0 %v5163_v49  ;;  %v4775_v49 = vor.u32 %v5574_v39, %v4774_v37  ;;  %v4634_v39 = vld [vmem:[%s8430_s8 + $0x40] sm:$0xf] }
 0x272   :  { %3223 = vmatpush.bf16.msra.mxu2 %v4687_v38  ;;  %3236 = vmatpush.bf16.msrb.mxu3 %v4911_v40  ;;  %v5250_v40 = vld [vmem:[%s8430_s8 + $0x510] sm:$0xf] }
 0x273   :  { %3249 = vmatpush.bf16.msrb.mxu0 %v5135_v59  ;;  %v5251_v51 = vor.u32 %v5693_v41, %v5250_v40  ;;  %v4998_v59 = vld [vmem:[%s8430_s8 + $0x318] sm:$0xf]  ;;  %v5658_v41 = vld [vmem:[%s8430_s8 + $0x410] sm:$0xf0] }
 0x274   :  { %v4999_v2 = vor.u32 %v5630_v60, %v4998_v59  ;;  %v5110_v40 = vld [vmem:[%s8430_s8 + $0x3f8] sm:$0xf]  ;;  %v4858_v60 = vld [vmem:[%s8430_s8 + $0x200] sm:$0xf] }
 0x276   :  { %3224 = vmatpush.bf16.msra.mxu2 %v4659_v50  ;;  %3237 = vmatpush.bf16.msrb.mxu3 %v4883_v52  ;;  %v5567_v52 = vld [vmem:[%s8430_s8 + $0x138] sm:$0xf0] }
 0x277   :  { %3250 = vmatpush.bf16.msrb.mxu0 %v5107_v4  ;;  %v4747_v61 = vor.u32 %v5567_v52, %v4746_v24  ;;  %v5194_v4 = vld [vmem:[%s8430_s8 + $0x4a0] sm:$0xf]  ;;  %v5634_v24 = vld [vmem:[%s8430_s8 + $0x354] sm:$0xf] }
 0x278   :  { %v5195_v13 = vor.u32 %v5679_v6, %v5194_v4  ;;  %v5000_v4 = vld [vmem:[%s8430_s8 + $0x334] sm:$0xf0]  ;;  %v4830_v6 = vld [vmem:[%s8430_s8 + $0x1c8] sm:$0xf] }
 0x27a   :  { %3225 = vmatpush.bf16.msra.mxu2 %v4631_v35  ;;  %3238 = vmatpush.bf16.msrb.mxu3 %v4855_v0  ;;  %v5223_v35 = vor.u32 %v5686_v57, %v5222_v55  ;;  %v5560_v0 = vld [vmem:[%s8430_s8 + $0x100] sm:$0xf0]  ;;  %v5082_v55 = vld [vmem:[%s8430_s8 + $0x3c0] sm:$0xf]  ;;  %v5651_v57 = vld [vmem:[%s8430_s8 + $0x3d8] sm:$0xf0] }
 0x27b   :  { %3251 = vmatpush.bf16.msrb.mxu0 %v5079_v15  ;;  %v4719_v10 = vor.u32 %v5560_v0, %v4718_v63  ;;  %v5553_v15 = vld [vmem:[%s8430_s8 + $0xc8] sm:$0xf0]  ;;  %v4692_v63 = vld [vmem:[%s8430_s8 + $0xcc] sm:$0xf0] }
 0x27e   :  { %3226 = vmatpush.bf16.msra.mxu2 %v4603_v9  ;;  %3239 = vmatpush.bf16.msrb.mxu3 %v4827_v56  ;;  %v5623_v9 = vld [vmem:[%s8430_s8 + $0x2f8] sm:$0xf0]  ;;  %v4804_v56 = vld [vmem:[%s8430_s8 + $0x1ac] sm:$0xf0] }
 0x27f   :  { %3252 = vmatpush.bf16.msrb.mxu0 %v5051_v18  ;;  %v4971_v16 = vor.u32 %v5623_v9, %v4970_v7  ;;  %v5672_v18 = vld [vmem:[%s8430_s8 + $0x480] sm:$0xf0]  ;;  %v4807_v19 = vor.u32 %v5578_v11, %v4804_v56 }
 0x280   :  { %v5167_v25 = vor.u32 %v5672_v18, %v5166_v17  ;;  %v5588_v9 = vld [vmem:[%s8430_s8 + $0x1e0] sm:$0xf0]  ;;  %v5543_v17 = vld [vmem:[%s8430_s8 + $0x7c] sm:$0xf]  ;;  %v4664_v18 = vld [vmem:[%s8430_s8 + $0x94] sm:$0xf0] }
 0x281   :  { %v5644_v11 = vld [vmem:[%s8430_s8 + $0x3a0] sm:$0xf0] }
 0x2dd   :  { %v2010_v21 = vpop.f32.mrf.mxu0 }
 0x2de   :  { %v2011_v22 = vadd.f32 %v2010_v21, %v1934_v5  ;;  %v2023_v23 = vpop.f32.mrf.mxu1  ;;  %v4942_v5 = vld [vmem:[%s8430_s8 + $0x2a8] sm:$0xf]  ;;  %v4691_v21 = vor.u32 %v5553_v15, %v4690_v14  ;;  %v5697_v14 = vld [vmem:[%s8430_s8 + $0x54c] sm:$0xf] }
 0x2df   :  { %v2024_v27 = vadd.f32 %v2023_v23, %v1935_v20  ;;  %v5616_v20 = vld [vmem:[%s8430_s8 + $0x2c0] sm:$0xf0]  ;;  %v4776_v23 = vld [vmem:[%s8430_s8 + $0x174] sm:$0xf0]  ;;  %v5280_v15 = vld [vmem:[%s8430_s8 + $0x564] sm:$0xf0] }
 0x2e0   :  { %v2041_v30 = vmax.f32 %v2011_v22, 0.0  ;;  %v5571_v22 = vld [vmem:[%s8430_s8 + $0x15c] sm:$0xf]  ;;  %v4943_v12 = vor.u32 %v5616_v20, %v4942_v5  ;;  %v4831_v20 = vor.u32 %v5588_v9, %v4830_v6  ;;  %v5140_v9 = vld [vmem:[%s8430_s8 + $0x44c] sm:$0xf0] }
 0x2e1   :  { %v2042_v29 = vmax.f32 %v2024_v27, 0.0  ;;  %v5546_v27 = vld [vmem:[%s8430_s8 + $0x90] sm:$0xf0] }
 0x2e2   :  { %v7598_v3 = vpack.c.bf16 %v2041_v30, %v2041_v30  ;;  %v5665_v30 = vld [vmem:[%s8430_s8 + $0x448] sm:$0xf0] }
 0x2e3   :  { %v7600_v34 = vpack.c.bf16 %v2042_v29, %v2042_v29  ;;  %v1997_v36 = vpop.f32.mrf.mxu3  ;;  %v4914_v29 = vld [vmem:[%s8430_s8 + $0x270] sm:$0xf]  ;;  %v5139_v37 = vor.u32 %v5665_v30, %v5138_v28  ;;  %v5683_v28 = vld [vmem:[%s8430_s8 + $0x4dc] sm:$0xf]  ;;  %v5224_v30 = vld [vmem:[%s8430_s8 + $0x4f4] sm:$0xf0] }
 0x2e4   :  { %v1998_v38 = vadd.f32 %v1997_v36, %v1933_v31  ;;  %v2036_v42 = vpop.f32.mrf.mxu2  ;;  %3188 = vmatmul.bf16.vlgmr.msra.gmra.mxu0 %v7598_v3  ;;  %v4779_v31 = vor.u32 %v5571_v22, %v4776_v23  ;;  %v4748_v36 = vld [vmem:[%s8430_s8 + $0x13c] sm:$0xf0]  ;;  %v5283_v23 = vor.u32 %v5697_v14, %v5280_v15  ;;  %v5592_v14 = vld [vmem:[%s8430_s8 + $0x204] sm:$0xf] }
 0x2e5   :  { %v2037_v43 = vadd.f32 %v2036_v42, %v1936_v32  ;;  %3201 = vmatmul.bf16.vlgmr.msrb.gmra.mxu1 %v7600_v34  ;;  %v2012_v44 = vpop.f32.mrf.mxu0  ;;  %3317 = vmatpush.bf16.msra.mxu0 %v5279_v33  ;;  %v5609_v32 = vld [vmem:[%s8430_s8 + $0x288] sm:$0xf0]  ;;  %v4663_v33 = vor.u32 %v5546_v27, %v4662_v26  ;;  %v4972_v22 = vld [vmem:[%s8430_s8 + $0x2fc] sm:$0xf0]  ;;  %v4667_v26 = vor.u32 %v5543_v17, %v4664_v18  ;;  %v4810_v27 = vld [vmem:[%s8430_s8 + $0x198] sm:$0xf] }
 0x2e6   :  { %v2040_v47 = vmax.f32 %v1998_v38, 0.0  ;;  %3271 = vmatpush.bf16.msrb.mxu1 %v4803_v8  ;;  %v2025_v48 = vpop.f32.mrf.mxu1  ;;  %v5564_v8 = vld [vmem:[%s8430_s8 + $0x124] sm:$0xf]  ;;  %v5539_v38 = vld [vmem:[%s8430_s8 + $0x58] sm:$0xf0]  ;;  %v4915_v42 = vor.u32 %v5609_v32, %v4914_v29 }
 0x2e7   :  { %v2043_v50 = vmax.f32 %v2037_v43, 0.0  ;;  %v4751_v43 = vor.u32 %v5564_v8, %v4748_v36  ;;  %v4886_v44 = vld [vmem:[%s8430_s8 + $0x238] sm:$0xf]  ;;  %v4635_v46 = vor.u32 %v5539_v38, %v4634_v39  ;;  %v4720_v48 = vld [vmem:[%s8430_s8 + $0x104] sm:$0xf0] }
 0x2e8   :  { %v7628_v53 = vpack.c.bf16 %v2040_v47, %v2040_v47  ;;  %v5557_v47 = vld [vmem:[%s8430_s8 + $0xec] sm:$0xf]  ;;  %v4887_v52 = vor.u32 %v5602_v45, %v4886_v44  ;;  %v4636_v29 = vld [vmem:[%s8430_s8 + $0x5c] sm:$0xf0]  ;;  %v4944_v36 = vld [vmem:[%s8430_s8 + $0x2c4] sm:$0xf0] }
 0x2e9   :  { %v7636_v58 = vpack.c.bf16 %v2043_v50, %v2043_v50  ;;  %v4606_v50 = vld [vmem:[%s8430_s8 + $0x8] sm:$0xf]  ;;  %v4723_v59 = vor.u32 %v5557_v47, %v4720_v48  ;;  %v5613_v8 = vld [vmem:[%s8430_s8 + $0x2ac] sm:$0xf]  ;;  %v4782_v38 = vld [vmem:[%s8430_s8 + $0x160] sm:$0xf] }
 0x2ea   :  { %3272 = vmatpush.bf16.msrb.mxu1 %v4775_v49  ;;  %3175 = vmatmul.bf16.vlgmr.msra.gmra.mxu3 %v7628_v53  ;;  %v5111_v49 = vor.u32 %v5658_v41, %v5110_v40  ;;  %v5676_v40 = vld [vmem:[%s8430_s8 + $0x4a4] sm:$0xf]  ;;  %v5196_v41 = vld [vmem:[%s8430_s8 + $0x4bc] sm:$0xf0]  ;;  %v4608_v44 = vld [vmem:[%s8430_s8 + $0x24] sm:$0xf0]  ;;  %v4947_v45 = vor.u32 %v5613_v8, %v4944_v36 }
 0x2eb   :  { %5296 = vmatmul.msk.bf16.vlgmr.msrb.gmra.mxu2 %vm1279_vm0, %v7636_v58  ;;  %3297 = vmatpush.bf16.msra.mxu3 %v5251_v51  ;;  %v1999_v62 = vpop.f32.mrf.mxu3  ;;  %v5532_v51 = vld [vmem:[%s8430_s8 + $0x20] sm:$0xf0]  ;;  %v5638_v47 = vld [vmem:[%s8430_s8 + $0x370] sm:$0xf0]  ;;  %v4860_v15 = vld [vmem:[%s8430_s8 + $0x21c] sm:$0xf0] }
 0x2ec   :  { %3284 = vmatpush.bf16.msrb.mxu2 %v5027_v54  ;;  %v2038_v1 = vpop.f32.mrf.mxu2  ;;  %v5028_v54 = vld [vmem:[%s8430_s8 + $0x36c] sm:$0xf0]  ;;  %v4607_v62 = vor.u32 %v5532_v51, %v4606_v50  ;;  %v5199_v51 = vor.u32 %v5676_v40, %v5196_v41  ;;  %v4698_v17 = vld [vmem:[%s8430_s8 + $0xb8] sm:$0xf]  ;;  %v5554_v18 = vld [vmem:[%s8430_s8 + $0xd0] sm:$0xf0] }
 0x2ed   :  { %v5031_v0 = vor.u32 %v5634_v24, %v5028_v54  ;;  %v5083_v1 = vor.u32 %v5651_v57, %v5082_v55  ;;  %v4916_v50 = vld [vmem:[%s8430_s8 + $0x28c] sm:$0xf0]  ;;  %v5568_v54 = vld [vmem:[%s8430_s8 + $0x140] sm:$0xf0]  ;;  %v5669_v57 = vld [vmem:[%s8430_s8 + $0x46c] sm:$0xf] }
 0x2ee   :  { %3273 = vmatpush.bf16.msrb.mxu1 %v4747_v61  ;;  %v5595_v61 = vld [vmem:[%s8430_s8 + $0x218] sm:$0xf0]  ;;  %v5084_v8 = vld [vmem:[%s8430_s8 + $0x3dc] sm:$0xf0]  ;;  %v4642_v40 = vld [vmem:[%s8430_s8 + $0x48] sm:$0xf] }
 0x2ef   :  { %3298 = vmatpush.bf16.msra.mxu3 %v5223_v35  ;;  %v5550_v35 = vld [vmem:[%s8430_s8 + $0xb4] sm:$0xf]  ;;  %v4859_v7 = vor.u32 %v5595_v61, %v4858_v60  ;;  %v5006_v61 = vld [vmem:[%s8430_s8 + $0x320] sm:$0xf] }
 0x2f0   :  { %3285 = vmatpush.bf16.msrb.mxu2 %v4999_v2  ;;  %v5627_v2 = vld [vmem:[%s8430_s8 + $0x31c] sm:$0xf]  ;;  %v4695_v56 = vor.u32 %v5550_v35, %v4692_v63 }
 0x2f1   :  { %v5599_v63 = vld [vmem:[%s8430_s8 + $0x23c] sm:$0xf] }
 0x2f2   :  { %3274 = vmatpush.bf16.msrb.mxu1 %v4719_v10  ;;  %v5054_v10 = vld [vmem:[%s8430_s8 + $0x388] sm:$0xf] }
 0x2f3   :  { %3299 = vmatpush.bf16.msra.mxu3 %v5195_v13  ;;  %v5690_v13 = vld [vmem:[%s8430_s8 + $0x514] sm:$0xf]  ;;  %v5055_v5 = vor.u32 %v5644_v11, %v5054_v10  ;;  %v4978_v11 = vld [vmem:[%s8430_s8 + $0x2e8] sm:$0xf] }
 0x2f4   :  { %3286 = vmatpush.bf16.msrb.mxu2 %v4971_v16  ;;  %3253 = vmatmul.bf16.vlgmr.msrb.gmra.mxu0 %v7600_v34  ;;  %v5252_v16 = vld [vmem:[%s8430_s8 + $0x52c] sm:$0xf0] }
 0x2f5   :  { %5297 = vmatmul.msk.bf16.vlgmr.msra.gmra.mxu1 %vm1279_vm0, %v7636_v58  ;;  %3323 = vmatpush.bf16.msrb.mxu0 %v4807_v19  ;;  %v5003_v19 = vor.u32 %v5627_v2, %v5000_v4  ;;  %v4726_v2 = vld [vmem:[%s8430_s8 + $0xf0] sm:$0xf]  ;;  %v5561_v4 = vld [vmem:[%s8430_s8 + $0x108] sm:$0xf0] }
 0x2f6   :  { %3275 = vmatpush.bf16.msrb.mxu1 %v4691_v21  ;;  %v5620_v21 = vld [vmem:[%s8430_s8 + $0x2e4] sm:$0xf] }
 0x2f7   :  { %3300 = vmatpush.bf16.msra.mxu3 %v5167_v25  ;;  %v5255_v25 = vor.u32 %v5690_v13, %v5252_v16  ;;  %v4975_v32 = vor.u32 %v5620_v21, %v4972_v22  ;;  %v4727_v13 = vor.u32 %v5561_v4, %v4726_v2  ;;  %v4863_v21 = vor.u32 %v5592_v14, %v4860_v15  ;;  %v4950_v22 = vld [vmem:[%s8430_s8 + $0x2b0] sm:$0xf]  ;;  %v5036_v2 = vld [vmem:[%s8430_s8 + $0x374] sm:$0xf0]  ;;  %v4866_v4 = vld [vmem:[%s8430_s8 + $0x208] sm:$0xf] }
 0x2f8   :  { %3287 = vmatpush.bf16.msrb.mxu2 %v4943_v12  ;;  %v5582_v12 = vld [vmem:[%s8430_s8 + $0x1b0] sm:$0xf0]  ;;  %v5572_v15 = vld [vmem:[%s8430_s8 + $0x164] sm:$0xf] }
 0x2f9   :  { %3324 = vmatpush.bf16.msrb.mxu0 %v4779_v31  ;;  %v5536_v31 = vld [vmem:[%s8430_s8 + $0x44] sm:$0xf] }
 0x2fa   :  { %3276 = vmatpush.bf16.msrb.mxu1 %v4663_v33  ;;  %3240 = vmatmul.bf16.vlgmr.msrb.gmra.mxu3 %v7598_v3  ;;  %v4811_v33 = vor.u32 %v5582_v12, %v4810_v27  ;;  %v4639_v39 = vor.u32 %v5536_v31, %v4636_v29  ;;  %v4832_v27 = vld [vmem:[%s8430_s8 + $0x1e4] sm:$0xf0]  ;;  %v4670_v12 = vld [vmem:[%s8430_s8 + $0x80] sm:$0xf]  ;;  %v5258_v31 = vld [vmem:[%s8430_s8 + $0x518] sm:$0xf] }
 0x2fb   :  { %3227 = vmatmul.bf16.vlgmr.msra.gmra.mxu2 %v7628_v53  ;;  %3301 = vmatpush.bf16.msra.mxu3 %v5139_v37  ;;  %v5227_v37 = vor.u32 %v5683_v28, %v5224_v30  ;;  %v5547_v30 = vld [vmem:[%s8430_s8 + $0x98] sm:$0xf0]  ;;  %v5694_v29 = vld [vmem:[%s8430_s8 + $0x530] sm:$0xf0] }
 0x2fc   :  { %3288 = vmatpush.bf16.msrb.mxu2 %v4915_v42  ;;  %v5575_v42 = vld [vmem:[%s8430_s8 + $0x178] sm:$0xf0] }
 0x2fd   :  { %3325 = vmatpush.bf16.msrb.mxu0 %v4751_v43  ;;  %v5529_v43 = vld [vmem:[%s8430_s8 + $0xc] sm:$0xf]  ;;  %v4783_v48 = vor.u32 %v5575_v42, %v4782_v38  ;;  %v4671_v38 = vor.u32 %v5547_v30, %v4670_v12  ;;  %v5259_v42 = vor.u32 %v5694_v29, %v5258_v31  ;;  %v5666_v12 = vld [vmem:[%s8430_s8 + $0x450] sm:$0xf0]  ;;  %v4756_v30 = vld [vmem:[%s8430_s8 + $0x144] sm:$0xf0] }
 0x2fe   :  { %3277 = vmatpush.bf16.msrb.mxu1 %v4635_v46  ;;  %v5034_v46 = vld [vmem:[%s8430_s8 + $0x358] sm:$0xf]  ;;  %v4611_v24 = vor.u32 %v5529_v43, %v4608_v44  ;;  %v5540_v43 = vld [vmem:[%s8430_s8 + $0x60] sm:$0xf0]  ;;  %v5230_v44 = vld [vmem:[%s8430_s8 + $0x4e0] sm:$0xf] }
 0x2ff   :  { %3302 = vmatpush.bf16.msra.mxu3 %v5111_v49  ;;  %v5606_v49 = vld [vmem:[%s8430_s8 + $0x274] sm:$0xf]  ;;  %v5035_v55 = vor.u32 %v5638_v47, %v5034_v46  ;;  %v5641_v47 = vld [vmem:[%s8430_s8 + $0x38c] sm:$0xf] }
 0x300   :  { %3289 = vmatpush.bf16.msrb.mxu2 %v4887_v52  ;;  %v4754_v52 = vld [vmem:[%s8430_s8 + $0x128] sm:$0xf]  ;;  %v4919_v60 = vor.u32 %v5606_v49, %v4916_v50  ;;  %v4894_v49 = vld [vmem:[%s8430_s8 + $0x240] sm:$0xf]  ;;  %v5603_v50 = vld [vmem:[%s8430_s8 + $0x258] sm:$0xf0] }
 0x301   :  { %3326 = vmatpush.bf16.msrb.mxu0 %v4723_v59  ;;  %v5168_v59 = vld [vmem:[%s8430_s8 + $0x484] sm:$0xf0]  ;;  %v4755_v35 = vor.u32 %v5568_v54, %v4754_v52  ;;  %v4643_v52 = vor.u32 %v5540_v43, %v4642_v40  ;;  %v5621_v29 = vld [vmem:[%s8430_s8 + $0x2ec] sm:$0xf]  ;;  %v5558_v40 = vld [vmem:[%s8430_s8 + $0xf4] sm:$0xf] }
 0x302   :  { %3278 = vmatpush.bf16.msrb.mxu1 %v4607_v62  ;;  %v5631_v62 = vld [vmem:[%s8430_s8 + $0x338] sm:$0xf0] }
 0x303   :  { %3303 = vmatpush.bf16.msra.mxu3 %v5083_v1  ;;  %v5171_v1 = vor.u32 %v5669_v57, %v5168_v59  ;;  %v5007_v6 = vor.u32 %v5631_v62, %v5006_v61  ;;  %v5533_v59 = vld [vmem:[%s8430_s8 + $0x28] sm:$0xf0]  ;;  %v5680_v61 = vld [vmem:[%s8430_s8 + $0x4c0] sm:$0xf0]  ;;  %v4895_v62 = vor.u32 %v5603_v50, %v4894_v49  ;;  %v5090_v50 = vld [vmem:[%s8430_s8 + $0x3c8] sm:$0xf] }
 0x304   :  { %3290 = vmatpush.bf16.msrb.mxu2 %v4859_v7  ;;  %5298 = vmatmul.msk.bf16.vlgmr.msra.gmra.mxu0 %vm1279_vm0, %v7636_v58  ;;  %v5662_v7 = vld [vmem:[%s8430_s8 + $0x434] sm:$0xf] }
 0x305   :  { %3279 = vmatmul.bf16.vlgmr.msrb.gmra.mxu1 %v7628_v53  ;;  %3327 = vmatpush.bf16.msrb.mxu0 %v4695_v56  ;;  %v5624_v56 = vld [vmem:[%s8430_s8 + $0x300] sm:$0xf0]  ;;  %v5143_v16 = vor.u32 %v5662_v7, %v5140_v9 }
 0x306   :  { %3336 = vmatpush.bf16.msra.mxu1 %v5031_v0  ;;  %v4888_v0 = vld [vmem:[%s8430_s8 + $0x254] sm:$0xf0] }
 0x307   :  { %3304 = vmatpush.bf16.msra.mxu3 %v5055_v5  ;;  %v4891_v10 = vor.u32 %v5599_v63, %v4888_v0  ;;  %v5655_v5 = vld [vmem:[%s8430_s8 + $0x3fc] sm:$0xf]  ;;  %v4812_v0 = vld [vmem:[%s8430_s8 + $0x1b4] sm:$0xf0] }
 0x308   :  { %3291 = vmatpush.bf16.msrb.mxu2 %v4831_v20  ;;  %v5112_v20 = vld [vmem:[%s8430_s8 + $0x414] sm:$0xf0]  ;;  %v5579_v63 = vld [vmem:[%s8430_s8 + $0x19c] sm:$0xf] }
 0x309   :  { %3328 = vmatpush.bf16.msrb.mxu0 %v4667_v26  ;;  %v5585_v26 = vld [vmem:[%s8430_s8 + $0x1cc] sm:$0xf]  ;;  %v5115_v28 = vor.u32 %v5655_v5, %v5112_v20  ;;  %v5691_v20 = vld [vmem:[%s8430_s8 + $0x51c] sm:$0xf] }
 0x30a   :  { %3337 = vmatpush.bf16.msra.mxu1 %v5003_v19  ;;  %3305 = vmatmul.bf16.vlgmr.msra.gmra.mxu3 %v7600_v34  ;;  %v4979_v19 = vor.u32 %v5624_v56, %v4978_v11  ;;  %v4835_v36 = vor.u32 %v5585_v26, %v4832_v27  ;;  %v5174_v11 = vld [vmem:[%s8430_s8 + $0x470] sm:$0xf]  ;;  %v5673_v56 = vld [vmem:[%s8430_s8 + $0x488] sm:$0xf0] }
 0x30b   :  { %3369 = vmatpush.bf16.msrb.mxu3 %v5283_v23  ;;  %3292 = vmatmul.bf16.vlgmr.msrb.gmra.mxu2 %v7598_v3  ;;  %v5617_v23 = vld [vmem:[%s8430_s8 + $0x2c8] sm:$0xf0] }
 0x30c   :  { %3349 = vmatpush.bf16.msra.mxu2 %v5255_v25  ;;  %v4699_v25 = vor.u32 %v5554_v18, %v4698_v17  ;;  %v5628_v17 = vld [vmem:[%s8430_s8 + $0x324] sm:$0xf]  ;;  %v5008_v18 = vld [vmem:[%s8430_s8 + $0x33c] sm:$0xf0]  ;;  %v5589_v5 = vld [vmem:[%s8430_s8 + $0x1e8] sm:$0xf0] }
 0x30d   :  { %3329 = vmatpush.bf16.msrb.mxu0 %v4639_v39  ;;  %v5610_v39 = vld [vmem:[%s8430_s8 + $0x290] sm:$0xf0]  ;;  %v5011_v26 = vor.u32 %v5628_v17, %v5008_v18 }
 0x30e   :  { %3338 = vmatpush.bf16.msra.mxu1 %v4975_v32  ;;  %v4951_v32 = vor.u32 %v5617_v23, %v4950_v22  ;;  %v5175_v22 = vor.u32 %v5673_v56, %v5174_v11  ;;  %v5288_v11 = vld [vmem:[%s8430_s8 + $0x56c] sm:$0xf0]  ;;  %v5663_v56 = vld [vmem:[%s8430_s8 + $0x43c] sm:$0xf] }
 0x30f   :  { %3375 = vmatpush.bf16.msra.mxu3 %v4811_v33  ;;  %v5648_v33 = vld [vmem:[%s8430_s8 + $0x3c4] sm:$0xf] }
 0x310   :  { %3350 = vmatpush.bf16.msra.mxu2 %v5227_v37  ;;  %v4922_v37 = vld [vmem:[%s8430_s8 + $0x278] sm:$0xf]  ;;  %v5087_v41 = vor.u32 %v5648_v33, %v5084_v8  ;;  %v5684_v33 = vld [vmem:[%s8430_s8 + $0x4e4] sm:$0xf]  ;;  %v5232_v8 = vld [vmem:[%s8430_s8 + $0x4fc] sm:$0xf0] }
 0x311   :  { %3330 = vmatpush.bf16.msrb.mxu0 %v4611_v24  ;;  %v4923_v46 = vor.u32 %v5610_v39, %v4922_v37  ;;  %v5701_v24 = vld [vmem:[%s8430_s8 + $0x568] sm:$0xf0]  ;;  %v5118_v39 = vld [vmem:[%s8430_s8 + $0x400] sm:$0xf]  ;;  %v5235_v43 = vor.u32 %v5684_v33, %v5232_v8  ;;  %v5586_v33 = vld [vmem:[%s8430_s8 + $0x1d4] sm:$0xf] }
 0x312   :  { %3339 = vmatpush.bf16.msra.mxu1 %v4947_v45  ;;  %v5687_v45 = vld [vmem:[%s8430_s8 + $0x4f8] sm:$0xf0]  ;;  %v4840_v8 = vld [vmem:[%s8430_s8 + $0x1ec] sm:$0xf0] }
 0x313   :  { %3376 = vmatpush.bf16.msra.mxu3 %v4783_v48  ;;  %v5056_v48 = vld [vmem:[%s8430_s8 + $0x3a4] sm:$0xf0]  ;;  %v5231_v54 = vor.u32 %v5687_v45, %v5230_v44  ;;  %v5614_v44 = vld [vmem:[%s8430_s8 + $0x2b4] sm:$0xf]  ;;  %v4952_v45 = vld [vmem:[%s8430_s8 + $0x2cc] sm:$0xf0] }
 0x314   :  { %3351 = vmatpush.bf16.msra.mxu2 %v5199_v51  ;;  %3331 = vmatmul.bf16.vlgmr.msrb.gmra.mxu0 %v7628_v53  ;;  %v5286_v51 = vld [vmem:[%s8430_s8 + $0x550] sm:$0xf]  ;;  %v5059_v57 = vor.u32 %v5641_v47, %v5056_v48  ;;  %v5204_v47 = vld [vmem:[%s8430_s8 + $0x4c4] sm:$0xf0] }
 0x315   :  { %3388 = vmatpush.bf16.msra.mxu0 %v5035_v55  ;;  %v4614_v55 = vld [vmem:[%s8430_s8 + $0x10] sm:$0xf] }
 0x316   :  { %3340 = vmatpush.bf16.msra.mxu1 %v4919_v60  ;;  %v5202_v60 = vld [vmem:[%s8430_s8 + $0x4a8] sm:$0xf]  ;;  %v4615_v7 = vor.u32 %v5533_v59, %v4614_v55  ;;  %v4924_v59 = vld [vmem:[%s8430_s8 + $0x294] sm:$0xf0] }
 0x317   :  { %3377 = vmatpush.bf16.msra.mxu3 %v4755_v35  ;;  %v5287_v35 = vor.u32 %v5701_v24, %v5286_v51  ;;  %v5203_v9 = vor.u32 %v5680_v61, %v5202_v60  ;;  %v4955_v51 = vor.u32 %v5614_v44, %v4952_v45  ;;  %v5652_v24 = vld [vmem:[%s8430_s8 + $0x3e0] sm:$0xf0]  ;;  %v5670_v60 = vld [vmem:[%s8430_s8 + $0x474] sm:$0xf]  ;;  %v5176_v61 = vld [vmem:[%s8430_s8 + $0x48c] sm:$0xf0]  ;;  %v4843_v45 = vor.u32 %v5586_v33, %v4840_v8 }
 0x318   :  { %3352 = vmatpush.bf16.msra.mxu2 %v5171_v1  ;;  %v5635_v1 = vld [vmem:[%s8430_s8 + $0x35c] sm:$0xf]  ;;  %v5604_v33 = vld [vmem:[%s8430_s8 + $0x260] sm:$0xf0]  ;;  %v5126_v8 = vld [vmem:[%s8430_s8 + $0x408] sm:$0xf] }
 0x319   :  { %3389 = vmatpush.bf16.msra.mxu0 %v5007_v6  ;;  %v5596_v6 = vld [vmem:[%s8430_s8 + $0x220] sm:$0xf0] }
 0x31a   :  { %3341 = vmatpush.bf16.msra.mxu1 %v4891_v10  ;;  %5299 = vmatmul.msk.bf16.vlgmr.msrb.gmra.mxu3 %vm1279_vm0, %v7636_v58  ;;  %v4815_v10 = vor.u32 %v5579_v63, %v4812_v0  ;;  %v4867_v14 = vor.u32 %v5596_v6, %v4866_v4  ;;  %v5062_v63 = vld [vmem:[%s8430_s8 + $0x390] sm:$0xf]  ;;  %v5645_v0 = vld [vmem:[%s8430_s8 + $0x3a8] sm:$0xf0]  ;;  %v4672_v4 = vld [vmem:[%s8430_s8 + $0x9c] sm:$0xf0] }
 0x31b   :  { %3378 = vmatpush.bf16.msra.mxu3 %v4727_v13  ;;  %v5039_v13 = vor.u32 %v5635_v1, %v5036_v2  ;;  %v5544_v2 = vld [vmem:[%s8430_s8 + $0x84] sm:$0xf] }
 0x31c   :  { %3353 = vmatpush.bf16.msra.mxu2 %v5143_v16  ;;  %v4784_v16 = vld [vmem:[%s8430_s8 + $0x17c] sm:$0xf0]  ;;  %v5600_v6 = vld [vmem:[%s8430_s8 + $0x244] sm:$0xf] }
 0x31d   :  { %3390 = vmatpush.bf16.msra.mxu0 %v4979_v19  ;;  %v4838_v19 = vld [vmem:[%s8430_s8 + $0x1d0] sm:$0xf]  ;;  %v4787_v23 = vor.u32 %v5572_v15, %v4784_v16  ;;  %v4675_v15 = vor.u32 %v5544_v2, %v4672_v4  ;;  %v4818_v16 = vld [vmem:[%s8430_s8 + $0x1a0] sm:$0xf]  ;;  %v5625_v4 = vld [vmem:[%s8430_s8 + $0x308] sm:$0xf0] }
 0x31e   :  { %3342 = vmatpush.bf16.msra.mxu1 %v4863_v21  ;;  %v5260_v21 = vld [vmem:[%s8430_s8 + $0x534] sm:$0xf0]  ;;  %v4839_v27 = vor.u32 %v5589_v5, %v4838_v19  ;;  %v5583_v19 = vld [vmem:[%s8430_s8 + $0x1b8] sm:$0xf0]  ;;  %v5537_v5 = vld [vmem:[%s8430_s8 + $0x4c] sm:$0xf] }
 0x31f   :  { %3379 = vmatpush.bf16.msra.mxu3 %v4699_v25  ;;  %v5146_v25 = vld [vmem:[%s8430_s8 + $0x438] sm:$0xf]  ;;  %v5263_v31 = vor.u32 %v5691_v20, %v5260_v21  ;;  %v4644_v20 = vld [vmem:[%s8430_s8 + $0x64] sm:$0xf0]  ;;  %v4986_v2 = vld [vmem:[%s8430_s8 + $0x2f0] sm:$0xf] }
 0x320   :  { %3354 = vmatpush.bf16.msra.mxu2 %v5115_v28  ;;  %v5565_v28 = vld [vmem:[%s8430_s8 + $0x12c] sm:$0xf] }
 0x321   :  { %3391 = vmatpush.bf16.msra.mxu0 %v4951_v32  ;;  %v4980_v32 = vld [vmem:[%s8430_s8 + $0x304] sm:$0xf0]  ;;  %v4759_v37 = vor.u32 %v5565_v28, %v4756_v30  ;;  %v5576_v30 = vld [vmem:[%s8430_s8 + $0x180] sm:$0xf0] }
 0x322   :  { %3343 = vmatpush.bf16.msra.mxu1 %v4835_v36  ;;  %v5147_v36 = vor.u32 %v5666_v12, %v5146_v25  ;;  %v5656_v25 = vld [vmem:[%s8430_s8 + $0x404] sm:$0xf]  ;;  %v4647_v12 = vor.u32 %v5537_v5, %v4644_v20  ;;  %v4790_v28 = vld [vmem:[%s8430_s8 + $0x168] sm:$0xf] }
 0x323   :  { %3380 = vmatpush.bf16.msra.mxu3 %v4671_v38  ;;  %v4983_v38 = vor.u32 %v5621_v29, %v4980_v32  ;;  %v4616_v32 = vld [vmem:[%s8430_s8 + $0x2c] sm:$0xf0]  ;;  %v4678_v20 = vld [vmem:[%s8430_s8 + $0x88] sm:$0xf] }
 0x324   :  { %3355 = vmatpush.bf16.msra.mxu2 %v5087_v41  ;;  %v4728_v41 = vld [vmem:[%s8430_s8 + $0x10c] sm:$0xf0] }
 0x325   :  { %3344 = vmatmul.bf16.vlgmr.msra.gmra.mxu1 %v7598_v3  ;;  %3392 = vmatpush.bf16.msra.mxu0 %v4923_v46  ;;  %v5677_v46 = vld [vmem:[%s8430_s8 + $0x4ac] sm:$0xf]  ;;  %v4731_v49 = vor.u32 %v5558_v40, %v4728_v41  ;;  %v5092_v41 = vld [vmem:[%s8430_s8 + $0x3e4] sm:$0xf0] }
 0x326   :  { %3401 = vmatpush.bf16.msrb.mxu1 %v5259_v42  ;;  %v5659_v42 = vld [vmem:[%s8430_s8 + $0x418] sm:$0xf0]  ;;  %v5207_v55 = vor.u32 %v5677_v46, %v5204_v47  ;;  %v5649_v40 = vld [vmem:[%s8430_s8 + $0x3cc] sm:$0xf]  ;;  %v4762_v47 = vld [vmem:[%s8430_s8 + $0x130] sm:$0xf] }
 0x327   :  { %3381 = vmatpush.bf16.msra.mxu3 %v4643_v52  ;;  %v5119_v48 = vor.u32 %v5659_v42, %v5118_v39  ;;  %v5551_v52 = vld [vmem:[%s8430_s8 + $0xbc] sm:$0xf] }
 0x328   :  { %3356 = vmatpush.bf16.msra.mxu2 %v5059_v57  ;;  %v5607_v57 = vld [vmem:[%s8430_s8 + $0x27c] sm:$0xf] }
 0x329   :  { %3393 = vmatpush.bf16.msra.mxu0 %v4895_v62  ;;  %v5091_v62 = vor.u32 %v5652_v24, %v5090_v50  ;;  %v4927_v1 = vor.u32 %v5607_v57, %v4924_v59  ;;  %v5639_v39 = vld [vmem:[%s8430_s8 + $0x378] sm:$0xf0]  ;;  %v5095_v50 = vor.u32 %v5649_v40, %v5092_v41  ;;  %v5632_v24 = vld [vmem:[%s8430_s8 + $0x340] sm:$0xf0]  ;;  %v5064_v57 = vld [vmem:[%s8430_s8 + $0x3ac] sm:$0xf0] }
 0x32a   :  { %3402 = vmatpush.bf16.msrb.mxu1 %v5231_v54  ;;  %v4700_v54 = vld [vmem:[%s8430_s8 + $0xd4] sm:$0xf0]  ;;  %v5695_v42 = vld [vmem:[%s8430_s8 + $0x538] sm:$0xf0]  ;;  %v4874_v41 = vld [vmem:[%s8430_s8 + $0x210] sm:$0xf] }
 0x32b   :  { %3357 = vmatmul.bf16.vlgmr.msra.gmra.mxu2 %v7600_v34  ;;  %3382 = vmatpush.bf16.msra.mxu3 %v4615_v7  ;;  %v5179_v7 = vor.u32 %v5670_v60, %v5176_v61  ;;  %v5294_v60 = vld [vmem:[%s8430_s8 + $0x558] sm:$0xf]  ;;  %v5702_v61 = vld [vmem:[%s8430_s8 + $0x570] sm:$0xf0] }
 0x32c   :  { %3421 = vmatpush.bf16.msrb.mxu2 %v5287_v35  ;;  %v4703_v35 = vor.u32 %v5551_v52, %v4700_v54  ;;  %v5238_v52 = vld [vmem:[%s8430_s8 + $0x4e8] sm:$0xf]  ;;  %v5688_v54 = vld [vmem:[%s8430_s8 + $0x500] sm:$0xf0] }
 0x32d   :  { %3394 = vmatpush.bf16.msra.mxu0 %v4867_v14  ;;  %v5063_v14 = vor.u32 %v5645_v0, %v5062_v63  ;;  %v5562_v63 = vld [vmem:[%s8430_s8 + $0x110] sm:$0xf0]  ;;  %v5239_v0 = vor.u32 %v5688_v54, %v5238_v52 }
 0x32e   :  { %3403 = vmatpush.bf16.msrb.mxu1 %v5203_v9  ;;  %3383 = vmatmul.bf16.vlgmr.msra.gmra.mxu3 %v7628_v53  ;;  %v4896_v9 = vld [vmem:[%s8430_s8 + $0x25c] sm:$0xf0] }
 0x32f   :  { %3440 = vmatpush.bf16.msrb.mxu3 %v5039_v13  ;;  %v5148_v13 = vld [vmem:[%s8430_s8 + $0x454] sm:$0xf0]  ;;  %v4899_v17 = vor.u32 %v5600_v6, %v4896_v9  ;;  %v5210_v6 = vld [vmem:[%s8430_s8 + $0x4b0] sm:$0xf]  ;;  %v5295_v9 = vor.u32 %v5702_v61, %v5294_v60 }
 0x330   :  { %3427 = vmatpush.bf16.msra.mxu2 %v4815_v10  ;;  %v5698_v10 = vld [vmem:[%s8430_s8 + $0x554] sm:$0xf]  ;;  %v5151_v21 = vor.u32 %v5663_v56, %v5148_v13  ;;  %v4706_v56 = vld [vmem:[%s8430_s8 + $0xc0] sm:$0xf]  ;;  %v5555_v13 = vld [vmem:[%s8430_s8 + $0xd8] sm:$0xf0] }
 0x331   :  { %3395 = vmatpush.bf16.msra.mxu0 %v4839_v27  ;;  %v5291_v18 = vor.u32 %v5698_v10, %v5288_v11  ;;  %v4819_v27 = vor.u32 %v5583_v19, %v4818_v16  ;;  %v4987_v11 = vor.u32 %v5625_v4, %v4986_v2  ;;  %v5618_v16 = vld [vmem:[%s8430_s8 + $0x2d0] sm:$0xf0]  ;;  %v4707_v19 = vor.u32 %v5555_v13, %v4706_v56 }
 0x332   :  { %3404 = vmatpush.bf16.msrb.mxu1 %v5175_v22  ;;  %v5593_v22 = vld [vmem:[%s8430_s8 + $0x20c] sm:$0xf] }
 0x333   :  { %3441 = vmatpush.bf16.msrb.mxu3 %v5011_v26  ;;  %v5120_v26 = vld [vmem:[%s8430_s8 + $0x41c] sm:$0xf0] }
 0x334   :  { %3428 = vmatpush.bf16.msra.mxu2 %v4787_v23  ;;  %3396 = vmatmul.bf16.vlgmr.msra.gmra.mxu0 %v7598_v3  ;;  %v4868_v23 = vld [vmem:[%s8430_s8 + $0x224] sm:$0xf0] }
 0x335   :  { %3453 = vmatpush.bf16.msrb.mxu0 %v5263_v31  ;;  %v5530_v31 = vld [vmem:[%s8430_s8 + $0x14] sm:$0xf]  ;;  %v4871_v29 = vor.u32 %v5593_v22, %v4868_v23  ;;  %v4930_v23 = vld [vmem:[%s8430_s8 + $0x280] sm:$0xf] }
 0x336   :  { %3405 = vmatpush.bf16.msrb.mxu1 %v5147_v36  ;;  %v5123_v36 = vor.u32 %v5656_v25, %v5120_v26  ;;  %v4619_v44 = vor.u32 %v5530_v31, %v4616_v32  ;;  %v5611_v25 = vld [vmem:[%s8430_s8 + $0x298] sm:$0xf0]  ;;  %v5154_v26 = vld [vmem:[%s8430_s8 + $0x440] sm:$0xf]  ;;  %v5541_v31 = vld [vmem:[%s8430_s8 + $0x68] sm:$0xf0] }
 0x337   :  { %3442 = vmatpush.bf16.msrb.mxu3 %v4983_v38  ;;  %v5266_v38 = vld [vmem:[%s8430_s8 + $0x520] sm:$0xf]  ;;  %v4902_v32 = vld [vmem:[%s8430_s8 + $0x248] sm:$0xf] }
 0x338   :  { %3429 = vmatpush.bf16.msra.mxu2 %v4759_v37  ;;  %v5042_v37 = vld [vmem:[%s8430_s8 + $0x360] sm:$0xf] }
 0x339   :  { %3454 = vmatpush.bf16.msrb.mxu0 %v5235_v43  ;;  %v4791_v43 = vor.u32 %v5576_v30, %v4790_v28  ;;  %v5043_v46 = vor.u32 %v5639_v39, %v5042_v37  ;;  %v4931_v28 = vor.u32 %v5611_v25, %v4930_v23  ;;  %v4650_v30 = vld [vmem:[%s8430_s8 + $0x50] sm:$0xf]  ;;  %v4903_v39 = vor.u32 %v5604_v33, %v4902_v32 }
 0x33a   :  { %3406 = vmatpush.bf16.msrb.mxu1 %v5119_v48  ;;  %v5569_v48 = vld [vmem:[%s8430_s8 + $0x148] sm:$0xf0]  ;;  %v4651_v37 = vor.u32 %v5541_v31, %v4650_v30 }
 0x33b   :  { %3443 = vmatpush.bf16.msrb.mxu3 %v4955_v51  ;;  %5300 = vmatmul.msk.bf16.vlgmr.msrb.gmra.mxu2 %vm1279_vm0, %v7636_v58  ;;  %v5014_v51 = vld [vmem:[%s8430_s8 + $0x328] sm:$0xf]  ;;  %v4763_v59 = vor.u32 %v5569_v48, %v4762_v47 }
 0x33c   :  { %3430 = vmatpush.bf16.msra.mxu2 %v4731_v49  ;;  %v5267_v49 = vor.u32 %v5695_v42, %v5266_v38  ;;  %v4622_v38 = vld [vmem:[%s8430_s8 + $0x18] sm:$0xf]  ;;  %v5534_v42 = vld [vmem:[%s8430_s8 + $0x30] sm:$0xf0] }
 0x33d   :  { %3455 = vmatpush.bf16.msrb.mxu0 %v5207_v55  ;;  %v5642_v55 = vld [vmem:[%s8430_s8 + $0x394] sm:$0xf] }
 0x33e   :  { %3407 = vmatpush.bf16.msrb.mxu1 %v5091_v62  ;;  %v5015_v62 = vor.u32 %v5632_v24, %v5014_v51  ;;  %v5070_v51 = vld [vmem:[%s8430_s8 + $0x398] sm:$0xf]  ;;  %v5646_v24 = vld [vmem:[%s8430_s8 + $0x3b0] sm:$0xf0] }
 0x33f   :  { %3444 = vmatpush.bf16.msrb.mxu3 %v4927_v1  ;;  %v5067_v1 = vor.u32 %v5642_v55, %v5064_v57  ;;  %v5071_v54 = vor.u32 %v5646_v24, %v5070_v51 }
 0x340   :  { %3431 = vmatpush.bf16.msra.mxu2 %v4703_v35  ;;  %v4734_v35 = vld [vmem:[%s8430_s8 + $0xf8] sm:$0xf] }
 0x341   :  { %3456 = vmatpush.bf16.msrb.mxu0 %v5179_v7  ;;  %v5681_v7 = vld [vmem:[%s8430_s8 + $0x4c8] sm:$0xf0]  ;;  %v4735_v10 = vor.u32 %v5562_v63, %v4734_v35 }
 0x342   :  { %3408 = vmatpush.bf16.msrb.mxu1 %v5063_v14  ;;  %v5211_v14 = vor.u32 %v5681_v7, %v5210_v6 }
 0x343   :  { %3445 = vmatpush.bf16.msrb.mxu3 %v4899_v17  ;;  %v5182_v17 = vld [vmem:[%s8430_s8 + $0x478] sm:$0xf] }
 0x344   :  { %3432 = vmatpush.bf16.msra.mxu2 %v4675_v15  ;;  %v4958_v15 = vld [vmem:[%s8430_s8 + $0x2b8] sm:$0xf] }
 0x345   :  { %3457 = vmatpush.bf16.msrb.mxu0 %v5151_v21  ;;  %3409 = vmatmul.bf16.vlgmr.msrb.gmra.mxu1 %v7600_v34  ;;  %v4959_v5 = vor.u32 %v5618_v16, %v4958_v15  ;;  %v5548_v21 = vld [vmem:[%s8430_s8 + $0xa0] sm:$0xf0] }
 0x346   :  { %3473 = vmatpush.bf16.msra.mxu1 %v5291_v18  ;;  %v5674_v18 = vld [vmem:[%s8430_s8 + $0x490] sm:$0xf0] }
 0x347   :  { %3446 = vmatpush.bf16.msrb.mxu3 %v4871_v29  ;;  %v5183_v22 = vor.u32 %v5674_v18, %v5182_v17 }
 0x348   :  { %3433 = vmatpush.bf16.msra.mxu2 %v4647_v12  ;;  %v4679_v12 = vor.u32 %v5548_v21, %v4678_v20 }
 0x349   :  { %3458 = vmatpush.bf16.msrb.mxu0 %v5123_v36  ;;  %v5660_v36 = vld [vmem:[%s8430_s8 + $0x420] sm:$0xf0] }
 0x34a   :  { %3479 = vmatpush.bf16.msrb.mxu1 %v4819_v27  ;;  %v5667_v27 = vld [vmem:[%s8430_s8 + $0x458] sm:$0xf0]  ;;  %v5127_v40 = vor.u32 %v5660_v36, %v5126_v8 }
 0x34b   :  { %3447 = vmatpush.bf16.msrb.mxu3 %v4843_v45  ;;  %v5155_v29 = vor.u32 %v5667_v27, %v5154_v26  ;;  %v5653_v45 = vld [vmem:[%s8430_s8 + $0x3e8] sm:$0xf0] }
 0x34c   :  { %3434 = vmatpush.bf16.msra.mxu2 %v4619_v44  ;;  %v5098_v44 = vld [vmem:[%s8430_s8 + $0x3d0] sm:$0xf] }
 0x34d   :  { %3459 = vmatpush.bf16.msrb.mxu0 %v5095_v50  ;;  %v5099_v48 = vor.u32 %v5653_v45, %v5098_v44  ;;  %v5590_v50 = vld [vmem:[%s8430_s8 + $0x1f0] sm:$0xf0] }
 0x34e   :  { %3480 = vmatpush.bf16.msrb.mxu1 %v4791_v43  ;;  %3448 = vmatmul.bf16.vlgmr.msrb.gmra.mxu3 %v7598_v3  ;;  %v5597_v43 = vld [vmem:[%s8430_s8 + $0x228] sm:$0xf0] }
 0x34f   :  { %3505 = vmatpush.bf16.msra.mxu3 %v5267_v49  ;;  %3435 = vmatmul.bf16.vlgmr.msra.gmra.mxu2 %v7628_v53  ;;  %v4875_v47 = vor.u32 %v5597_v43, %v4874_v41  ;;  %v4846_v49 = vld [vmem:[%s8430_s8 + $0x1d8] sm:$0xf] }
 0x350   :  { %3492 = vmatpush.bf16.msrb.mxu2 %v5043_v46  ;;  %v4623_v46 = vor.u32 %v5534_v42, %v4622_v38  ;;  %v4847_v52 = vor.u32 %v5590_v50, %v4846_v49 }
 0x351   :  { %3460 = vmatpush.bf16.msrb.mxu0 %v5067_v1 }
 0x352   :  { %3481 = vmatpush.bf16.msrb.mxu1 %v4763_v59  ;;  %v8382_v59 = vld [vmem:[%s8431_s9] sm:$0x7f] }
 0x353   :  { %3506 = vmatpush.bf16.msra.mxu3 %v5239_v0  ;;  %v2250_v61 = vperm.slane %v8382_v59, 0  ;;  %v2251_v17 = vperm.slane %v8382_v59, 1  ;;  %v2252_v21 = vperm.slane %v8382_v59, 2  ;;  %v2253_v36 = vperm.slane %v8382_v59, 3 }
 0x354   :  { %3493 = vmatpush.bf16.msrb.mxu2 %v5015_v62  ;;  %3461 = vmatmul.bf16.vlgmr.msrb.gmra.mxu0 %v7600_v34 }
 0x355   :  { %3525 = vmatpush.bf16.msra.mxu0 %v5295_v9  ;;  %5301 = vmatmul.msk.bf16.vlgmr.msra.gmra.mxu1 %vm1279_vm0, %v7636_v58 }
 0x356   :  { %3482 = vmatpush.bf16.msrb.mxu1 %v4735_v10 }
 0x357   :  { %3507 = vmatpush.bf16.msra.mxu3 %v5211_v14 }
 0x358   :  { %3494 = vmatpush.bf16.msrb.mxu2 %v4987_v11 }
 0x35a   :  { %3483 = vmatpush.bf16.msrb.mxu1 %v4707_v19 }
 0x35b   :  { %3508 = vmatpush.bf16.msra.mxu3 %v5183_v22 }
 0x35c   :  { %3495 = vmatpush.bf16.msrb.mxu2 %v4959_v5 }
 0x35e   :  { %3484 = vmatpush.bf16.msrb.mxu1 %v4679_v12 }
 0x35f   :  { %3509 = vmatpush.bf16.msra.mxu3 %v5155_v29 }
 0x360   :  { %3496 = vmatpush.bf16.msrb.mxu2 %v4931_v28 }
 0x361   :  { %v3189_v55 = vpop.f32.mrf.mxu0 }
 0x362   :  { %3485 = vmatpush.bf16.msrb.mxu1 %v4651_v37  ;;  %v3202_v57 = vpop.f32.mrf.mxu1 }
 0x363   :  { %3510 = vmatpush.bf16.msra.mxu3 %v5127_v40 }
 0x364   :  { %3497 = vmatpush.bf16.msrb.mxu2 %v4903_v39  ;;  %5302 = vmatmul.msk.bf16.vlgmr.msra.gmra.mxu0 %vm1279_vm0, %v7636_v58 }
 0x366   :  { %3486 = vmatpush.bf16.msrb.mxu1 %v4623_v46 }
 0x367   :  { %3511 = vmatpush.bf16.msra.mxu3 %v5099_v48 }
 0x368   :  { %3498 = vmatpush.bf16.msrb.mxu2 %v4875_v47 }
 0x369   :  { %3487 = vmatmul.bf16.vlgmr.msrb.gmra.mxu1 %v7628_v53  ;;  %v3191_v60 = vpop.f32.mrf.mxu0 }
 0x36a   :  { %v3204_v58 = vpop.f32.mrf.mxu1 }
 0x36b   :  { %3512 = vmatpush.bf16.msra.mxu3 %v5071_v54 }
 0x36c   :  { %3499 = vmatpush.bf16.msrb.mxu2 %v4847_v52 }
 0x36d   :  { %v3176_v62 = vpop.f32.mrf.mxu3 }
 0x36e   :  { %3513 = vmatmul.bf16.vlgmr.msra.gmra.mxu3 %v7600_v34  ;;  %v3177_v35 = vadd.f32 %v3176_v62, %v2250_v61  ;;  %v3215_v53 = vpop.f32.mrf.mxu2 }
 0x36f   :  { %3500 = vmatmul.bf16.vlgmr.msrb.gmra.mxu2 %v7598_v3 }
 0x370   :  { %v3190_v63 = vadd.f32 %v3189_v55, %v3177_v35 }
 0x371   :  { %v3254_v0 = vpop.f32.mrf.mxu0 }
 0x372   :  { %v3203_v1 = vadd.f32 %v3202_v57, %v3190_v63  ;;  %v3267_v2 = vpop.f32.mrf.mxu1 }
 0x374   :  { %v3216_v4 = vadd.f32 %v3215_v53, %v3203_v1 }
 0x375   :  { %v3178_v3 = vpop.f32.mrf.mxu3 }
 0x376   :  { %v3217_v6 = vpop.f32.mrf.mxu2  ;;  %v3531_v42 = vsub.f32 0.0, %v3216_v4 }
 0x378   :  { %v3538_v45 = vmul.f32 1.442695, %v3531_v42 }
 0x379   :  { %v3256_v34 = vpop.f32.mrf.mxu0 }
 0x37a   :  { %v3269_v7 = vpop.f32.mrf.mxu1 }
 0x37d   :  { %v3241_v9 = vpop.f32.mrf.mxu3 }
 0x37e   :  { %v3228_v10 = vpop.f32.mrf.mxu2 }
 0x37f   :  { %v3229_v5 = vadd.f32 %v3228_v10, %v2251_v17 }
 0x381   :  { %v3319_v11 = vpop.f32.mrf.mxu0  ;;  %v3242_v22 = vadd.f32 %v3241_v9, %v3229_v5 }
 0x382   :  { %v3280_v56 = vpop.f32.mrf.mxu1 }
 0x383   :  { %v3281_v26 = vadd.f32 %v3280_v56, %v2252_v21  ;;  %v3255_v27 = vadd.f32 %v3254_v0, %v3242_v22  ;;  %v2254_v0 = vperm.slane %v8382_v59, 4 }
 0x385   :  { %v3243_v13 = vpop.f32.mrf.mxu3  ;;  %v3268_v30 = vadd.f32 %v3267_v2, %v3255_v27 }
 0x386   :  { %v3230_v14 = vpop.f32.mrf.mxu2 }
 0x387   :  { %v3532_v33 = vsub.f32 0.0, %v3268_v30 }
 0x389   :  { %v3321_v15 = vpop.f32.mrf.mxu0  ;;  %v3540_v37 = vmul.f32 1.442695, %v3532_v33 }
 0x38a   :  { %v3282_v16 = vpop.f32.mrf.mxu1 }
 0x38b   :  { %5714 = vpow2.f32 %v3540_v37 }
 0x38d   :  { %v3306_v18 = vpop.f32.mrf.mxu3 }
 0x38e   :  { %v3293_v19 = vpop.f32.mrf.mxu2 }
 0x38f   :  { %v3294_v28 = vadd.f32 %v3293_v19, %v3281_v26 }
 0x391   :  { %v3332_v20 = vpop.f32.mrf.mxu0  ;;  %v3307_v29 = vadd.f32 %v3306_v18, %v3294_v28  ;;  %v5715_v50 = vpop.eup %5714 }
 0x392   :  { %v3333_v41 = vadd.f32 %v3332_v20, %v2253_v36  ;;  %v3553_v52 = vadd.f32 1.0, %v5715_v50 }
 0x393   :  { %v3320_v8 = vadd.f32 %v3319_v11, %v3307_v29 }
 0x395   :  { %v3308_v23 = vpop.f32.mrf.mxu3  ;;  %v3533_v38 = vsub.f32 0.0, %v3320_v8 }
 0x396   :  { %v3295_v25 = vpop.f32.mrf.mxu2 }
 0x397   :  { %v3542_v43 = vmul.f32 1.442695, %v3533_v38 }
 0x399   :  { %v3334_v12 = vpop.f32.mrf.mxu0  ;;  %5716 = vpow2.f32 %v3542_v43 }
 0x39a   :  { %5718 = vpow2.f32 %v3538_v45 }
 0x39d   :  { %v3371_v31 = vpop.f32.mrf.mxu3 }
 0x39f   :  { %v5717_v57 = vpop.eup %5716 }
 0x3a0   :  { %v5719_v60 = vpop.eup %5718  ;;  %v3554_v61 = vadd.f32 1.0, %v5717_v57 }
 0x3a1   :  { %v3552_v35 = vadd.f32 1.0, %v5719_v60 }
 0x3a2   :  { %v3345_v32 = vpop.f32.mrf.mxu1 }
 0x3a3   :  { %v3346_v44 = vadd.f32 %v3345_v32, %v3333_v41 }
 0x3a5   :  { %v3373_v39 = vpop.f32.mrf.mxu3 }
 0x3aa   :  { %v3347_v40 = vpop.f32.mrf.mxu1 }
 0x3ae   :  { %v3358_v46 = vpop.f32.mrf.mxu2 }
 0x3af   :  { %v3359_v47 = vadd.f32 %v3358_v46, %v3346_v44 }
 0x3b1   :  { %v3372_v48 = vadd.f32 %v3371_v31, %v3359_v47  ;;  %v3384_v49 = vpop.f32.mrf.mxu3  ;;  %v3397_v51 = vpop.f32.mrf.mxu0  ;;  %v2255_v31 = vperm.slane %v8382_v59, 5 }
 0x3b2   :  { %v3385_v6 = vadd.f32 %v3384_v49, %v2254_v0 }
 0x3b3   :  { %v3534_v24 = vsub.f32 0.0, %v3372_v48 }
 0x3b4   :  { %v3398_v11 = vadd.f32 %v3397_v51, %v3385_v6 }
 0x3b5   :  { %v3544_v54 = vmul.f32 1.442695, %v3534_v24 }
 0x3b6   :  { %v3360_v55 = vpop.f32.mrf.mxu2 }
 0x3b7   :  { %5720 = vpow2.f32 %v3544_v54  ;;  %v2256_v55 = vperm.slane %v8382_v59, 6 }
 0x3b8   :  { %5722 = vrcp.f32 %v3553_v52 }
 0x3b9   :  { %v3386_v58 = vpop.f32.mrf.mxu3  ;;  %v3399_v62 = vpop.f32.mrf.mxu0  ;;  %5724 = vrcp.f32 %v3554_v61 }
 0x3ba   :  { %5726 = vrcp.f32 %v3552_v35 }
 0x3bd   :  { %v5721_v53 = vpop.eup %5720 }
 0x3be   :  { %v3555_v63 = vadd.f32 1.0, %v5721_v53  ;;  %v3423_v1 = vpop.f32.mrf.mxu2  ;;  %v5723_v2 = vpop.eup %5722 }
 0x3bf   :  { %v3573_v3 = vrot.slane %v5723_v2, 6  ;;  %v5725_v34 = vpop.eup %5724 }
 0x3c0   :  { %5728 = vrcp.f32 %v3555_v63  ;;  %v5727_v7 = vpop.eup %5726  ;;  %v3574_v13 = vrot.slane %v5725_v34, 4 }
 0x3c1   :  { %v3578_v10 = vsel %vm1975_vm1, %v5727_v7, %v3573_v3  ;;  %v3586_v15 = vsel %vm3585_vm3, %v5727_v7, %v3573_v3  ;;  %v3595_v16 = vsel %vm3579_vm4, %v5727_v7, %v3573_v3  ;;  %v3602_v17 = vsel %vm3587_vm5, %v3573_v3, %v5727_v7 }
 0x3c2   :  { %v3410_v4 = vpop.f32.mrf.mxu1 }
 0x3c3   :  { %v3411_v18 = vadd.f32 %v3410_v4, %v3398_v11 }
 0x3c5   :  { %v3424_v29 = vadd.f32 %v3423_v1, %v3411_v18 }
 0x3c6   :  { %v5729_v9 = vpop.eup %5728  ;;  %v3425_v56 = vpop.f32.mrf.mxu2 }
 0x3c7   :  { %v3575_v14 = vrot.slane %v5729_v9, 2  ;;  %v3535_v39 = vsub.f32 0.0, %v3424_v29 }
 0x3c9   :  { %v3580_v5 = vsel %vm3579_vm4, %v3574_v13, %v3575_v14  ;;  %v3588_v20 = vsel %vm3587_vm5, %v3575_v14, %v3574_v13  ;;  %v3596_v21 = vsel %vm1975_vm1, %v3574_v13, %v3575_v14  ;;  %v3603_v22 = vsel %vm3585_vm3, %v3574_v13, %v3575_v14 }
 0x3ca   :  { %v3412_v19 = vpop.f32.mrf.mxu1  ;;  %v3582_v23 = vsel %vm3581_vm6, %v3578_v10, %v3580_v5  ;;  %v3590_v25 = vsel %vm3589_vm7, %v3586_v15, %v3588_v20  ;;  %v3597_v26 = vsel %vm3581_vm6, %v3596_v21, %v3595_v16  ;;  %v3604_v27 = vsel %vm3589_vm7, %v3603_v22, %v3602_v17 }
 0x3cb   :  { %v3591_v12 = vrot.slane %v3590_v25, 2  ;;  %v3598_v28 = vrot.slane %v3597_v26, 4  ;;  %v3605_v30 = vrot.slane %v3604_v27, 6  ;;  %3617 = vst [vmem:[#allocation2] sm:$0xff] %v3582_v23  ;;  %v3546_v40 = vmul.f32 1.442695, %v3535_v39 }
 0x3cd   :  { %3622 = vst [vmem:[#allocation2 + $0xe] sm:$0xff] %v3591_v12  ;;  %5730 = vpow2.f32 %v3546_v40 }
 0x3ce   :  { %3624 = vst [vmem:[#allocation2 + $0x1c] sm:$0xff] %v3598_v28 }
 0x3cf   :  { %3626 = vst [vmem:[#allocation2 + $0x2a] sm:$0xff] %v3605_v30 }
 0x3d1   :  { %v3462_v33 = vpop.f32.mrf.mxu0  ;;  %v3449_v36 = vpop.f32.mrf.mxu3 }
 0x3d2   :  { %v3436_v32 = vpop.f32.mrf.mxu2  ;;  %v3475_v37 = vpop.f32.mrf.mxu1 }
 0x3d3   :  { %v3437_v8 = vadd.f32 %v3436_v32, %v2255_v31  ;;  %v5731_v50 = vpop.eup %5730 }
 0x3d4   :  { %v3556_v52 = vadd.f32 1.0, %v5731_v50 }
 0x3d5   :  { %v3450_v38 = vadd.f32 %v3449_v36, %v3437_v8 }
 0x3d7   :  { %v3463_v42 = vadd.f32 %v3462_v33, %v3450_v38 }
 0x3d9   :  { %v3476_v41 = vadd.f32 %v3475_v37, %v3463_v42  ;;  %v3464_v44 = vpop.f32.mrf.mxu0  ;;  %v3451_v46 = vpop.f32.mrf.mxu3 }
 0x3da   :  { %v3438_v43 = vpop.f32.mrf.mxu2  ;;  %v3477_v47 = vpop.f32.mrf.mxu1 }
 0x3db   :  { %v3536_v45 = vsub.f32 0.0, %v3476_v41 }
 0x3dd   :  { %v3548_v48 = vmul.f32 1.442695, %v3536_v45 }
 0x3df   :  { %5732 = vpow2.f32 %v3548_v48 }
 0x3e1   :  { %v3527_v49 = vpop.f32.mrf.mxu0 }
 0x3e5   :  { %v5733_v24 = vpop.eup %5732 }
 0x3e6   :  { %v3488_v51 = vpop.f32.mrf.mxu1  ;;  %v3557_v54 = vadd.f32 1.0, %v5733_v24 }
 0x3e7   :  { %v3489_v61 = vadd.f32 %v3488_v51, %v2256_v55 }
 0x3e8   :  { %5734 = vrcp.f32 %v3557_v54 }
 0x3e9   :  { %5736 = vrcp.f32 %v3556_v52  ;;  %v3529_v57 = vpop.f32.mrf.mxu0 }
 0x3ee   :  { %v3490_v60 = vpop.f32.mrf.mxu1  ;;  %v5735_v58 = vpop.eup %5734 }
 0x3ef   :  { %v3576_v62 = vrot.slane %v5735_v58, 6  ;;  %v5737_v53 = vpop.eup %5736 }
 0x3f1   :  { %v3514_v0 = vpop.f32.mrf.mxu3  ;;  %v3606_v1 = vsel %vm3587_vm5, %v3576_v62, %v5737_v53  ;;  %v3583_v56 = vsel %vm1975_vm1, %v5737_v53, %v3576_v62  ;;  %v3592_v13 = vsel %vm3585_vm3, %v5737_v53, %v3576_v62  ;;  %v3599_v14 = vsel %vm3579_vm4, %v5737_v53, %v3576_v62 }
 0x3f2   :  { %v3501_v35 = vpop.f32.mrf.mxu2 }
 0x3f3   :  { %v3502_v63 = vadd.f32 %v3501_v35, %v3489_v61 }
 0x3f5   :  { %v3515_v2 = vadd.f32 %v3514_v0, %v3502_v63 }
 0x3f7   :  { %v3528_v4 = vadd.f32 %v3527_v49, %v3515_v2 }
 0x3f9   :  { %v3537_v3 = vsub.f32 0.0, %v3528_v4  ;;  %v3516_v7 = vpop.f32.mrf.mxu3 }
 0x3fa   :  { %v3503_v6 = vpop.f32.mrf.mxu2 }
 0x3fb   :  { %v3550_v34 = vmul.f32 1.442695, %v3537_v3 }
 0x3fd   :  { %5738 = vpow2.f32 %v3550_v34 }
 0x403   :  { %v5739_v9 = vpop.eup %5738 }
 0x404   :  { %v3558_v59 = vadd.f32 1.0, %v5739_v9 }
 0x406   :  { %5740 = vrcp.f32 %v3558_v59 }
 0x40c   :  { %v5741_v10 = vpop.eup %5740 }
 0x40d   :  { %v3577_v11 = vrot.slane %v5741_v10, 4 }
 0x40f   :  { %v3584_v15 = vsel %vm3581_vm6, %v3583_v56, %v3577_v11  ;;  %v3593_v16 = vsel %vm3589_vm7, %v3592_v13, %v3577_v11  ;;  %v3600_v17 = vsel %vm3581_vm6, %v3577_v11, %v3599_v14  ;;  %v3607_v18 = vsel %vm3589_vm7, %v3577_v11, %v3606_v1 }
 0x410   :  { %v3594_v19 = vrot.slane %v3593_v16, 2  ;;  %v3601_v5 = vrot.slane %v3600_v17, 4  ;;  %v3608_v20 = vrot.slane %v3607_v18, 6  ;;  %3621 = vst.msk [vmem:[#allocation2 + $0x8] sm:$0x3f] %vm3620_vm10, %v3584_v15 }
 0x412   :  { %3623 = vst.msk [vmem:[#allocation2 + $0x16] sm:$0x3f] %vm3620_vm10, %v3594_v19 }
 0x413   :  { %3625 = vst.msk [vmem:[#allocation2 + $0x24] sm:$0x3f] %vm3620_vm10, %v3601_v5 }
 0x414   :  { %3627 = vst.msk [vmem:[#allocation2 + $0x32] sm:$0x3f] %vm3620_vm10, %v3608_v20 }
 0x415   :  { %3637 = vsyncadd [#allocation3], 672  ;;  %s3640_s15 = sshll.u32 %s8432_s10, 4  ;;  %s5819_s3 = smov [#allocation2]   ;;  %s3641_s15 = int_to_ptr.hbm [resolvable:$true] %s3640_s15 }
 0x416   :  { %s3638_s16 = sshll.u32 %s5819_s3, 4  ;;  %s5820_s17 = smov 224   ;;  %s3639_s16 = int_to_ptr.vmem [resolvable:$true] %s3638_s16 }
 0x417   :  { %s5821_s18 = smov 14  }
 0x418   :  { %3646 = dma.vmem_to_hbm [thread:$0]  %s3639_s16, 224, %s3641_s15, [#allocation3], %s5820_s17, %s5820_s17, %s5821_s18  }
 0x419   :  { %3650 = vsyncadd [#allocation5], 96  ;;  %s3653_s21 = sshll.u32 %s8433_s11, 4  ;;  %s5822_s22 = smov [#allocation4]   ;;  %s3654_s21 = int_to_ptr.hbm [resolvable:$true] %s3653_s21 }
 0x41a   :  { %s3651_s2 = sshll.u32 %s5822_s22, 4  ;;  %s5823_s23 = smov 32   ;;  %s3652_s2 = int_to_ptr.vmem [resolvable:$true] %s3651_s2 }
 0x41b   :  { %s5824_s4 = smov 2  }
 0x41c   :  { %3659 = dma.vmem_to_hbm [thread:$0]  %s3652_s2, 32, %s3654_s21, [#allocation5], %s5823_s23, %s5823_s23, %s5824_s4  }
 0x41d   :  { %3663 = vsyncadd [#allocation5], 96  ;;  %s3666_s25 = sshll.u32 %s8434_s12, 4  ;;  %s5825_s0 = smov [#allocation6]   ;;  %s3667_s25 = int_to_ptr.hbm [resolvable:$true] %s3666_s25 }
 0x41e   :  { %s3664_s26 = sshll.u32 %s5825_s0, 4  ;;  %s3665_s26 = int_to_ptr.vmem [resolvable:$true] %s3664_s26 }
 0x41f   :  { %3672 = dma.vmem_to_hbm [thread:$0]  %s3665_s26, 32, %s3667_s25, [#allocation5], %s5823_s23, %s5823_s23, %s5824_s4  }
 0x420   :  { %5814 = dma.done.wait [#allocation3], 896  }
 0x421   :  { %5815 = vsyncadd [#allocation3], 4294966400 }
 0x422   :  { %5816 = dma.done.wait [#allocation5], 256  }
 0x423   :  { %5817 = vsyncadd [#allocation5], 4294967040 }
 0x424   :  { %3685 = vsyncpa [#allocation3], 1 }
 0x425   :  { %3686 = vsyncpa [#allocation5], 1 }

</bundles_post_ra>
